<compile_context>
chip_gen: v7x
topology: tpu7x:2x2x1
jax: 0.10.0
libtpu: 0.0.40
codegen_flags: <defaults>
</compile_context>

<pallas_src>
import functools

import numpy as np
import jax
import jax.numpy as jnp
from jax.experimental import pallas as pl
from jax.experimental.pallas import tpu as pltpu

VMEM_LIMIT = 32 * 1024 * 1024


# ---------------------------------------------------------------------------
# Kernels
# ---------------------------------------------------------------------------
def _conv_relu_pool_kernel(xe_ref, xo_ref, w_ref, b_ref, se_ref, so_ref, o_ref,
                           *, kh, hp):
    """Fused conv(5x5, valid) + bias + ReLU + 2x2 max-pool for one sample.

    xe_ref / xo_ref: (1, Hin//2, Win*Cp) bf16  -- even / odd input image rows
    w_ref:           (kh, Win*Cp_pad, Nw) bf16 -- per-dh Toeplitz conv weights
    b_ref:           (1, Nw) f32               -- bias broadcast over conv cols
    se_ref / so_ref: (Nw, Wout) bf16           -- horizontal-pool selection
    o_ref:           (1, hp, Wout) bf16        -- pooled, lane-compact output
    """
    nw = w_ref.shape[2]
    acc_e = jnp.zeros((hp, nw), jnp.float32)   # conv rows 2p   (pre-bias)
    acc_o = jnp.zeros((hp, nw), jnp.float32)   # conv rows 2p+1 (pre-bias)

    for dh in range(kh):                       # static unroll (kh == 5)
        w_dh = w_ref[dh]                       # (Win*Cp, Nw) bf16
        t = dh // 2
        if dh % 2 == 0:
            lhs_e = xe_ref[0, pl.ds(t, hp), :]       # input rows 2p + dh
            lhs_o = xo_ref[0, pl.ds(t, hp), :]       # input rows 2p + 1 + dh
        else:
            lhs_e = xo_ref[0, pl.ds(t, hp), :]
            lhs_o = xe_ref[0, pl.ds(t + 1, hp), :]
        acc_e = acc_e + jnp.dot(lhs_e, w_dh, preferred_element_type=jnp.float32)
        acc_o = acc_o + jnp.dot(lhs_o, w_dh, preferred_element_type=jnp.float32)

    # vertical 2x pool (VPU) + bias + ReLU, all in f32.
    m = jnp.maximum(jnp.maximum(acc_e, acc_o) + b_ref[...], 0.0)     # (hp, Nw)
    mb = m.astype(jnp.bfloat16)

    # horizontal 2x pool + lane compaction via two tiny selection matmuls.
    pooled = jnp.maximum(
        jnp.dot(mb, se_ref[...], preferred_element_type=jnp.float32),
        jnp.dot(mb, so_ref[...], preferred_element_type=jnp.float32))
    o_ref[0, :, :] = pooled.astype(o_ref.dtype)


def _fc_fused_kernel(x_ref, w1_ref, b1_ref, w2_ref, b2_ref, w3_ref, b3_ref, o_ref):
    # full1 -> ReLU -> full2 -> ReLU -> full3; bf16 MXU, f32 accumulation.
    h = jnp.dot(x_ref[...], w1_ref[...], preferred_element_type=jnp.float32)
    h = jnp.maximum(h + b1_ref[...], 0.0)
    h = jnp.dot(h.astype(jnp.bfloat16), w2_ref[...],
                preferred_element_type=jnp.float32)
    h = jnp.maximum(h + b2_ref[...], 0.0)
    y = jnp.dot(h.astype(jnp.bfloat16), w3_ref[...],
                preferred_element_type=jnp.float32)
    o_ref[...] = (y + b3_ref[...]).astype(o_ref.dtype)


# ---------------------------------------------------------------------------
# Pallas-backed ops
# ---------------------------------------------------------------------------
def conv_relu_pool_pallas(x_even, x_odd, w, b, sel_e, sel_o, *, kh, hp, wout):
    B, Hh, WinC = x_even.shape
    _, _, Nw = w.shape
    kernel = functools.partial(_conv_relu_pool_kernel, kh=kh, hp=hp)
    return pl.pallas_call(
        kernel,
        out_shape=jax.ShapeDtypeStruct((B, hp, wout), jnp.bfloat16),
        grid=(B,),
        in_specs=[
            pl.BlockSpec((1, Hh, WinC), lambda bi: (bi, 0, 0)),
            pl.BlockSpec((1, Hh, WinC), lambda bi: (bi, 0, 0)),
            pl.BlockSpec((kh, WinC, Nw), lambda bi: (0, 0, 0)),
            pl.BlockSpec((1, Nw), lambda bi: (0, 0)),
            pl.BlockSpec((Nw, wout), lambda bi: (0, 0)),
            pl.BlockSpec((Nw, wout), lambda bi: (0, 0)),
        ],
        out_specs=pl.BlockSpec((1, hp, wout), lambda bi: (bi, 0, 0)),
        compiler_params=pltpu.CompilerParams(
            dimension_semantics=("parallel",),
            vmem_limit_bytes=VMEM_LIMIT),
    )(x_even, x_odd, w, b, sel_e, sel_o)


def fc_head_pallas(x, w1, b1, w2, b2, w3, b3):
    B, K = x.shape
    N = w3.shape[1]
    tm = 128 if B % 128 == 0 else B           # M-grid only when it divides evenly
    grid = (B // tm,)
    return pl.pallas_call(
        _fc_fused_kernel,
        out_shape=jax.ShapeDtypeStruct((B, N), jnp.float32),
        grid=grid,
        in_specs=[
            pl.BlockSpec((tm, K), lambda i: (i, 0)),
            pl.BlockSpec(w1.shape, lambda i: (0, 0)),
            pl.BlockSpec(b1.shape, lambda i: (0, 0)),
            pl.BlockSpec(w2.shape, lambda i: (0, 0)),
            pl.BlockSpec(b2.shape, lambda i: (0, 0)),
            pl.BlockSpec(w3.shape, lambda i: (0, 0)),
            pl.BlockSpec(b3.shape, lambda i: (0, 0)),
        ],
        out_specs=pl.BlockSpec((tm, N), lambda i: (i, 0)),
        compiler_params=pltpu.CompilerParams(
            dimension_semantics=("parallel",),
            vmem_limit_bytes=VMEM_LIMIT),
    )(x, w1, b1, w2, b2, w3, b3)


# ---------------------------------------------------------------------------
# One-time parameter packing (host-side numpy; bf16 weights, f32 biases)
# ---------------------------------------------------------------------------
def _conv_toeplitz(w, w_in, c_pad, w_out, o_pad, k_pad, n_pad):
    """(O, C, kh, kw) torch conv weight -> (kh, k_pad, n_pad) Toeplitz blocks:
       T[dh, win*c_pad + c, wo*o_pad + o] = w[o, c, dh, win - wo]."""
    w = np.asarray(w, np.float32)
    O, C, kh, kw = w.shape
    full = np.zeros((kh, w_in, c_pad, w_out, o_pad), np.float32)
    for dh in range(kh):
        for dw in range(kw):
            tap = w[:, :, dh, dw].T                       # (C, O)
            for wo in range(w_out):
                full[dh, wo + dw, :C, wo, :O] = tap
    full = full.reshape(kh, w_in * c_pad, w_out * o_pad)
    out = np.zeros((kh, k_pad, n_pad), np.float32)
    out[:, : w_in * c_pad, : w_out * o_pad] = full
    return jnp.asarray(out, jnp.bfloat16)


def _conv_bias(b, w_out, o_pad, n_pad):
    b = np.asarray(b, np.float32)
    t = np.zeros((w_out, o_pad), np.float32)
    t[:, : b.shape[0]] = b
    out = np.zeros((1, n_pad), np.float32)
    out[0, : w_out * o_pad] = t.reshape(-1)
    return jnp.asarray(out, jnp.float32)


def _pool_sel(w_out, o_pad, n_pad, out_w, parity):
    """(n_pad, out_w) selection matrix: conv column 2*wp+parity -> pooled column wp."""
    s = np.zeros((n_pad, out_w), np.float32)
    for wp in range(w_out // 2):
        for o in range(o_pad):
            s[(2 * wp + parity) * o_pad + o, wp * o_pad + o] = 1.0
    return jnp.asarray(s, jnp.bfloat16)


def _fc_weight(w, k_pad=128, n_pad=128):
    w = np.asarray(w, np.float32)
    N, K = w.shape
    out = np.zeros((k_pad, n_pad), np.float32)
    out[:K, :N] = w.T
    return jnp.asarray(out, jnp.bfloat16)


def _fc_bias(b, n_pad=128):
    b = np.asarray(b, np.float32)
    out = np.zeros((1, n_pad), np.float32)
    out[0, : b.shape[0]] = b
    return jnp.asarray(out, jnp.float32)


def _pack_params(raw):
    p = {}
    # conv1: 3->6 ch, 48x48 -> 44x44 -> pool 22x22; lanes: 4/pixel in, 8/pixel out.
    p["conv1_w"] = _conv_toeplitz(raw["conv1_w"], 48, 4, 44, 8, 192, 384)
    p["conv1_b"] = _conv_bias(raw["conv1_b"], 44, 8, 384)
    p["sel1_e"] = _pool_sel(44, 8, 384, 256, 0)
    p["sel1_o"] = _pool_sel(44, 8, 384, 256, 1)
    # conv2: 6->16 ch, 22x22 -> 18x18 -> pool 9x9; lanes: 8/pixel in, 16/pixel out.
    p["conv2_w"] = _conv_toeplitz(raw["conv2_w"], 22, 8, 18, 16, 256, 384)
    p["conv2_b"] = _conv_bias(raw["conv2_b"], 18, 16, 384)
    p["sel2_e"] = _pool_sel(18, 16, 384, 144, 0)
    p["sel2_o"] = _pool_sel(18, 16, 384, 144, 1)

    # full1: PyTorch flatten order is (oc, h, w); our flatten order is (h, w, oc).
    w1 = np.asarray(raw["full1_w"], np.float32).reshape(120, 16, 9, 9)  # (n,oc,h,w)
    w1 = np.transpose(w1, (2, 3, 1, 0))                                 # (h,w,oc,n)
    w1p = np.zeros((9, 9, 16, 128), np.float32)
    w1p[..., :120] = w1
    p["full1_w"] = jnp.asarray(w1p.reshape(9 * 9 * 16, 128), jnp.bfloat16)
    p["full1_b"] = _fc_bias(raw["full1_b"])
    p["full2_w"] = _fc_weight(raw["full2_w"])
    p["full2_b"] = _fc_bias(raw["full2_b"])
    p["full3_w"] = _fc_weight(raw["full3_w"])
    p["full3_b"] = _fc_bias(raw["full3_b"])
    return p


def init_params(key):
    def uniform(k, shape, fan_in):
        bound = 1.0 / float(fan_in) ** 0.5
        return jax.random.uniform(k, shape, jnp.float32, -bound, bound)

    ks = jax.random.split(key, 10)
    raw = dict(
        conv1_w=uniform(ks[0], (6, 3, 5, 5), 3 * 25),
        conv1_b=uniform(ks[1], (6,), 3 * 25),
        conv2_w=uniform(ks[2], (16, 6, 5, 5), 6 * 25),
        conv2_b=uniform(ks[3], (16,), 6 * 25),
        full1_w=uniform(ks[4], (120, 16 * 9 * 9), 16 * 81),
        full1_b=uniform(ks[5], (120,), 16 * 81),
        full2_w=uniform(ks[6], (84, 120), 120),
        full2_b=uniform(ks[7], (84,), 120),
        full3_w=uniform(ks[8], (2, 84), 84),
        full3_b=uniform(ks[9], (2,), 84),
    )
    return _pack_params(raw)


# ---------------------------------------------------------------------------
# Forward pass (mirrors LeNet5.forward)
# ---------------------------------------------------------------------------
@jax.jit
def lenet5_forward(params, x):
    """x: (B, 3, 48, 48) NCHW float32 -> (B, 2) float32 logits."""
    B = x.shape[0]
    # NCHW -> NHWC, pad C 3->4, flatten pixels into lanes (w*4 + c), cast bf16,
    # then split into even/odd image rows (contiguous slabs for the conv kernel).
    xh = jnp.transpose(x, (0, 2, 3, 1))
    xh = jnp.pad(xh, ((0, 0), (0, 0), (0, 0), (0, 1)))
    xh = xh.reshape(B, 48, 48 * 4).astype(jnp.bfloat16)
    xe, xo = xh[:, 0::2, :], xh[:, 1::2, :]

    h1 = conv_relu_pool_pallas(xe, xo,
                               params["conv1_w"], params["conv1_b"],
                               params["sel1_e"], params["sel1_o"],
                               kh=5, hp=22, wout=256)          # (B, 22, 256) bf16
    h1e, h1o = h1[:, 0::2, :], h1[:, 1::2, :]

    h2 = conv_relu_pool_pallas(h1e, h1o,
                               params["conv2_w"], params["conv2_b"],
                               params["sel2_e"], params["sel2_o"],
                               kh=5, hp=9, wout=144)           # (B, 9, 144) bf16

    hf = h2.reshape(B, 9 * 144)                                # (B, 1296) bf16
    y = fc_head_pallas(hf,
                       params["full1_w"], params["full1_b"],
                       params["full2_w"], params["full2_b"],
                       params["full3_w"], params["full3_b"])   # (B, 128) f32
    return y[:, :2]


if __name__ == "__main__":
    key = jax.random.PRNGKey(0)
    pkey, xkey = jax.random.split(key)
    params = init_params(pkey)
    # Input spatial size is dictated by full1 (16*9*9 features): (B, 3, 48, 48).
    x = jax.random.normal(xkey, (2, 3, 48, 48), dtype=jnp.float32)
    out = lenet5_forward(params, x)
    jax.block_until_ready(out)
    assert out.shape == (2, 2), out.shape
    print("KERNEL_OK")
</pallas_src>

<mosaic_0001>
module attributes {stable_mosaic.version = 11 : i64} {
  func.func @_conv_relu_pool_kernel(%arg0: i32, %arg1: memref<1x24x192xbf16, #tpu.memory_space<vmem>>, %arg2: memref<1x24x192xbf16, #tpu.memory_space<vmem>>, %arg3: memref<5x192x384xbf16, #tpu.memory_space<vmem>>, %arg4: memref<1x384xf32, #tpu.memory_space<vmem>>, %arg5: memref<384x256xbf16, #tpu.memory_space<vmem>>, %arg6: memref<384x256xbf16, #tpu.memory_space<vmem>>, %arg7: memref<1x22x256xbf16, #tpu.memory_space<vmem>>) attributes {dimension_semantics = [#tpu.dimension_semantics<parallel>], iteration_bounds = array<i64: 2>, scalar_prefetch = 0 : i64, scratch_operands = 0 : i64, tpu.core_type = #tpu.core_type<tc>, window_params = [{transform_indices = @transform_0, window_bounds = array<i64: 1, 24, 192>}, {transform_indices = @transform_1, window_bounds = array<i64: 1, 24, 192>}, {pipeline_mode = #tpu.pipeline_mode<synchronous>, transform_indices = @transform_2, window_bounds = array<i64: 5, 192, 384>}, {pipeline_mode = #tpu.pipeline_mode<synchronous>, transform_indices = @transform_3, window_bounds = array<i64: 1, 384>}, {pipeline_mode = #tpu.pipeline_mode<synchronous>, transform_indices = @transform_4, window_bounds = array<i64: 384, 256>}, {pipeline_mode = #tpu.pipeline_mode<synchronous>, transform_indices = @transform_5, window_bounds = array<i64: 384, 256>}, {transform_indices = @transform_6, window_bounds = array<i64: 1, 22, 256>}]} {
    %cst = arith.constant 0.000000e+00 : f32
    %0 = vector.broadcast %cst : f32 to vector<22x384xf32>
    %cst_0 = arith.constant 0.000000e+00 : f32
    %1 = vector.broadcast %cst_0 : f32 to vector<22x384xf32>
    %c0 = arith.constant 0 : index
    %c0_1 = arith.constant 0 : index
    %c0_2 = arith.constant 0 : index
    %2 = vector.load %arg3[%c0, %c0_1, %c0_2] : memref<5x192x384xbf16, #tpu.memory_space<vmem>>, vector<1x192x384xbf16>
    %3 = vector.shape_cast %2 : vector<1x192x384xbf16> to vector<192x384xbf16>
    %c0_3 = arith.constant 0 : index
    %c0_4 = arith.constant 0 : index
    %c0_5 = arith.constant 0 : index
    %4 = vector.load %arg1[%c0_3, %c0_4, %c0_5] : memref<1x24x192xbf16, #tpu.memory_space<vmem>>, vector<1x22x192xbf16>
    %5 = vector.shape_cast %4 : vector<1x22x192xbf16> to vector<22x192xbf16>
    %c0_6 = arith.constant 0 : index
    %c0_7 = arith.constant 0 : index
    %c0_8 = arith.constant 0 : index
    %6 = vector.load %arg2[%c0_6, %c0_7, %c0_8] : memref<1x24x192xbf16, #tpu.memory_space<vmem>>, vector<1x22x192xbf16>
    %7 = vector.shape_cast %6 : vector<1x22x192xbf16> to vector<22x192xbf16>
    %cst_9 = arith.constant dense<0.000000e+00> : vector<22x384xf32>
    %8 = tpu.matmul %5, %3, %cst_9 {dimension_numbers = #tpu.dot_dimension_numbers<[1], [0], [0], [1], [0, 0, 1, 1], [], []>} : vector<22x192xbf16>, vector<192x384xbf16>, vector<22x384xf32> -> vector<22x384xf32>
    %9 = arith.addf %0, %8 : vector<22x384xf32>
    %cst_10 = arith.constant dense<0.000000e+00> : vector<22x384xf32>
    %10 = tpu.matmul %7, %3, %cst_10 {dimension_numbers = #tpu.dot_dimension_numbers<[1], [0], [0], [1], [0, 0, 1, 1], [], []>} : vector<22x192xbf16>, vector<192x384xbf16>, vector<22x384xf32> -> vector<22x384xf32>
    %11 = arith.addf %1, %10 : vector<22x384xf32>
    %c1 = arith.constant 1 : index
    %c0_11 = arith.constant 0 : index
    %c0_12 = arith.constant 0 : index
    %12 = vector.load %arg3[%c1, %c0_11, %c0_12] : memref<5x192x384xbf16, #tpu.memory_space<vmem>>, vector<1x192x384xbf16>
    %13 = vector.shape_cast %12 : vector<1x192x384xbf16> to vector<192x384xbf16>
    %c0_13 = arith.constant 0 : index
    %c0_14 = arith.constant 0 : index
    %c0_15 = arith.constant 0 : index
    %14 = vector.load %arg2[%c0_13, %c0_14, %c0_15] : memref<1x24x192xbf16, #tpu.memory_space<vmem>>, vector<1x22x192xbf16>
    %15 = vector.shape_cast %14 : vector<1x22x192xbf16> to vector<22x192xbf16>
    %c0_16 = arith.constant 0 : index
    %c1_17 = arith.constant 1 : index
    %c0_18 = arith.constant 0 : index
    %16 = vector.load %arg1[%c0_16, %c1_17, %c0_18] : memref<1x24x192xbf16, #tpu.memory_space<vmem>>, vector<1x22x192xbf16>
    %17 = vector.shape_cast %16 : vector<1x22x192xbf16> to vector<22x192xbf16>
    %cst_19 = arith.constant dense<0.000000e+00> : vector<22x384xf32>
    %18 = tpu.matmul %15, %13, %cst_19 {dimension_numbers = #tpu.dot_dimension_numbers<[1], [0], [0], [1], [0, 0, 1, 1], [], []>} : vector<22x192xbf16>, vector<192x384xbf16>, vector<22x384xf32> -> vector<22x384xf32>
    %19 = arith.addf %9, %18 : vector<22x384xf32>
    %cst_20 = arith.constant dense<0.000000e+00> : vector<22x384xf32>
    %20 = tpu.matmul %17, %13, %cst_20 {dimension_numbers = #tpu.dot_dimension_numbers<[1], [0], [0], [1], [0, 0, 1, 1], [], []>} : vector<22x192xbf16>, vector<192x384xbf16>, vector<22x384xf32> -> vector<22x384xf32>
    %21 = arith.addf %11, %20 : vector<22x384xf32>
    %c2 = arith.constant 2 : index
    %c0_21 = arith.constant 0 : index
    %c0_22 = arith.constant 0 : index
    %22 = vector.load %arg3[%c2, %c0_21, %c0_22] : memref<5x192x384xbf16, #tpu.memory_space<vmem>>, vector<1x192x384xbf16>
    %23 = vector.shape_cast %22 : vector<1x192x384xbf16> to vector<192x384xbf16>
    %c0_23 = arith.constant 0 : index
    %c1_24 = arith.constant 1 : index
    %c0_25 = arith.constant 0 : index
    %24 = vector.load %arg1[%c0_23, %c1_24, %c0_25] : memref<1x24x192xbf16, #tpu.memory_space<vmem>>, vector<1x22x192xbf16>
    %25 = vector.shape_cast %24 : vector<1x22x192xbf16> to vector<22x192xbf16>
    %c0_26 = arith.constant 0 : index
    %c1_27 = arith.constant 1 : index
    %c0_28 = arith.constant 0 : index
    %26 = vector.load %arg2[%c0_26, %c1_27, %c0_28] : memref<1x24x192xbf16, #tpu.memory_space<vmem>>, vector<1x22x192xbf16>
    %27 = vector.shape_cast %26 : vector<1x22x192xbf16> to vector<22x192xbf16>
    %cst_29 = arith.constant dense<0.000000e+00> : vector<22x384xf32>
    %28 = tpu.matmul %25, %23, %cst_29 {dimension_numbers = #tpu.dot_dimension_numbers<[1], [0], [0], [1], [0, 0, 1, 1], [], []>} : vector<22x192xbf16>, vector<192x384xbf16>, vector<22x384xf32> -> vector<22x384xf32>
    %29 = arith.addf %19, %28 : vector<22x384xf32>
    %cst_30 = arith.constant dense<0.000000e+00> : vector<22x384xf32>
    %30 = tpu.matmul %27, %23, %cst_30 {dimension_numbers = #tpu.dot_dimension_numbers<[1], [0], [0], [1], [0, 0, 1, 1], [], []>} : vector<22x192xbf16>, vector<192x384xbf16>, vector<22x384xf32> -> vector<22x384xf32>
    %31 = arith.addf %21, %30 : vector<22x384xf32>
    %c3 = arith.constant 3 : index
    %c0_31 = arith.constant 0 : index
    %c0_32 = arith.constant 0 : index
    %32 = vector.load %arg3[%c3, %c0_31, %c0_32] : memref<5x192x384xbf16, #tpu.memory_space<vmem>>, vector<1x192x384xbf16>
    %33 = vector.shape_cast %32 : vector<1x192x384xbf16> to vector<192x384xbf16>
    %c0_33 = arith.constant 0 : index
    %c1_34 = arith.constant 1 : index
    %c0_35 = arith.constant 0 : index
    %34 = vector.load %arg2[%c0_33, %c1_34, %c0_35] : memref<1x24x192xbf16, #tpu.memory_space<vmem>>, vector<1x22x192xbf16>
    %35 = vector.shape_cast %34 : vector<1x22x192xbf16> to vector<22x192xbf16>
    %c0_36 = arith.constant 0 : index
    %c2_37 = arith.constant 2 : index
    %c0_38 = arith.constant 0 : index
    %36 = vector.load %arg1[%c0_36, %c2_37, %c0_38] : memref<1x24x192xbf16, #tpu.memory_space<vmem>>, vector<1x22x192xbf16>
    %37 = vector.shape_cast %36 : vector<1x22x192xbf16> to vector<22x192xbf16>
    %cst_39 = arith.constant dense<0.000000e+00> : vector<22x384xf32>
    %38 = tpu.matmul %35, %33, %cst_39 {dimension_numbers = #tpu.dot_dimension_numbers<[1], [0], [0], [1], [0, 0, 1, 1], [], []>} : vector<22x192xbf16>, vector<192x384xbf16>, vector<22x384xf32> -> vector<22x384xf32>
    %39 = arith.addf %29, %38 : vector<22x384xf32>
    %cst_40 = arith.constant dense<0.000000e+00> : vector<22x384xf32>
    %40 = tpu.matmul %37, %33, %cst_40 {dimension_numbers = #tpu.dot_dimension_numbers<[1], [0], [0], [1], [0, 0, 1, 1], [], []>} : vector<22x192xbf16>, vector<192x384xbf16>, vector<22x384xf32> -> vector<22x384xf32>
    %41 = arith.addf %31, %40 : vector<22x384xf32>
    %c4 = arith.constant 4 : index
    %c0_41 = arith.constant 0 : index
    %c0_42 = arith.constant 0 : index
    %42 = vector.load %arg3[%c4, %c0_41, %c0_42] : memref<5x192x384xbf16, #tpu.memory_space<vmem>>, vector<1x192x384xbf16>
    %43 = vector.shape_cast %42 : vector<1x192x384xbf16> to vector<192x384xbf16>
    %c0_43 = arith.constant 0 : index
    %c2_44 = arith.constant 2 : index
    %c0_45 = arith.constant 0 : index
    %44 = vector.load %arg1[%c0_43, %c2_44, %c0_45] : memref<1x24x192xbf16, #tpu.memory_space<vmem>>, vector<1x22x192xbf16>
    %45 = vector.shape_cast %44 : vector<1x22x192xbf16> to vector<22x192xbf16>
    %c0_46 = arith.constant 0 : index
    %c2_47 = arith.constant 2 : index
    %c0_48 = arith.constant 0 : index
    %46 = vector.load %arg2[%c0_46, %c2_47, %c0_48] : memref<1x24x192xbf16, #tpu.memory_space<vmem>>, vector<1x22x192xbf16>
    %47 = vector.shape_cast %46 : vector<1x22x192xbf16> to vector<22x192xbf16>
    %cst_49 = arith.constant dense<0.000000e+00> : vector<22x384xf32>
    %48 = tpu.matmul %45, %43, %cst_49 {dimension_numbers = #tpu.dot_dimension_numbers<[1], [0], [0], [1], [0, 0, 1, 1], [], []>} : vector<22x192xbf16>, vector<192x384xbf16>, vector<22x384xf32> -> vector<22x384xf32>
    %49 = arith.addf %39, %48 : vector<22x384xf32>
    %cst_50 = arith.constant dense<0.000000e+00> : vector<22x384xf32>
    %50 = tpu.matmul %47, %43, %cst_50 {dimension_numbers = #tpu.dot_dimension_numbers<[1], [0], [0], [1], [0, 0, 1, 1], [], []>} : vector<22x192xbf16>, vector<192x384xbf16>, vector<22x384xf32> -> vector<22x384xf32>
    %51 = arith.addf %41, %50 : vector<22x384xf32>
    %52 = arith.maximumf %49, %51 : vector<22x384xf32>
    %c0_51 = arith.constant 0 : index
    %c0_52 = arith.constant 0 : index
    %53 = vector.load %arg4[%c0_51, %c0_52] : memref<1x384xf32, #tpu.memory_space<vmem>>, vector<1x384xf32>
    %54 = vector.broadcast %53 : vector<1x384xf32> to vector<22x384xf32>
    %55 = arith.addf %52, %54 : vector<22x384xf32>
    %cst_53 = arith.constant 0.000000e+00 : f32
    %56 = vector.broadcast %cst_53 : f32 to vector<22x384xf32>
    %57 = arith.maximumf %55, %56 : vector<22x384xf32>
    %58 = arith.truncf %57 : vector<22x384xf32> to vector<22x384xbf16>
    %c0_54 = arith.constant 0 : index
    %c0_55 = arith.constant 0 : index
    %59 = vector.load %arg5[%c0_54, %c0_55] : memref<384x256xbf16, #tpu.memory_space<vmem>>, vector<384x256xbf16>
    %cst_56 = arith.constant dense<0.000000e+00> : vector<22x256xf32>
    %60 = tpu.matmul %58, %59, %cst_56 {dimension_numbers = #tpu.dot_dimension_numbers<[1], [0], [0], [1], [0, 0, 1, 1], [], []>} : vector<22x384xbf16>, vector<384x256xbf16>, vector<22x256xf32> -> vector<22x256xf32>
    %c0_57 = arith.constant 0 : index
    %c0_58 = arith.constant 0 : index
    %61 = vector.load %arg6[%c0_57, %c0_58] : memref<384x256xbf16, #tpu.memory_space<vmem>>, vector<384x256xbf16>
    %cst_59 = arith.constant dense<0.000000e+00> : vector<22x256xf32>
    %62 = tpu.matmul %58, %61, %cst_59 {dimension_numbers = #tpu.dot_dimension_numbers<[1], [0], [0], [1], [0, 0, 1, 1], [], []>} : vector<22x384xbf16>, vector<384x256xbf16>, vector<22x256xf32> -> vector<22x256xf32>
    %63 = arith.maximumf %60, %62 : vector<22x256xf32>
    %64 = arith.truncf %63 : vector<22x256xf32> to vector<22x256xbf16>
    %c0_60 = arith.constant 0 : index
    %c0_61 = arith.constant 0 : index
    %c0_62 = arith.constant 0 : index
    %65 = vector.load %arg7[%c0_60, %c0_61, %c0_62] : memref<1x22x256xbf16, #tpu.memory_space<vmem>>, vector<1x22x256xbf16>
    %66 = vector.shape_cast %65 : vector<1x22x256xbf16> to vector<22x256xbf16>
    %67 = vector.shape_cast %64 : vector<22x256xbf16> to vector<1x22x256xbf16>
    tpu.vector_store %arg7[%c0_60, %c0_61, %c0_62], %67 {strides = array<i32>} : memref<1x22x256xbf16, #tpu.memory_space<vmem>>, vector<1x22x256xbf16>,
    return
  }
  func.func @transform_0(%arg0: i32) -> (i32, i32, i32) {
    %c0_i32 = arith.constant 0 : i32
    %c0_i32_0 = arith.constant 0 : i32
    %c0_i32_1 = arith.constant 0 : i32
    return %arg0, %c0_i32, %c0_i32_0 : i32, i32, i32
  }
  func.func @transform_1(%arg0: i32) -> (i32, i32, i32) {
    %c0_i32 = arith.constant 0 : i32
    %c0_i32_0 = arith.constant 0 : i32
    %c0_i32_1 = arith.constant 0 : i32
    return %arg0, %c0_i32, %c0_i32_0 : i32, i32, i32
  }
  func.func @transform_2(%arg0: i32) -> (i32, i32, i32) {
    %c0_i32 = arith.constant 0 : i32
    %c0_i32_0 = arith.constant 0 : i32
    %c0_i32_1 = arith.constant 0 : i32
    %c0_i32_2 = arith.constant 0 : i32
    return %c0_i32, %c0_i32_0, %c0_i32_1 : i32, i32, i32
  }
  func.func @transform_3(%arg0: i32) -> (i32, i32) {
    %c0_i32 = arith.constant 0 : i32
    %c0_i32_0 = arith.constant 0 : i32
    %c0_i32_1 = arith.constant 0 : i32
    return %c0_i32, %c0_i32_0 : i32, i32
  }
  func.func @transform_4(%arg0: i32) -> (i32, i32) {
    %c0_i32 = arith.constant 0 : i32
    %c0_i32_0 = arith.constant 0 : i32
    %c0_i32_1 = arith.constant 0 : i32
    return %c0_i32, %c0_i32_0 : i32, i32
  }
  func.func @transform_5(%arg0: i32) -> (i32, i32) {
    %c0_i32 = arith.constant 0 : i32
    %c0_i32_0 = arith.constant 0 : i32
    %c0_i32_1 = arith.constant 0 : i32
    return %c0_i32, %c0_i32_0 : i32, i32
  }
  func.func @transform_6(%arg0: i32) -> (i32, i32, i32) {
    %c0_i32 = arith.constant 0 : i32
    %c0_i32_0 = arith.constant 0 : i32
    %c0_i32_1 = arith.constant 0 : i32
    return %arg0, %c0_i32, %c0_i32_0 : i32, i32, i32
  }
}

module attributes {stable_mosaic.version = 11 : i64} {
  func.func @_conv_relu_pool_kernel(%arg0: i32, %arg1: memref<1x11x256xbf16, #tpu.memory_space<vmem>>, %arg2: memref<1x11x256xbf16, #tpu.memory_space<vmem>>, %arg3: memref<5x256x384xbf16, #tpu.memory_space<vmem>>, %arg4: memref<1x384xf32, #tpu.memory_space<vmem>>, %arg5: memref<384x144xbf16, #tpu.memory_space<vmem>>, %arg6: memref<384x144xbf16, #tpu.memory_space<vmem>>, %arg7: memref<1x9x144xbf16, #tpu.memory_space<vmem>>) attributes {dimension_semantics = [#tpu.dimension_semantics<parallel>], iteration_bounds = array<i64: 2>, scalar_prefetch = 0 : i64, scratch_operands = 0 : i64, tpu.core_type = #tpu.core_type<tc>, window_params = [{transform_indices = @transform_0, window_bounds = array<i64: 1, 11, 256>}, {transform_indices = @transform_1, window_bounds = array<i64: 1, 11, 256>}, {pipeline_mode = #tpu.pipeline_mode<synchronous>, transform_indices = @transform_2, window_bounds = array<i64: 5, 256, 384>}, {pipeline_mode = #tpu.pipeline_mode<synchronous>, transform_indices = @transform_3, window_bounds = array<i64: 1, 384>}, {pipeline_mode = #tpu.pipeline_mode<synchronous>, transform_indices = @transform_4, window_bounds = array<i64: 384, 144>}, {pipeline_mode = #tpu.pipeline_mode<synchronous>, transform_indices = @transform_5, window_bounds = array<i64: 384, 144>}, {transform_indices = @transform_6, window_bounds = array<i64: 1, 9, 144>}]} {
    %cst = arith.constant 0.000000e+00 : f32
    %0 = vector.broadcast %cst : f32 to vector<9x384xf32>
    %cst_0 = arith.constant 0.000000e+00 : f32
    %1 = vector.broadcast %cst_0 : f32 to vector<9x384xf32>
    %c0 = arith.constant 0 : index
    %c0_1 = arith.constant 0 : index
    %c0_2 = arith.constant 0 : index
    %2 = vector.load %arg3[%c0, %c0_1, %c0_2] : memref<5x256x384xbf16, #tpu.memory_space<vmem>>, vector<1x256x384xbf16>
    %3 = vector.shape_cast %2 : vector<1x256x384xbf16> to vector<256x384xbf16>
    %c0_3 = arith.constant 0 : index
    %c0_4 = arith.constant 0 : index
    %c0_5 = arith.constant 0 : index
    %4 = vector.load %arg1[%c0_3, %c0_4, %c0_5] : memref<1x11x256xbf16, #tpu.memory_space<vmem>>, vector<1x9x256xbf16>
    %5 = vector.shape_cast %4 : vector<1x9x256xbf16> to vector<9x256xbf16>
    %c0_6 = arith.constant 0 : index
    %c0_7 = arith.constant 0 : index
    %c0_8 = arith.constant 0 : index
    %6 = vector.load %arg2[%c0_6, %c0_7, %c0_8] : memref<1x11x256xbf16, #tpu.memory_space<vmem>>, vector<1x9x256xbf16>
    %7 = vector.shape_cast %6 : vector<1x9x256xbf16> to vector<9x256xbf16>
    %cst_9 = arith.constant dense<0.000000e+00> : vector<9x384xf32>
    %8 = tpu.matmul %5, %3, %cst_9 {dimension_numbers = #tpu.dot_dimension_numbers<[1], [0], [0], [1], [0, 0, 1, 1], [], []>} : vector<9x256xbf16>, vector<256x384xbf16>, vector<9x384xf32> -> vector<9x384xf32>
    %9 = arith.addf %0, %8 : vector<9x384xf32>
    %cst_10 = arith.constant dense<0.000000e+00> : vector<9x384xf32>
    %10 = tpu.matmul %7, %3, %cst_10 {dimension_numbers = #tpu.dot_dimension_numbers<[1], [0], [0], [1], [0, 0, 1, 1], [], []>} : vector<9x256xbf16>, vector<256x384xbf16>, vector<9x384xf32> -> vector<9x384xf32>
    %11 = arith.addf %1, %10 : vector<9x384xf32>
    %c1 = arith.constant 1 : index
    %c0_11 = arith.constant 0 : index
    %c0_12 = arith.constant 0 : index
    %12 = vector.load %arg3[%c1, %c0_11, %c0_12] : memref<5x256x384xbf16, #tpu.memory_space<vmem>>, vector<1x256x384xbf16>
    %13 = vector.shape_cast %12 : vector<1x256x384xbf16> to vector<256x384xbf16>
    %c0_13 = arith.constant 0 : index
    %c0_14 = arith.constant 0 : index
    %c0_15 = arith.constant 0 : index
    %14 = vector.load %arg2[%c0_13, %c0_14, %c0_15] : memref<1x11x256xbf16, #tpu.memory_space<vmem>>, vector<1x9x256xbf16>
    %15 = vector.shape_cast %14 : vector<1x9x256xbf16> to vector<9x256xbf16>
    %c0_16 = arith.constant 0 : index
    %c1_17 = arith.constant 1 : index
    %c0_18 = arith.constant 0 : index
    %16 = vector.load %arg1[%c0_16, %c1_17, %c0_18] : memref<1x11x256xbf16, #tpu.memory_space<vmem>>, vector<1x9x256xbf16>
    %17 = vector.shape_cast %16 : vector<1x9x256xbf16> to vector<9x256xbf16>
    %cst_19 = arith.constant dense<0.000000e+00> : vector<9x384xf32>
    %18 = tpu.matmul %15, %13, %cst_19 {dimension_numbers = #tpu.dot_dimension_numbers<[1], [0], [0], [1], [0, 0, 1, 1], [], []>} : vector<9x256xbf16>, vector<256x384xbf16>, vector<9x384xf32> -> vector<9x384xf32>
    %19 = arith.addf %9, %18 : vector<9x384xf32>
    %cst_20 = arith.constant dense<0.000000e+00> : vector<9x384xf32>
    %20 = tpu.matmul %17, %13, %cst_20 {dimension_numbers = #tpu.dot_dimension_numbers<[1], [0], [0], [1], [0, 0, 1, 1], [], []>} : vector<9x256xbf16>, vector<256x384xbf16>, vector<9x384xf32> -> vector<9x384xf32>
    %21 = arith.addf %11, %20 : vector<9x384xf32>
    %c2 = arith.constant 2 : index
    %c0_21 = arith.constant 0 : index
    %c0_22 = arith.constant 0 : index
    %22 = vector.load %arg3[%c2, %c0_21, %c0_22] : memref<5x256x384xbf16, #tpu.memory_space<vmem>>, vector<1x256x384xbf16>
    %23 = vector.shape_cast %22 : vector<1x256x384xbf16> to vector<256x384xbf16>
    %c0_23 = arith.constant 0 : index
    %c1_24 = arith.constant 1 : index
    %c0_25 = arith.constant 0 : index
    %24 = vector.load %arg1[%c0_23, %c1_24, %c0_25] : memref<1x11x256xbf16, #tpu.memory_space<vmem>>, vector<1x9x256xbf16>
    %25 = vector.shape_cast %24 : vector<1x9x256xbf16> to vector<9x256xbf16>
    %c0_26 = arith.constant 0 : index
    %c1_27 = arith.constant 1 : index
    %c0_28 = arith.constant 0 : index
    %26 = vector.load %arg2[%c0_26, %c1_27, %c0_28] : memref<1x11x256xbf16, #tpu.memory_space<vmem>>, vector<1x9x256xbf16>
    %27 = vector.shape_cast %26 : vector<1x9x256xbf16> to vector<9x256xbf16>
    %cst_29 = arith.constant dense<0.000000e+00> : vector<9x384xf32>
    %28 = tpu.matmul %25, %23, %cst_29 {dimension_numbers = #tpu.dot_dimension_numbers<[1], [0], [0], [1], [0, 0, 1, 1], [], []>} : vector<9x256xbf16>, vector<256x384xbf16>, vector<9x384xf32> -> vector<9x384xf32>
    %29 = arith.addf %19, %28 : vector<9x384xf32>
    %cst_30 = arith.constant dense<0.000000e+00> : vector<9x384xf32>
    %30 = tpu.matmul %27, %23, %cst_30 {dimension_numbers = #tpu.dot_dimension_numbers<[1], [0], [0], [1], [0, 0, 1, 1], [], []>} : vector<9x256xbf16>, vector<256x384xbf16>, vector<9x384xf32> -> vector<9x384xf32>
    %31 = arith.addf %21, %30 : vector<9x384xf32>
    %c3 = arith.constant 3 : index
    %c0_31 = arith.constant 0 : index
    %c0_32 = arith.constant 0 : index
    %32 = vector.load %arg3[%c3, %c0_31, %c0_32] : memref<5x256x384xbf16, #tpu.memory_space<vmem>>, vector<1x256x384xbf16>
    %33 = vector.shape_cast %32 : vector<1x256x384xbf16> to vector<256x384xbf16>
    %c0_33 = arith.constant 0 : index
    %c1_34 = arith.constant 1 : index
    %c0_35 = arith.constant 0 : index
    %34 = vector.load %arg2[%c0_33, %c1_34, %c0_35] : memref<1x11x256xbf16, #tpu.memory_space<vmem>>, vector<1x9x256xbf16>
    %35 = vector.shape_cast %34 : vector<1x9x256xbf16> to vector<9x256xbf16>
    %c0_36 = arith.constant 0 : index
    %c2_37 = arith.constant 2 : index
    %c0_38 = arith.constant 0 : index
    %36 = vector.load %arg1[%c0_36, %c2_37, %c0_38] : memref<1x11x256xbf16, #tpu.memory_space<vmem>>, vector<1x9x256xbf16>
    %37 = vector.shape_cast %36 : vector<1x9x256xbf16> to vector<9x256xbf16>
    %cst_39 = arith.constant dense<0.000000e+00> : vector<9x384xf32>
    %38 = tpu.matmul %35, %33, %cst_39 {dimension_numbers = #tpu.dot_dimension_numbers<[1], [0], [0], [1], [0, 0, 1, 1], [], []>} : vector<9x256xbf16>, vector<256x384xbf16>, vector<9x384xf32> -> vector<9x384xf32>
    %39 = arith.addf %29, %38 : vector<9x384xf32>
    %cst_40 = arith.constant dense<0.000000e+00> : vector<9x384xf32>
    %40 = tpu.matmul %37, %33, %cst_40 {dimension_numbers = #tpu.dot_dimension_numbers<[1], [0], [0], [1], [0, 0, 1, 1], [], []>} : vector<9x256xbf16>, vector<256x384xbf16>, vector<9x384xf32> -> vector<9x384xf32>
    %41 = arith.addf %31, %40 : vector<9x384xf32>
    %c4 = arith.constant 4 : index
    %c0_41 = arith.constant 0 : index
    %c0_42 = arith.constant 0 : index
    %42 = vector.load %arg3[%c4, %c0_41, %c0_42] : memref<5x256x384xbf16, #tpu.memory_space<vmem>>, vector<1x256x384xbf16>
    %43 = vector.shape_cast %42 : vector<1x256x384xbf16> to vector<256x384xbf16>
    %c0_43 = arith.constant 0 : index
    %c2_44 = arith.constant 2 : index
    %c0_45 = arith.constant 0 : index
    %44 = vector.load %arg1[%c0_43, %c2_44, %c0_45] : memref<1x11x256xbf16, #tpu.memory_space<vmem>>, vector<1x9x256xbf16>
    %45 = vector.shape_cast %44 : vector<1x9x256xbf16> to vector<9x256xbf16>
    %c0_46 = arith.constant 0 : index
    %c2_47 = arith.constant 2 : index
    %c0_48 = arith.constant 0 : index
    %46 = vector.load %arg2[%c0_46, %c2_47, %c0_48] : memref<1x11x256xbf16, #tpu.memory_space<vmem>>, vector<1x9x256xbf16>
    %47 = vector.shape_cast %46 : vector<1x9x256xbf16> to vector<9x256xbf16>
    %cst_49 = arith.constant dense<0.000000e+00> : vector<9x384xf32>
    %48 = tpu.matmul %45, %43, %cst_49 {dimension_numbers = #tpu.dot_dimension_numbers<[1], [0], [0], [1], [0, 0, 1, 1], [], []>} : vector<9x256xbf16>, vector<256x384xbf16>, vector<9x384xf32> -> vector<9x384xf32>
    %49 = arith.addf %39, %48 : vector<9x384xf32>
    %cst_50 = arith.constant dense<0.000000e+00> : vector<9x384xf32>
    %50 = tpu.matmul %47, %43, %cst_50 {dimension_numbers = #tpu.dot_dimension_numbers<[1], [0], [0], [1], [0, 0, 1, 1], [], []>} : vector<9x256xbf16>, vector<256x384xbf16>, vector<9x384xf32> -> vector<9x384xf32>
    %51 = arith.addf %41, %50 : vector<9x384xf32>
    %52 = arith.maximumf %49, %51 : vector<9x384xf32>
    %c0_51 = arith.constant 0 : index
    %c0_52 = arith.constant 0 : index
    %53 = vector.load %arg4[%c0_51, %c0_52] : memref<1x384xf32, #tpu.memory_space<vmem>>, vector<1x384xf32>
    %54 = vector.broadcast %53 : vector<1x384xf32> to vector<9x384xf32>
    %55 = arith.addf %52, %54 : vector<9x384xf32>
    %cst_53 = arith.constant 0.000000e+00 : f32
    %56 = vector.broadcast %cst_53 : f32 to vector<9x384xf32>
    %57 = arith.maximumf %55, %56 : vector<9x384xf32>
    %58 = arith.truncf %57 : vector<9x384xf32> to vector<9x384xbf16>
    %c0_54 = arith.constant 0 : index
    %c0_55 = arith.constant 0 : index
    %59 = vector.load %arg5[%c0_54, %c0_55] : memref<384x144xbf16, #tpu.memory_space<vmem>>, vector<384x144xbf16>
    %cst_56 = arith.constant dense<0.000000e+00> : vector<9x144xf32>
    %60 = tpu.matmul %58, %59, %cst_56 {dimension_numbers = #tpu.dot_dimension_numbers<[1], [0], [0], [1], [0, 0, 1, 1], [], []>} : vector<9x384xbf16>, vector<384x144xbf16>, vector<9x144xf32> -> vector<9x144xf32>
    %c0_57 = arith.constant 0 : index
    %c0_58 = arith.constant 0 : index
    %61 = vector.load %arg6[%c0_57, %c0_58] : memref<384x144xbf16, #tpu.memory_space<vmem>>, vector<384x144xbf16>
    %cst_59 = arith.constant dense<0.000000e+00> : vector<9x144xf32>
    %62 = tpu.matmul %58, %61, %cst_59 {dimension_numbers = #tpu.dot_dimension_numbers<[1], [0], [0], [1], [0, 0, 1, 1], [], []>} : vector<9x384xbf16>, vector<384x144xbf16>, vector<9x144xf32> -> vector<9x144xf32>
    %63 = arith.maximumf %60, %62 : vector<9x144xf32>
    %64 = arith.truncf %63 : vector<9x144xf32> to vector<9x144xbf16>
    %c0_60 = arith.constant 0 : index
    %c0_61 = arith.constant 0 : index
    %c0_62 = arith.constant 0 : index
    %65 = vector.load %arg7[%c0_60, %c0_61, %c0_62] : memref<1x9x144xbf16, #tpu.memory_space<vmem>>, vector<1x9x144xbf16>
    %66 = vector.shape_cast %65 : vector<1x9x144xbf16> to vector<9x144xbf16>
    %67 = vector.shape_cast %64 : vector<9x144xbf16> to vector<1x9x144xbf16>
    tpu.vector_store %arg7[%c0_60, %c0_61, %c0_62], %67 {strides = array<i32>} : memref<1x9x144xbf16, #tpu.memory_space<vmem>>, vector<1x9x144xbf16>,
    return
  }
  func.func @transform_0(%arg0: i32) -> (i32, i32, i32) {
    %c0_i32 = arith.constant 0 : i32
    %c0_i32_0 = arith.constant 0 : i32
    %c0_i32_1 = arith.constant 0 : i32
    return %arg0, %c0_i32, %c0_i32_0 : i32, i32, i32
  }
  func.func @transform_1(%arg0: i32) -> (i32, i32, i32) {
    %c0_i32 = arith.constant 0 : i32
    %c0_i32_0 = arith.constant 0 : i32
    %c0_i32_1 = arith.constant 0 : i32
    return %arg0, %c0_i32, %c0_i32_0 : i32, i32, i32
  }
  func.func @transform_2(%arg0: i32) -> (i32, i32, i32) {
    %c0_i32 = arith.constant 0 : i32
    %c0_i32_0 = arith.constant 0 : i32
    %c0_i32_1 = arith.constant 0 : i32
    %c0_i32_2 = arith.constant 0 : i32
    return %c0_i32, %c0_i32_0, %c0_i32_1 : i32, i32, i32
  }
  func.func @transform_3(%arg0: i32) -> (i32, i32) {
    %c0_i32 = arith.constant 0 : i32
    %c0_i32_0 = arith.constant 0 : i32
    %c0_i32_1 = arith.constant 0 : i32
    return %c0_i32, %c0_i32_0 : i32, i32
  }
  func.func @transform_4(%arg0: i32) -> (i32, i32) {
    %c0_i32 = arith.constant 0 : i32
    %c0_i32_0 = arith.constant 0 : i32
    %c0_i32_1 = arith.constant 0 : i32
    return %c0_i32, %c0_i32_0 : i32, i32
  }
  func.func @transform_5(%arg0: i32) -> (i32, i32) {
    %c0_i32 = arith.constant 0 : i32
    %c0_i32_0 = arith.constant 0 : i32
    %c0_i32_1 = arith.constant 0 : i32
    return %c0_i32, %c0_i32_0 : i32, i32
  }
  func.func @transform_6(%arg0: i32) -> (i32, i32, i32) {
    %c0_i32 = arith.constant 0 : i32
    %c0_i32_0 = arith.constant 0 : i32
    %c0_i32_1 = arith.constant 0 : i32
    return %arg0, %c0_i32, %c0_i32_0 : i32, i32, i32
  }
}

module attributes {stable_mosaic.version = 11 : i64} {
  func.func @_fc_fused_kernel(%arg0: i32, %arg1: memref<2x1296xbf16, #tpu.memory_space<vmem>>, %arg2: memref<1296x128xbf16, #tpu.memory_space<vmem>>, %arg3: memref<1x128xf32, #tpu.memory_space<vmem>>, %arg4: memref<128x128xbf16, #tpu.memory_space<vmem>>, %arg5: memref<1x128xf32, #tpu.memory_space<vmem>>, %arg6: memref<128x128xbf16, #tpu.memory_space<vmem>>, %arg7: memref<1x128xf32, #tpu.memory_space<vmem>>, %arg8: memref<2x128xf32, #tpu.memory_space<vmem>>) attributes {dimension_semantics = [#tpu.dimension_semantics<parallel>], iteration_bounds = array<i64: 1>, scalar_prefetch = 0 : i64, scratch_operands = 0 : i64, tpu.core_type = #tpu.core_type<tc>, window_params = [{transform_indices = @transform_0, window_bounds = array<i64: 2, 1296>}, {pipeline_mode = #tpu.pipeline_mode<synchronous>, transform_indices = @transform_1, window_bounds = array<i64: 1296, 128>}, {pipeline_mode = #tpu.pipeline_mode<synchronous>, transform_indices = @transform_2, window_bounds = array<i64: 1, 128>}, {pipeline_mode = #tpu.pipeline_mode<synchronous>, transform_indices = @transform_3, window_bounds = array<i64: 128, 128>}, {pipeline_mode = #tpu.pipeline_mode<synchronous>, transform_indices = @transform_4, window_bounds = array<i64: 1, 128>}, {pipeline_mode = #tpu.pipeline_mode<synchronous>, transform_indices = @transform_5, window_bounds = array<i64: 128, 128>}, {pipeline_mode = #tpu.pipeline_mode<synchronous>, transform_indices = @transform_6, window_bounds = array<i64: 1, 128>}, {transform_indices = @transform_7, window_bounds = array<i64: 2, 128>}]} {
    %c0 = arith.constant 0 : index
    %c0_0 = arith.constant 0 : index
    %0 = vector.load %arg1[%c0, %c0_0] : memref<2x1296xbf16, #tpu.memory_space<vmem>>, vector<2x1296xbf16>
    %c0_1 = arith.constant 0 : index
    %c0_2 = arith.constant 0 : index
    %1 = vector.load %arg2[%c0_1, %c0_2] : memref<1296x128xbf16, #tpu.memory_space<vmem>>, vector<1296x128xbf16>
    %cst = arith.constant dense<0.000000e+00> : vector<2x128xf32>
    %2 = tpu.matmul %0, %1, %cst {dimension_numbers = #tpu.dot_dimension_numbers<[1], [0], [0], [1], [0, 0, 1, 1], [], []>} : vector<2x1296xbf16>, vector<1296x128xbf16>, vector<2x128xf32> -> vector<2x128xf32>
    %c0_3 = arith.constant 0 : index
    %c0_4 = arith.constant 0 : index
    %3 = vector.load %arg3[%c0_3, %c0_4] : memref<1x128xf32, #tpu.memory_space<vmem>>, vector<1x128xf32>
    %4 = vector.broadcast %3 : vector<1x128xf32> to vector<2x128xf32>
    %5 = arith.addf %2, %4 : vector<2x128xf32>
    %cst_5 = arith.constant 0.000000e+00 : f32
    %6 = vector.broadcast %cst_5 : f32 to vector<2x128xf32>
    %7 = arith.maximumf %5, %6 : vector<2x128xf32>
    %8 = arith.truncf %7 : vector<2x128xf32> to vector<2x128xbf16>
    %c0_6 = arith.constant 0 : index
    %c0_7 = arith.constant 0 : index
    %9 = vector.load %arg4[%c0_6, %c0_7] : memref<128x128xbf16, #tpu.memory_space<vmem>>, vector<128x128xbf16>
    %cst_8 = arith.constant dense<0.000000e+00> : vector<2x128xf32>
    %10 = tpu.matmul %8, %9, %cst_8 {dimension_numbers = #tpu.dot_dimension_numbers<[1], [0], [0], [1], [0, 0, 1, 1], [], []>} : vector<2x128xbf16>, vector<128x128xbf16>, vector<2x128xf32> -> vector<2x128xf32>
    %c0_9 = arith.constant 0 : index
    %c0_10 = arith.constant 0 : index
    %11 = vector.load %arg5[%c0_9, %c0_10] : memref<1x128xf32, #tpu.memory_space<vmem>>, vector<1x128xf32>
    %12 = vector.broadcast %11 : vector<1x128xf32> to vector<2x128xf32>
    %13 = arith.addf %10, %12 : vector<2x128xf32>
    %cst_11 = arith.constant 0.000000e+00 : f32
    %14 = vector.broadcast %cst_11 : f32 to vector<2x128xf32>
    %15 = arith.maximumf %13, %14 : vector<2x128xf32>
    %16 = arith.truncf %15 : vector<2x128xf32> to vector<2x128xbf16>
    %c0_12 = arith.constant 0 : index
    %c0_13 = arith.constant 0 : index
    %17 = vector.load %arg6[%c0_12, %c0_13] : memref<128x128xbf16, #tpu.memory_space<vmem>>, vector<128x128xbf16>
    %cst_14 = arith.constant dense<0.000000e+00> : vector<2x128xf32>
    %18 = tpu.matmul %16, %17, %cst_14 {dimension_numbers = #tpu.dot_dimension_numbers<[1], [0], [0], [1], [0, 0, 1, 1], [], []>} : vector<2x128xbf16>, vector<128x128xbf16>, vector<2x128xf32> -> vector<2x128xf32>
    %c0_15 = arith.constant 0 : index
    %c0_16 = arith.constant 0 : index
    %19 = vector.load %arg7[%c0_15, %c0_16] : memref<1x128xf32, #tpu.memory_space<vmem>>, vector<1x128xf32>
    %20 = vector.broadcast %19 : vector<1x128xf32> to vector<2x128xf32>
    %21 = arith.addf %18, %20 : vector<2x128xf32>
    %c0_17 = arith.constant 0 : index
    %c0_18 = arith.constant 0 : index
    %22 = vector.load %arg8[%c0_17, %c0_18] : memref<2x128xf32, #tpu.memory_space<vmem>>, vector<2x128xf32>
    tpu.vector_store %arg8[%c0_17, %c0_18], %21 {strides = array<i32>} : memref<2x128xf32, #tpu.memory_space<vmem>>, vector<2x128xf32>,
    return
  }
  func.func @transform_0(%arg0: i32) -> (i32, i32) {
    %c0_i32 = arith.constant 0 : i32
    %c0_i32_0 = arith.constant 0 : i32
    return %arg0, %c0_i32 : i32, i32
  }
  func.func @transform_1(%arg0: i32) -> (i32, i32) {
    %c0_i32 = arith.constant 0 : i32
    %c0_i32_0 = arith.constant 0 : i32
    %c0_i32_1 = arith.constant 0 : i32
    return %c0_i32, %c0_i32_0 : i32, i32
  }
  func.func @transform_2(%arg0: i32) -> (i32, i32) {
    %c0_i32 = arith.constant 0 : i32
    %c0_i32_0 = arith.constant 0 : i32
    %c0_i32_1 = arith.constant 0 : i32
    return %c0_i32, %c0_i32_0 : i32, i32
  }
  func.func @transform_3(%arg0: i32) -> (i32, i32) {
    %c0_i32 = arith.constant 0 : i32
    %c0_i32_0 = arith.constant 0 : i32
    %c0_i32_1 = arith.constant 0 : i32
    return %c0_i32, %c0_i32_0 : i32, i32
  }
  func.func @transform_4(%arg0: i32) -> (i32, i32) {
    %c0_i32 = arith.constant 0 : i32
    %c0_i32_0 = arith.constant 0 : i32
    %c0_i32_1 = arith.constant 0 : i32
    return %c0_i32, %c0_i32_0 : i32, i32
  }
  func.func @transform_5(%arg0: i32) -> (i32, i32) {
    %c0_i32 = arith.constant 0 : i32
    %c0_i32_0 = arith.constant 0 : i32
    %c0_i32_1 = arith.constant 0 : i32
    return %c0_i32, %c0_i32_0 : i32, i32
  }
  func.func @transform_6(%arg0: i32) -> (i32, i32) {
    %c0_i32 = arith.constant 0 : i32
    %c0_i32_0 = arith.constant 0 : i32
    %c0_i32_1 = arith.constant 0 : i32
    return %c0_i32, %c0_i32_0 : i32, i32
  }
  func.func @transform_7(%arg0: i32) -> (i32, i32) {
    %c0_i32 = arith.constant 0 : i32
    %c0_i32_0 = arith.constant 0 : i32
    return %arg0, %c0_i32 : i32, i32
  }
}

</mosaic_0001>

<bundles_post_ra>
// kernel: lenet5_forward.3
= control target key start
LH: loop header
LB: loop body
LE: loop exit
PB: predicated region body
PF: predicated region fallthrough
CT: control target
= control target key end

     0   :  { %s4764_s21 = smov 0   ;;  %s6702_s0 = inlined_call_operand.vmem [shape: bf16[2,24,192], index: 0, kind: input, shape index: {}]   ;;  %s6703_s1 = inlined_call_operand.vmem [shape: bf16[2,24,192], index: 1, kind: input, shape index: {}]   ;;  %s6704_s2 = inlined_call_operand.vmem [shape: bf16[5,192,384], index: 2, kind: input, shape index: {}]   ;;  %s6705_s3 = inlined_call_operand.vmem [shape: f32[1,384], index: 3, kind: input, shape index: {}]   ;;  %s6706_s4 = inlined_call_operand.vmem [shape: bf16[384,256], index: 4, kind: input, shape index: {}]   ;;  %s6707_s5 = inlined_call_operand.vmem [shape: bf16[384,256], index: 5, kind: input, shape index: {}]   ;;  %s6708_s6 = inlined_call_operand.vmem [shape: bf16[2,22,256], index: 6, kind: output, shape index: {}]  }
   0x1 LB: > { %s3624_s22 = sadd.s32 4294967295, %s4726_s21   ;;  %p3628_p0 = scmp.ge.s32.totalorder %s4726_s21, 1  ;;  %s4726_s21 = sphi %s4764_s21, %s16_s21  }
   0x2   : > { %p222_p1 = scmp.lt.s32.totalorder %s4726_s21, 3 }
   0x4   : > { %p223_p2 = pnand %p3628_p0, %p222_p1 }
   0x6   : > { %226 = sbr.rel (%p223_p2) target bundleno = 976 (0x3d0), region = 44 }
   0xd   : > { %v4775_v0 = vld [vmem:[%s6704_s2 + $0x124] ss:$12 sps:$4 sm:$0xff]   ;;  %v4728_v1 = vmov 0   ;;  %v4781_v2 = vld [vmem:[%s6704_s2 + $0x128] ss:$12 sps:$4 sm:$0xff]   ;;  %p257_p3 = scmp.lt.s32.totalorder %s3624_s22, 1 }
   0xe   : > { %642 = vmatprep.subr.bf16.mxu1 %v4728_v1  ;;  %591 = vmatprep.subr.bf16.mxu0 %v4775_v0  ;;  %v4787_v3 = vld [vmem:[%s6704_s2 + $0x120] ss:$12 sps:$4 sm:$0xff]   ;;  %v4793_v4 = vld [vmem:[%s6704_s2 + $0x13c] ss:$12 sps:$4 sm:$0xff]   ;;  %v4805_v6 = vld [vmem:[%s6704_s2 + $0x138] ss:$12 sps:$4 sm:$0xff]  }
   0xf   : > { %643 = vmatpush1.bf16.msra.mxu1 %v4781_v2  ;;  %592 = vmatpush1.bf16.msra.mxu0 %v4787_v3  ;;  %v4800_v5 = vld [vmem:[%s6704_s2 + $0x140] ss:$12 sps:$4 sm:$0xff]   ;;  %v4817_v8 = vld [vmem:[%s6704_s2 + $0x158] ss:$12 sps:$4 sm:$0xff]   ;;  %v4824_v9 = vld [vmem:[%s6704_s2 + $0x150] ss:$12 sps:$4 sm:$0xff]  }
  0x10   : > { %644 = vmatprep.subr.bf16.mxu1 %v4728_v1  ;;  %593 = vmatprep.subr.bf16.mxu0 %v4793_v4  ;;  %v4811_v7 = vld [vmem:[%s6704_s2 + $0x154] ss:$12 sps:$4 sm:$0xff]   ;;  %v4830_v10 = vld [vmem:[%s6704_s2 + $0x16c] ss:$12 sps:$4 sm:$0xff]   ;;  %v4836_v11 = vld [vmem:[%s6704_s2 + $0x170] ss:$12 sps:$4 sm:$0xff]  }
  0x11   : > { %v4843_v12 = vld [vmem:[%s6704_s2 + $0x168] ss:$12 sps:$4 sm:$0xff]   ;;  %v4851_v13 = vld [vmem:[%s6704_s2 + $0x184] ss:$12 sps:$4 sm:$0xff]   ;;  %v4864_v15 = vld [vmem:[%s6704_s2 + $0x180] ss:$12 sps:$4 sm:$0xff]  }
  0x12   : > { %v4857_v14 = vld [vmem:[%s6704_s2 + $0x188] ss:$12 sps:$4 sm:$0xff]   ;;  %s6785_s22 = smov (!%p257_p3, %s3624_s22), 1  ;;  %v4878_v17 = vld [vmem:[%s6704_s2 + $0x1a0] ss:$12 sps:$4 sm:$0xff]   ;;  %vm584_vm0 = vcmask 523264  }
  0x13   : > { %645 = vmatpush1.bf16.msra.mxu1 %v4800_v5  ;;  %594 = vmatpush1.bf16.msra.mxu0 %v4805_v6  ;;  %v4872_v16 = vld [vmem:[%s6704_s2 + $0x19c] ss:$12 sps:$4 sm:$0xff]   ;;  %v4885_v18 = vld [vmem:[%s6704_s2 + $0x198] ss:$12 sps:$4 sm:$0xff]   ;;  %v4891_v19 = vld [vmem:[%s6704_s2 + $0x1b4] ss:$12 sps:$4 sm:$0xff]  }
  0x14   : > { %646 = vmatprep.subr.bf16.mxu1 %v4728_v1  ;;  %595 = vmatprep.subr.bf16.mxu0 %v4811_v7  ;;  %s4893_s15 = smul.u32 24, %s6785_s22  ;;  %v4899_v20 = vld [vmem:[%s6704_s2 + $0x1b8] ss:$12 sps:$4 sm:$0xff]   ;;  %v4906_v21 = vld [vmem:[%s6704_s2 + $0x1b0] ss:$12 sps:$4 sm:$0xff]   ;;  %vm2098_vm2 = vcmask 1046528  }
  0x15   : > { %v4912_v22 = vld [vmem:[%s6704_s2 + $0x1cc] ss:$12 sps:$4 sm:$0xff]   ;;  %v4924_v23 = vld [vmem:[%s6704_s2 + $0x1d0] ss:$12 sps:$4 sm:$0xff]   ;;  %v4929_v24 = vld [vmem:[%s6704_s2 + $0x1c8] ss:$12 sps:$4 sm:$0xff]  }
  0x16   : > { %s4918_s25 = scalar_lea.vmem %s6703_s1, %s4893_s15  ;;  %v4939_v27 = vld [vmem:[%s6704_s2 + $0x1e4] ss:$12 sps:$4 sm:$0xff]   ;;  %v4947_v29 = vld [vmem:[%s6704_s2 + $0x1e8] ss:$12 sps:$4 sm:$0xff]   ;;  %v4956_v30 = vld [vmem:[%s6704_s2 + $0x1e0] ss:$12 sps:$4 sm:$0xff]   ;;  %s5074_s28 = scalar_lea.vmem %s6702_s0, %s4893_s15 }
  0x17   : > { %647 = vmatpush1.bf16.msra.mxu1 %v4817_v8  ;;  %596 = vmatpush1.bf16.msra.mxu0 %v4824_v9  ;;  %v324_v25 = vld [vmem:[%s4918_s25] sm:$0xff]  ;;  %v325_v26 = vld [vmem:[%s4918_s25 + $0x8] sm:$0xff]  ;;  %v4996_v36 = vld [vmem:[%s6704_s2 + $0x210] ss:$12 sps:$4 sm:$0xff]   ;;  %vm1007_vm1 = vsmask.f32 7424  ;;  %s271_s13 = scalar_lea.vmem %s6708_s6, %s4893_s15 }
  0x18   : > { %648 = vmatprep.subr.bf16.mxu1 %v4728_v1  ;;  %597 = vmatprep.subr.bf16.mxu0 %v4830_v10  ;;  %v4941_v28 = vcombine.high %v324_v25, %v325_v26  ;;  %v4962_v31 = vld [vmem:[%s6704_s2 + $0x1fc] ss:$12 sps:$4 sm:$0xff]   ;;  %v4970_v32 = vld [vmem:[%s6704_s2 + $0x200] ss:$12 sps:$4 sm:$0xff]   ;;  %v4977_v33 = vld [vmem:[%s6704_s2 + $0x1f8] ss:$12 sps:$4 sm:$0xff]   ;;  %v5023_v41 = vcombine.low %v324_v25, %v325_v26 }
  0x19   : > { %v4983_v34 = vld [vmem:[%s6704_s2 + $0x214] ss:$12 sps:$4 sm:$0xff]   ;;  %v4989_v35 = vld [vmem:[%s6704_s2 + $0x218] ss:$12 sps:$4 sm:$0xff]   ;;  %v5008_v38 = vld [vmem:[%s6704_s2 + $0x230] ss:$12 sps:$4 sm:$0xff]  }
  0x1a   : > { %3722 = vmatprep.mubr.msk.bf16.mxu1 %vm584_vm0, %v4941_v28  ;;  %3720 = vmatprep.mubr.msk.bf16.mxu0 %vm584_vm0, %v4941_v28  ;;  %v5002_v37 = vld [vmem:[%s6704_s2 + $0x22c] ss:$12 sps:$4 sm:$0xff]   ;;  %v5015_v39 = vld [vmem:[%s6704_s2 + $0x228] ss:$12 sps:$4 sm:$0xff]   ;;  %v5021_v40 = vld [vmem:[%s6704_s2 + $0x4] ss:$12 sps:$4 sm:$0xff]  }
  0x1b   : > { %649 = vmatpush1.bf16.msra.mxu1 %v4836_v11  ;;  %598 = vmatpush1.bf16.msra.mxu0 %v4843_v12  ;;  %6736 = vst [vmem:[#allocation2_spill] sm:$0xff] %v5023_v41  ;;  %v5029_v42 = vld [vmem:[%s6704_s2 + $0x8] ss:$12 sps:$4 sm:$0xff]   ;;  %v5036_v43 = vld [vmem:[%s6704_s2] ss:$12 sps:$4 sm:$0xff]  }
  0x1c   : > { %650 = vmatprep.subr.bf16.mxu1 %v4728_v1  ;;  %599 = vmatprep.subr.bf16.mxu0 %v4851_v13  ;;  %v5042_v44 = vld [vmem:[%s6704_s2 + $0x1c] ss:$12 sps:$4 sm:$0xff]   ;;  %v5048_v45 = vld [vmem:[%s6704_s2 + $0x18] ss:$12 sps:$4 sm:$0xff]   ;;  %v5055_v46 = vld [vmem:[%s6704_s2 + $0x20] ss:$12 sps:$4 sm:$0xff]  }
  0x1d   : > { %v326_v47 = vld [vmem:[%s4918_s25 + $0x10] sm:$0x77]  ;;  %v5080_v51 = vld [vmem:[%s6704_s2 + $0x38] ss:$12 sps:$4 sm:$0xff]   ;;  %v5103_v55 = vld [vmem:[%s5074_s28 + $0x8] sm:$0xff] }
  0x1e   : > { %v5064_v48 = vld [vmem:[%s6704_s2 + $0x34] ss:$12 sps:$4 sm:$0xff]   ;;  %v5066_v49 = vcombine.high %v326_v47, %v326_v47  ;;  %v5068_v50 = vcombine.low %v326_v47, %v326_v47  ;;  %v5089_v52 = vld [vmem:[%s6704_s2 + $0x30] ss:$12 sps:$4 sm:$0xff]   ;;  %v5095_v53 = vld [vmem:[%s6704_s2 + $0x4c] ss:$12 sps:$4 sm:$0xff]  }
  0x1f   : > { %651 = vmatpush1.bf16.msra.mxu1 %v4857_v14  ;;  %600 = vmatpush1.bf16.msra.mxu0 %v4864_v15  ;;  %v5100_v54 = vld [vmem:[%s5074_s28] sm:$0xff]  ;;  %v5108_v56 = vld [vmem:[%s6704_s2 + $0x50] ss:$12 sps:$4 sm:$0xff]   ;;  %v5122_v58 = vld [vmem:[%s6704_s2 + $0x48] ss:$12 sps:$4 sm:$0xff]  }
  0x20   : > { %652 = vmatprep.subr.bf16.mxu1 %v4728_v1  ;;  %601 = vmatprep.subr.bf16.mxu0 %v4872_v16  ;;  %6737 = vst [vmem:[#allocation3_spill] sm:$0xff] %v5066_v49  ;;  %6738 = vst [vmem:[#allocation4_spill] sm:$0xff] %v5068_v50  ;;  %v5113_v57 = vcombine.high %v5100_v54, %v5103_v55  ;;  %v5128_v59 = vld [vmem:[%s6704_s2 + $0x64] ss:$12 sps:$4 sm:$0xff]   ;;  %v5135_v60 = vld [vmem:[%s6704_s2 + $0x60] ss:$12 sps:$4 sm:$0xff]  }
  0x21   : > { %6739 = vst [vmem:[#allocation5_spill] sm:$0xff] %v5135_v60  ;;  %v5143_v61 = vld [vmem:[%s6704_s2 + $0x68] ss:$12 sps:$4 sm:$0xff]   ;;  %v5156_v63 = vld [vmem:[%s6704_s2 + $0x80] ss:$12 sps:$4 sm:$0xff]  }
  0x22   : > { %v5151_v62 = vld [vmem:[%s6704_s2 + $0x7c] ss:$12 sps:$4 sm:$0xff]   ;;  %6741 = vst [vmem:[#allocation7_spill] sm:$0xff] %v5156_v63  ;;  %v5164_v25 = vld [vmem:[%s6704_s2 + $0x78] ss:$12 sps:$4 sm:$0xff]  }
  0x23   : > { %653 = vmatpush1.bf16.msra.mxu1 %v4878_v17  ;;  %602 = vmatpush1.bf16.msra.mxu0 %v4885_v18  ;;  %6740 = vst [vmem:[#allocation6_spill] sm:$0xff] %v5151_v62  ;;  %6742 = vst [vmem:[#allocation8_spill] sm:$0xff] %v5164_v25  ;;  %v5169_v26 = vld [vmem:[%s6704_s2 + $0x94] ss:$12 sps:$4 sm:$0xff]   ;;  %v5175_v47 = vld [vmem:[%s6704_s2 + $0x98] ss:$12 sps:$4 sm:$0xff]  }
  0x24   : > { %654 = vmatprep.subr.bf16.mxu1 %v4728_v1  ;;  %603 = vmatprep.subr.bf16.mxu0 %v4891_v19  ;;  %6743 = vst [vmem:[#allocation9_spill] sm:$0xff] %v5169_v26  ;;  %6744 = vst [vmem:[#allocation10_spill] sm:$0xff] %v5175_v47 }
  0x27   : > { %655 = vmatpush1.bf16.msra.mxu1 %v4899_v20  ;;  %604 = vmatpush1.bf16.msra.mxu0 %v4906_v21 }
  0x28   : > { %656 = vmatprep.subr.bf16.mxu1 %v4728_v1  ;;  %605 = vmatprep.subr.bf16.mxu0 %v4912_v22 }
  0x2b   : > { %657 = vmatpush1.bf16.msra.mxu1 %v4924_v23  ;;  %606 = vmatpush1.bf16.msra.mxu0 %v4929_v24 }
  0x2c   : > { %658 = vmatprep.subr.bf16.mxu1 %v4728_v1  ;;  %607 = vmatprep.subr.bf16.mxu0 %v4939_v27 }
  0x2f   : > { %659 = vmatpush1.bf16.msra.mxu1 %v4947_v29  ;;  %608 = vmatpush1.bf16.msra.mxu0 %v4956_v30 }
  0x30   : > { %660 = vmatprep.subr.bf16.mxu1 %v4728_v1  ;;  %609 = vmatprep.subr.bf16.mxu0 %v4962_v31 }
  0x33   : > { %661 = vmatpush1.bf16.msra.mxu1 %v4970_v32  ;;  %610 = vmatpush1.bf16.msra.mxu0 %v4977_v33 }
  0x34   : > { %662 = vmatprep.subr.bf16.mxu1 %v4728_v1  ;;  %611 = vmatprep.subr.bf16.mxu0 %v4983_v34 }
  0x37   : > { %663 = vmatpush1.bf16.msra.mxu1 %v4989_v35  ;;  %612 = vmatpush1.bf16.msra.mxu0 %v4996_v36 }
  0x38   : > { %664 = vmatprep.subr.bf16.mxu1 %v4728_v1  ;;  %613 = vmatprep.subr.bf16.mxu0 %v5002_v37 }
  0x3b   : > { %665 = vmatpush1.bf16.msra.mxu1 %v5008_v38  ;;  %614 = vmatpush1.bf16.msra.mxu0 %v5015_v39 }
  0x3c   : > { %954 = vmatprep.subr.bf16.mxu1 %v4728_v1  ;;  %903 = vmatprep.subr.bf16.mxu0 %v5021_v40 }
  0x3e   : > { %675 = vmatmul.mubr.bf16.vlgmr.msra.gmra.mrb[0].mxu1 %v5023_v41  ;;  %624 = vmatmul.mubr.bf16.vlgmr.msra.gmra.mrb[0].mxu0 %v5023_v41  ;;  %v5194_v41 = vld [vmem:[%s6704_s2 + $0xb0] ss:$12 sps:$4 sm:$0xff]  }
  0x3f   : > { %955 = vmatpush1.bf16.msra.mxu1 %v5029_v42  ;;  %904 = vmatpush1.bf16.msra.mxu0 %v5036_v43  ;;  %6747 = vst [vmem:[#allocation13_spill] sm:$0xff] %v5194_v41 }
  0x40   : > { %956 = vmatprep.subr.bf16.mxu1 %v4728_v1  ;;  %905 = vmatprep.subr.bf16.mxu0 %v5042_v44 }
  0x41   : > { %3723 = vmatprep.mubr.msk.bf16.mxu1 %vm584_vm0, %v5066_v49  ;;  %3721 = vmatprep.mubr.msk.bf16.mxu0 %vm584_vm0, %v5066_v49  ;;  %v5188_v49 = vld [vmem:[%s6704_s2 + $0xac] ss:$12 sps:$4 sm:$0xff]  }
  0x42   : > { %6746 = vst [vmem:[#allocation12_spill] sm:$0xff] %v5188_v49 }
  0x43   : > { %957 = vmatpush1.bf16.msra.mxu1 %v5055_v46  ;;  %906 = vmatpush1.bf16.msra.mxu0 %v5048_v45 }
  0x44   : > { %958 = vmatprep.subr.bf16.mxu1 %v4728_v1  ;;  %907 = vmatprep.subr.bf16.mxu0 %v5064_v48 }
  0x46   : > { %683 = vmatmul.mubr.bf16.gmra.mrb[4].mxu1 %v5068_v50  ;;  %634 = vmatmul.mubr.bf16.gmra.mrb[4].mxu0 %v5068_v50  ;;  %v5183_v50 = vld [vmem:[%s6704_s2 + $0x90] ss:$12 sps:$4 sm:$0xff]  }
  0x47   : > { %959 = vmatpush1.bf16.msra.mxu1 %v5080_v51  ;;  %908 = vmatpush1.bf16.msra.mxu0 %v5089_v52  ;;  %6745 = vst [vmem:[#allocation11_spill] sm:$0xff] %v5183_v50 }
  0x48   : > { %960 = vmatprep.subr.bf16.mxu1 %v4728_v1  ;;  %909 = vmatprep.subr.bf16.mxu0 %v5095_v53 }
  0x49   : > { %3766 = vmatprep.mubr.msk.bf16.mxu1 %vm584_vm0, %v5113_v57  ;;  %3764 = vmatprep.mubr.msk.bf16.mxu0 %vm584_vm0, %v5113_v57 }
  0x4b   : > { %961 = vmatpush1.bf16.msra.mxu1 %v5108_v56  ;;  %910 = vmatpush1.bf16.msra.mxu0 %v5122_v58 }
  0x4c   : > { %962 = vmatprep.subr.bf16.mxu1 %v4728_v1  ;;  %911 = vmatprep.subr.bf16.mxu0 %v5128_v59 }
  0x4f   : > { %963 = vmatpush1.bf16.msra.mxu1 %v5143_v61  ;;  %912 = vmatpush1.bf16.msra.mxu0 %v5135_v60 }
  0x50   : > { %964 = vmatprep.subr.bf16.mxu1 %v4728_v1  ;;  %913 = vmatprep.subr.bf16.mxu0 %v5151_v62  ;;  %v5287_v62 = vcombine.low %v5100_v54, %v5103_v55 }
  0x53   : > { %965 = vmatpush1.bf16.msra.mxu1 %v5156_v63  ;;  %914 = vmatpush1.bf16.msra.mxu0 %v5164_v25  ;;  %v5202_v25 = vld [vmem:[%s6704_s2 + $0xa8] ss:$12 sps:$4 sm:$0xff]  }
  0x54   : > { %966 = vmatprep.subr.bf16.mxu1 %v4728_v1  ;;  %915 = vmatprep.subr.bf16.mxu0 %v5169_v26  ;;  %6748 = vst [vmem:[#allocation14_spill] sm:$0xff] %v5202_v25  ;;  %v5207_v26 = vld [vmem:[%s6704_s2 + $0xc4] ss:$12 sps:$4 sm:$0xff]   ;;  %v5281_v63 = vld [vmem:[%s6704_s2 + $0x108] ss:$12 sps:$4 sm:$0xff]  }
  0x55   : > { %6749 = vst [vmem:[#allocation15_spill] sm:$0xff] %v5207_v26  ;;  %6759 = vst [vmem:[#allocation25_spill] sm:$0xff] %v5281_v63 }
  0x57   : > { %967 = vmatpush1.bf16.msra.mxu1 %v5175_v47  ;;  %916 = vmatpush1.bf16.msra.mxu0 %v5183_v50  ;;  %v5213_v47 = vld [vmem:[%s6704_s2 + $0xc8] ss:$12 sps:$4 sm:$0xff]   ;;  %v5221_v50 = vld [vmem:[%s6704_s2 + $0xc0] ss:$12 sps:$4 sm:$0xff]  }
  0x58   : > { %968 = vmatprep.subr.bf16.mxu1 %v4728_v1  ;;  %917 = vmatprep.subr.bf16.mxu0 %v5188_v49  ;;  %6750 = vst [vmem:[#allocation16_spill] sm:$0xff] %v5213_v47  ;;  %6751 = vst [vmem:[#allocation17_spill] sm:$0xff] %v5221_v50  ;;  %v5226_v49 = vld [vmem:[%s6704_s2 + $0xdc] ss:$12 sps:$4 sm:$0xff]  }
  0x59   : > { %6752 = vst [vmem:[#allocation18_spill] sm:$0xff] %v5226_v49 }
  0x5b   : > { %969 = vmatpush1.bf16.msra.mxu1 %v5194_v41  ;;  %918 = vmatpush1.bf16.msra.mxu0 %v5202_v25  ;;  %v5232_v41 = vld [vmem:[%s6704_s2 + $0xe0] ss:$12 sps:$4 sm:$0xff]   ;;  %v5240_v25 = vld [vmem:[%s6704_s2 + $0xd8] ss:$12 sps:$4 sm:$0xff]  }
  0x5c   : > { %970 = vmatprep.subr.bf16.mxu1 %v4728_v1  ;;  %919 = vmatprep.subr.bf16.mxu0 %v5207_v26  ;;  %6753 = vst [vmem:[#allocation19_spill] sm:$0xff] %v5232_v41  ;;  %6754 = vst [vmem:[#allocation20_spill] sm:$0xff] %v5240_v25  ;;  %v5245_v26 = vld [vmem:[%s6704_s2 + $0xf4] ss:$12 sps:$4 sm:$0xff]  }
  0x5d   : > { %6755 = vst [vmem:[#allocation21_spill] sm:$0xff] %v5245_v26 }
  0x5f   : > { %971 = vmatpush1.bf16.msra.mxu1 %v5213_v47  ;;  %920 = vmatpush1.bf16.msra.mxu0 %v5221_v50  ;;  %v5251_v47 = vld [vmem:[%s6704_s2 + $0xf8] ss:$12 sps:$4 sm:$0xff]   ;;  %v5259_v50 = vld [vmem:[%s6704_s2 + $0xf0] ss:$12 sps:$4 sm:$0xff]  }
  0x60   : > { %972 = vmatprep.subr.bf16.mxu1 %v4728_v1  ;;  %921 = vmatprep.subr.bf16.mxu0 %v5226_v49  ;;  %6756 = vst [vmem:[#allocation22_spill] sm:$0xff] %v5251_v47  ;;  %6757 = vst [vmem:[#allocation23_spill] sm:$0xff] %v5259_v50  ;;  %v5264_v49 = vld [vmem:[%s6704_s2 + $0x10c] ss:$12 sps:$4 sm:$0xff]  }
  0x61   : > { %6758 = vst [vmem:[#allocation24_spill] sm:$0xff] %v5264_v49 }
  0x63   : > { %973 = vmatpush1.bf16.msra.mxu1 %v5232_v41  ;;  %922 = vmatpush1.bf16.msra.mxu0 %v5240_v25  ;;  %v5270_v41 = vld [vmem:[%s6704_s2 + $0x110] ss:$12 sps:$4 sm:$0xff]  }
  0x64   : > { %974 = vmatprep.subr.bf16.mxu1 %v4728_v1  ;;  %923 = vmatprep.subr.bf16.mxu0 %v5245_v26  ;;  %v5273_v25 = vld [vmem:[%s5074_s28 + $0x10] sm:$0xff] }
  0x65   : > { %v323_v26 = vld [vmem:[%s5074_s28 + $0x10] sm:$0x77]  ;;  %v5291_v60 = vcombine.high %v5273_v25, %v5273_v25 }
  0x67   : > { %975 = vmatpush1.bf16.msra.mxu1 %v5251_v47  ;;  %924 = vmatpush1.bf16.msra.mxu0 %v5259_v50  ;;  %v1022_v50 = vshll.u32 %v5113_v57, 16  ;;  %v1020_v47 = vshrl.u32 %v5113_v57, 16  ;;  %v1027_v55 = vshll.u32 %v5291_v60, 16 }
  0x68   : > { %976 = vmatprep.subr.bf16.mxu1 %v4728_v1  ;;  %925 = vmatprep.subr.bf16.mxu0 %v5264_v49  ;;  %v3727_v49 = vcombine.high %v323_v26, %v323_v26 }
  0x69   : > { %v1024_v54 = vrot.slane %v1022_v50, 1  ;;  %v5491_v50 = vld [vmem:[%s6704_s2 + $0x270] ss:$12 sps:$4 sm:$0xff]  }
  0x6b   : > { %977 = vmatpush1.bf16.msra.mxu1 %v5270_v41  ;;  %926 = vmatpush1.bf16.msra.mxu0 %v5281_v63  ;;  %v1025_v57 = vor.u32 %v1024_v54, %v1020_v47  ;;  %v1029_v63 = vrot.slane %v1027_v55, 1  ;;  %v5566_v47 = vld [vmem:[%s6704_s2 + $0x2d8] ss:$12 sps:$4 sm:$0xff]   ;;  %v5573_v54 = vld [vmem:[%s6704_s2 + $0x2d0] ss:$12 sps:$4 sm:$0xff]  }
  0x6c   : > { %1096 = vmatprep.subr.bf16.mxu1 %v4728_v1  ;;  %1045 = vmatprep.subr.bf16.mxu0 %v4775_v0  ;;  %v3726_v0 = vcombine.low %v323_v26, %v323_v26  ;;  %v5560_v26 = vld [vmem:[%s6704_s2 + $0x2d4] ss:$12 sps:$4 sm:$0xff]   ;;  %v5579_v55 = vld [vmem:[%s6704_s2 + $0x2ec] ss:$12 sps:$4 sm:$0xff]  }
  0x6e   : > { %987 = vmatmul.mubr.bf16.vlgmr.msra.gmra.mrb[0].mxu1 %v5287_v62  ;;  %936 = vmatmul.mubr.bf16.vlgmr.msra.gmra.mrb[0].mxu0 %v5287_v62 }
  0x6f   : > { %1097 = vmatpush1.bf16.msra.mxu1 %v4781_v2  ;;  %1046 = vmatpush1.bf16.msra.mxu0 %v4787_v3  ;;  %v5313_v2 = vsel %vm1007_vm1, %v1025_v57, %v1029_v63  ;;  %v5346_v3 = vcombine.low %v5273_v25, %v5273_v25  ;;  %v5554_v25 = vld [vmem:[%s6704_s2 + $0x2b8] ss:$12 sps:$4 sm:$0xff]   ;;  %v5592_v57 = vld [vmem:[%s6704_s2 + $0x2e8] ss:$12 sps:$4 sm:$0xff]  }
  0x70   : > { %1098 = vmatprep.subr.bf16.mxu1 %v4728_v1  ;;  %1047 = vmatprep.subr.bf16.mxu0 %v4793_v4  ;;  %v1011_v4 = vshll.u32 %v5287_v62, 16 }
  0x71   : > { %3767 = vmatprep.mubr.msk.bf16.mxu1 %vm584_vm0, %v3727_v49  ;;  %3765 = vmatprep.mubr.msk.bf16.mxu0 %vm584_vm0, %v3727_v49  ;;  %v5484_v49 = vld [vmem:[%s6704_s2 + $0x278] ss:$12 sps:$4 sm:$0xff]  }
  0x73   : > { %1099 = vmatpush1.bf16.msra.mxu1 %v4800_v5  ;;  %1048 = vmatpush1.bf16.msra.mxu0 %v4805_v6  ;;  %v1009_v5 = vshrl.u32 %v5287_v62, 16  ;;  %v1013_v6 = vrot.slane %v1011_v4, 1  ;;  %v5541_v62 = vld [vmem:[%s6704_s2 + $0x2bc] ss:$12 sps:$4 sm:$0xff]  }
  0x74   : > { %1100 = vmatprep.subr.bf16.mxu1 %v4728_v1  ;;  %1049 = vmatprep.subr.bf16.mxu0 %v4811_v7  ;;  %v1016_v7 = vshll.u32 %v5346_v3, 16  ;;  %v5604_v4 = vld [vmem:[%s6704_s2 + $0x308] ss:$12 sps:$4 sm:$0xff]  }
  0x76   : > { %995 = vmatmul.mubr.bf16.gmra.mrb[4].mxu1 %v3726_v0  ;;  %946 = vmatmul.mubr.bf16.gmra.mrb[4].mxu0 %v3726_v0  ;;  %v5585_v0 = vld [vmem:[%s6704_s2 + $0x2f0] ss:$12 sps:$4 sm:$0xff]  }
  0x77   : > { %1101 = vmatpush1.bf16.msra.mxu1 %v4817_v8  ;;  %1050 = vmatpush1.bf16.msra.mxu0 %v4824_v9  ;;  %v1014_v8 = vor.u32 %v1013_v6, %v1009_v5  ;;  %v1018_v9 = vrot.slane %v1016_v7, 1  ;;  %v5611_v5 = vld [vmem:[%s6704_s2 + $0x300] ss:$12 sps:$4 sm:$0xff]   ;;  %v5617_v6 = vld [vmem:[%s6704_s2 + $0x31c] ss:$12 sps:$4 sm:$0xff]  }
  0x78   : > { %1102 = vmatprep.subr.bf16.mxu1 %v4728_v1  ;;  %1051 = vmatprep.subr.bf16.mxu0 %v4830_v10  ;;  %v1034_v10 = vshrl.u32 %v5291_v60, 16  ;;  %v5623_v7 = vld [vmem:[%s6704_s2 + $0x320] ss:$12 sps:$4 sm:$0xff]  }
  0x79   : > { %3772 = vmatprep.mubr.msk.bf16.mxu1 %vm584_vm0, %v5313_v2  ;;  %3770 = vmatprep.mubr.msk.bf16.mxu0 %vm584_vm0, %v5313_v2 }
  0x7b   : > { %1103 = vmatpush1.bf16.msra.mxu1 %v4836_v11  ;;  %1052 = vmatpush1.bf16.msra.mxu0 %v4843_v12  ;;  %v5365_v11 = vsel %vm1007_vm1, %v1014_v8, %v1018_v9  ;;  %v5370_v12 = vor.u32 %v1034_v10, %v1029_v63  ;;  %v5547_v63 = vld [vmem:[%s6704_s2 + $0x2c0] ss:$12 sps:$4 sm:$0xff]   ;;  %v5630_v8 = vld [vmem:[%s6704_s2 + $0x318] ss:$12 sps:$4 sm:$0xff]  }
  0x7c   : > { %1104 = vmatprep.subr.bf16.mxu1 %v4728_v1  ;;  %1053 = vmatprep.subr.bf16.mxu0 %v4851_v13  ;;  %v1031_v13 = vshrl.u32 %v5346_v3, 16  ;;  %v5642_v10 = vld [vmem:[%s6704_s2 + $0x338] ss:$12 sps:$4 sm:$0xff]  }
  0x7f   : > { %1105 = vmatpush1.bf16.msra.mxu1 %v4857_v14  ;;  %1054 = vmatpush1.bf16.msra.mxu0 %v4864_v15  ;;  %v5383_v14 = vor.u32 %v1031_v13, %v1018_v9  ;;  %v6760_v15 = vld [vmem:[#allocation5_spill] sm:$0xff]  ;;  %v5636_v9 = vld [vmem:[%s6704_s2 + $0x334] ss:$12 sps:$4 sm:$0xff]  }
  0x80   : > { %1106 = vmatprep.subr.bf16.mxu1 %v4728_v1  ;;  %1055 = vmatprep.subr.bf16.mxu0 %v4872_v16  ;;  %v6761_v16 = vld [vmem:[#allocation6_spill] sm:$0xff]  ;;  %v5649_v13 = vld [vmem:[%s6704_s2 + $0x330] ss:$12 sps:$4 sm:$0xff]  }
  0x83   : > { %1107 = vmatpush1.bf16.msra.mxu1 %v4878_v17  ;;  %1056 = vmatpush1.bf16.msra.mxu0 %v4885_v18  ;;  %v6762_v17 = vld [vmem:[#allocation7_spill] sm:$0xff]  ;;  %v6763_v18 = vld [vmem:[#allocation8_spill] sm:$0xff] }
  0x84   : > { %1108 = vmatprep.subr.bf16.mxu1 %v4728_v1  ;;  %1057 = vmatprep.subr.bf16.mxu0 %v4891_v19  ;;  %v6764_v19 = vld [vmem:[#allocation9_spill] sm:$0xff] }
  0x87   : > { %1109 = vmatpush1.bf16.msra.mxu1 %v4899_v20  ;;  %1058 = vmatpush1.bf16.msra.mxu0 %v4906_v21  ;;  %v6765_v20 = vld [vmem:[#allocation10_spill] sm:$0xff]  ;;  %v6766_v21 = vld [vmem:[#allocation11_spill] sm:$0xff] }
  0x88   : > { %1110 = vmatprep.subr.bf16.mxu1 %v4728_v1  ;;  %1059 = vmatprep.subr.bf16.mxu0 %v4912_v22  ;;  %v6767_v22 = vld [vmem:[#allocation12_spill] sm:$0xff] }
  0x8b   : > { %1111 = vmatpush1.bf16.msra.mxu1 %v4924_v23  ;;  %1060 = vmatpush1.bf16.msra.mxu0 %v4929_v24  ;;  %v6768_v23 = vld [vmem:[#allocation13_spill] sm:$0xff]  ;;  %v6769_v24 = vld [vmem:[#allocation14_spill] sm:$0xff] }
  0x8c   : > { %1112 = vmatprep.subr.bf16.mxu1 %v4728_v1  ;;  %1061 = vmatprep.subr.bf16.mxu0 %v4939_v27  ;;  %v6770_v27 = vld [vmem:[#allocation15_spill] sm:$0xff] }
  0x8f   : > { %1113 = vmatpush1.bf16.msra.mxu1 %v4947_v29  ;;  %1062 = vmatpush1.bf16.msra.mxu0 %v4956_v30  ;;  %v6771_v29 = vld [vmem:[#allocation16_spill] sm:$0xff]  ;;  %v6772_v30 = vld [vmem:[#allocation17_spill] sm:$0xff] }
  0x90   : > { %1114 = vmatprep.subr.bf16.mxu1 %v4728_v1  ;;  %1063 = vmatprep.subr.bf16.mxu0 %v4962_v31  ;;  %v6773_v31 = vld [vmem:[#allocation18_spill] sm:$0xff] }
  0x93   : > { %1115 = vmatpush1.bf16.msra.mxu1 %v4970_v32  ;;  %1064 = vmatpush1.bf16.msra.mxu0 %v4977_v33  ;;  %v6774_v32 = vld [vmem:[#allocation19_spill] sm:$0xff]  ;;  %v6775_v33 = vld [vmem:[#allocation20_spill] sm:$0xff] }
  0x94   : > { %1116 = vmatprep.subr.bf16.mxu1 %v4728_v1  ;;  %1065 = vmatprep.subr.bf16.mxu0 %v4983_v34  ;;  %v6776_v34 = vld [vmem:[#allocation21_spill] sm:$0xff] }
  0x97   : > { %1117 = vmatpush1.bf16.msra.mxu1 %v4989_v35  ;;  %1066 = vmatpush1.bf16.msra.mxu0 %v4996_v36  ;;  %v6777_v35 = vld [vmem:[#allocation22_spill] sm:$0xff]  ;;  %v6778_v36 = vld [vmem:[#allocation23_spill] sm:$0xff] }
  0x98   : > { %1118 = vmatprep.subr.bf16.mxu1 %v4728_v1  ;;  %1067 = vmatprep.subr.bf16.mxu0 %v5002_v37  ;;  %v6779_v37 = vld [vmem:[#allocation24_spill] sm:$0xff] }
  0x9b   : > { %1119 = vmatpush1.bf16.msra.mxu1 %v5008_v38  ;;  %1068 = vmatpush1.bf16.msra.mxu0 %v5015_v39  ;;  %v5434_v38 = vld [vmem:[%s6704_s2 + $0x244] ss:$12 sps:$4 sm:$0xff]   ;;  %v5440_v39 = vld [vmem:[%s6704_s2 + $0x248] ss:$12 sps:$4 sm:$0xff]  }
  0x9c   : > { %1195 = vmatprep.subr.bf16.mxu1 %v4728_v1  ;;  %1144 = vmatprep.subr.bf16.mxu0 %v5021_v40  ;;  %v6780_v40 = vld [vmem:[#allocation25_spill] sm:$0xff] }
  0x9e   : > { %1129 = vmatmul.mubr.bf16.vlgmr.msra.gmra.mrb[8].mxu1 %v5365_v11  ;;  %1078 = vmatmul.mubr.bf16.vlgmr.msra.gmra.mrb[8].mxu0 %v5365_v11 }
  0x9f   : > { %1196 = vmatpush1.bf16.msra.mxu1 %v5029_v42  ;;  %1145 = vmatpush1.bf16.msra.mxu0 %v5036_v43  ;;  %v5447_v42 = vld [vmem:[%s6704_s2 + $0x240] ss:$12 sps:$4 sm:$0xff]  }
  0xa0   : > { %1197 = vmatprep.subr.bf16.mxu1 %v4728_v1  ;;  %1146 = vmatprep.subr.bf16.mxu0 %v5042_v44  ;;  %v6781_v43 = vld [vmem:[#allocation2_spill] sm:$0xff] }
  0xa1   : > { %3773 = vmatprep.mubr.msk.bf16.mxu1 %vm584_vm0, %v5370_v12  ;;  %3771 = vmatprep.mubr.msk.bf16.mxu0 %vm584_vm0, %v5370_v12  ;;  %v5461_v44 = vld [vmem:[%s6704_s2 + $0x260] ss:$12 sps:$4 sm:$0xff]  }
  0xa3   : > { %1198 = vmatpush1.bf16.msra.mxu1 %v5055_v46  ;;  %1147 = vmatpush1.bf16.msra.mxu0 %v5048_v45  ;;  %v5468_v45 = vld [vmem:[%s6704_s2 + $0x258] ss:$12 sps:$4 sm:$0xff]   ;;  %v5474_v46 = vld [vmem:[%s6704_s2 + $0x274] ss:$12 sps:$4 sm:$0xff]  }
  0xa4   : > { %1199 = vmatprep.subr.bf16.mxu1 %v4728_v1  ;;  %1148 = vmatprep.subr.bf16.mxu0 %v5064_v48  ;;  %v6782_v48 = vld [vmem:[#allocation3_spill] sm:$0xff] }
  0xa6   : > { %1137 = vmatmul.mubr.bf16.gmra.mrb[12].mxu1 %v5383_v14  ;;  %1088 = vmatmul.mubr.bf16.gmra.mrb[12].mxu0 %v5383_v14 }
  0xa7   : > { %1200 = vmatpush1.bf16.msra.mxu1 %v5080_v51  ;;  %1149 = vmatpush1.bf16.msra.mxu0 %v5089_v52  ;;  %v5497_v51 = vld [vmem:[%s6704_s2 + $0x28c] ss:$12 sps:$4 sm:$0xff]   ;;  %v6783_v52 = vld [vmem:[#allocation4_spill] sm:$0xff] }
  0xa8   : > { %1201 = vmatprep.subr.bf16.mxu1 %v4728_v1  ;;  %1150 = vmatprep.subr.bf16.mxu0 %v5095_v53  ;;  %v5504_v53 = vld [vmem:[%s6704_s2 + $0x290] ss:$12 sps:$4 sm:$0xff]  }
  0xa9   : > { %3776 = vmatprep.mubr.msk.bf16.mxu1 %vm584_vm0, %v4941_v28  ;;  %3774 = vmatprep.mubr.msk.bf16.mxu0 %vm584_vm0, %v4941_v28 }
  0xab   : > { %1202 = vmatpush1.bf16.msra.mxu1 %v5108_v56  ;;  %1151 = vmatpush1.bf16.msra.mxu0 %v5122_v58  ;;  %v5512_v56 = vld [vmem:[%s6704_s2 + $0x288] ss:$12 sps:$4 sm:$0xff]   ;;  %v5518_v58 = vld [vmem:[%s6704_s2 + $0x2a4] ss:$12 sps:$4 sm:$0xff]  }
  0xac   : > { %1203 = vmatprep.subr.bf16.mxu1 %v4728_v1  ;;  %1152 = vmatprep.subr.bf16.mxu0 %v5128_v59  ;;  %v5528_v59 = vld [vmem:[%s6704_s2 + $0x2a8] ss:$12 sps:$4 sm:$0xff]  }
  0xaf   : > { %1204 = vmatpush1.bf16.msra.mxu1 %v5143_v61  ;;  %1153 = vmatpush1.bf16.msra.mxu0 %v6760_v15  ;;  %v5535_v61 = vld [vmem:[%s6704_s2 + $0x2a0] ss:$12 sps:$4 sm:$0xff]  }
  0xb0   : > { %1205 = vmatprep.subr.bf16.mxu1 %v4728_v1  ;;  %1154 = vmatprep.subr.bf16.mxu0 %v6761_v16  ;;  %v5655_v15 = vld [vmem:[%s6704_s2 + $0x34c] ss:$12 sps:$4 sm:$0xff]   ;;  %v5661_v16 = vld [vmem:[%s6704_s2 + $0x350] ss:$12 sps:$4 sm:$0xff]  }
  0xb3   : > { %1206 = vmatpush1.bf16.msra.mxu1 %v6762_v17  ;;  %1155 = vmatpush1.bf16.msra.mxu0 %v6763_v18  ;;  %v1292_v17 = vld [vmem:[%s4918_s25 + $0x10] sm:$0xff] }
  0xb4   : > { %1207 = vmatprep.subr.bf16.mxu1 %v4728_v1  ;;  %1156 = vmatprep.subr.bf16.mxu0 %v6764_v19  ;;  %v5669_v18 = vld [vmem:[%s6704_s2 + $0x348] ss:$12 sps:$4 sm:$0xff]   ;;  %v5672_v19 = vcombine.high %v1292_v17, %v1292_v17 }
  0xb7   : > { %1208 = vmatpush1.bf16.msra.mxu1 %v6765_v20  ;;  %1157 = vmatpush1.bf16.msra.mxu0 %v6766_v21  ;;  %v1612_v20 = vshll.u32 %v4941_v28, 16  ;;  %v1610_v21 = vshrl.u32 %v4941_v28, 16 }
  0xb8   : > { %1209 = vmatprep.subr.bf16.mxu1 %v4728_v1  ;;  %1158 = vmatprep.subr.bf16.mxu0 %v6767_v22 }
  0xb9   : > { %v1614_v22 = vrot.slane %v1612_v20, 1 }
  0xbb   : > { %1210 = vmatpush1.bf16.msra.mxu1 %v6768_v23  ;;  %1159 = vmatpush1.bf16.msra.mxu0 %v6769_v24  ;;  %v1617_v23 = vshll.u32 %v5672_v19, 16  ;;  %v1615_v28 = vor.u32 %v1614_v22, %v1610_v21  ;;  %v6065_v22 = vrot.slane %v5346_v3, 1  ;;  %v6083_v3 = vld [vmem:[%s6704_s2 + $0x488] ss:$12 sps:$4 sm:$0xff]  }
  0xbc   : > { %1211 = vmatprep.subr.bf16.mxu1 %v4728_v1  ;;  %1160 = vmatprep.subr.bf16.mxu0 %v6770_v27  ;;  %v1599_v27 = vshrl.u32 %v6781_v43, 16 }
  0xbd   : > { %v5691_v24 = vrot.slane %v1617_v23, 1  ;;  %v6073_v23 = vld [vmem:[%s6704_s2 + $0x484] ss:$12 sps:$4 sm:$0xff]  }
  0xbf   : > { %1212 = vmatpush1.bf16.msra.mxu1 %v6771_v29  ;;  %1161 = vmatpush1.bf16.msra.mxu0 %v6772_v30 }
  0xc0   : > { %1213 = vmatprep.subr.bf16.mxu1 %v4728_v1  ;;  %1162 = vmatprep.subr.bf16.mxu0 %v6773_v31 }
  0xc3   : > { %1214 = vmatpush1.bf16.msra.mxu1 %v6774_v32  ;;  %1163 = vmatpush1.bf16.msra.mxu0 %v6775_v33  ;;  %v5751_v33 = vld [vmem:[%s6704_s2 + $0x364] ss:$12 sps:$4 sm:$0xff]  }
  0xc4   : > { %1215 = vmatprep.subr.bf16.mxu1 %v4728_v1  ;;  %1164 = vmatprep.subr.bf16.mxu0 %v6776_v34  ;;  %v1624_v34 = vshrl.u32 %v5672_v19, 16 }
  0xc7   : > { %1216 = vmatpush1.bf16.msra.mxu1 %v6777_v35  ;;  %1165 = vmatpush1.bf16.msra.mxu0 %v6778_v36  ;;  %v5761_v36 = vld [vmem:[%s6704_s2 + $0x368] ss:$12 sps:$4 sm:$0xff]  }
  0xc8   : > { %1217 = vmatprep.subr.bf16.mxu1 %v4728_v1  ;;  %1166 = vmatprep.subr.bf16.mxu0 %v6779_v37  ;;  %v5768_v37 = vld [vmem:[%s6704_s2 + $0x360] ss:$12 sps:$4 sm:$0xff]  }
  0xcb   : > { %1218 = vmatpush1.bf16.msra.mxu1 %v5270_v41  ;;  %1167 = vmatpush1.bf16.msra.mxu0 %v6780_v40  ;;  %v5453_v41 = vld [vmem:[%s6704_s2 + $0x25c] ss:$12 sps:$4 sm:$0xff]  }
  0xcc   : > { %1536 = vmatprep.subr.bf16.mxu1 %v4728_v1  ;;  %1485 = vmatprep.subr.bf16.mxu0 %v5434_v38 }
  0xce   : > { %1228 = vmatmul.mubr.bf16.vlgmr.msra.gmra.mrb[8].mxu1 %v6781_v43  ;;  %1177 = vmatmul.mubr.bf16.vlgmr.msra.gmra.mrb[8].mxu0 %v6781_v43 }
  0xcf   : > { %1537 = vmatpush1.bf16.msra.mxu1 %v5440_v39  ;;  %1486 = vmatpush1.bf16.msra.mxu0 %v5447_v42 }
  0xd0   : > { %1538 = vmatprep.subr.bf16.mxu1 %v4728_v1  ;;  %1487 = vmatprep.subr.bf16.mxu0 %v5453_v41 }
  0xd1   : > { %3777 = vmatprep.mubr.msk.bf16.mxu1 %vm584_vm0, %v6782_v48  ;;  %3775 = vmatprep.mubr.msk.bf16.mxu0 %vm584_vm0, %v6782_v48  ;;  %v5824_v48 = vld [vmem:[%s6704_s2 + $0x3ac] ss:$12 sps:$4 sm:$0xff]  }
  0xd3   : > { %1539 = vmatpush1.bf16.msra.mxu1 %v5461_v44  ;;  %1488 = vmatpush1.bf16.msra.mxu0 %v5468_v45 }
  0xd4   : > { %1540 = vmatprep.subr.bf16.mxu1 %v4728_v1  ;;  %1489 = vmatprep.subr.bf16.mxu0 %v5474_v46 }
  0xd6   : > { %1236 = vmatmul.mubr.bf16.gmra.mrb[12].mxu1 %v6783_v52  ;;  %1187 = vmatmul.mubr.bf16.gmra.mrb[12].mxu0 %v6783_v52  ;;  %v5855_v52 = vld [vmem:[%s6704_s2 + $0x3c8] ss:$12 sps:$4 sm:$0xff]  }
  0xd7   : > { %1541 = vmatpush1.bf16.msra.mxu1 %v5484_v49  ;;  %1490 = vmatpush1.bf16.msra.mxu0 %v5491_v50 }
  0xd8   : > { %1542 = vmatprep.subr.bf16.mxu1 %v4728_v1  ;;  %1491 = vmatprep.subr.bf16.mxu0 %v5497_v51 }
  0xd9   : > { %3864 = vmatprep.mubr.msk.bf16.mxu1 %vm584_vm0, %v5313_v2  ;;  %3862 = vmatprep.mubr.msk.bf16.mxu0 %vm584_vm0, %v5313_v2  ;;  %v5598_v2 = vld [vmem:[%s6704_s2 + $0x304] ss:$12 sps:$4 sm:$0xff]  }
  0xdb   : > { %1543 = vmatpush1.bf16.msra.mxu1 %v5504_v53  ;;  %1492 = vmatpush1.bf16.msra.mxu0 %v5512_v56 }
  0xdc   : > { %1544 = vmatprep.subr.bf16.mxu1 %v4728_v1  ;;  %1493 = vmatprep.subr.bf16.mxu0 %v5518_v58 }
  0xdf   : > { %1545 = vmatpush1.bf16.msra.mxu1 %v5528_v59  ;;  %1494 = vmatpush1.bf16.msra.mxu0 %v5535_v61 }
  0xe0   : > { %1546 = vmatprep.subr.bf16.mxu1 %v4728_v1  ;;  %1495 = vmatprep.subr.bf16.mxu0 %v5541_v62 }
  0xe3   : > { %1547 = vmatpush1.bf16.msra.mxu1 %v5547_v63  ;;  %1496 = vmatpush1.bf16.msra.mxu0 %v5554_v25 }
  0xe4   : > { %1548 = vmatprep.subr.bf16.mxu1 %v4728_v1  ;;  %1497 = vmatprep.subr.bf16.mxu0 %v5560_v26 }
  0xe7   : > { %1549 = vmatpush1.bf16.msra.mxu1 %v5566_v47  ;;  %1498 = vmatpush1.bf16.msra.mxu0 %v5573_v54 }
  0xe8   : > { %1550 = vmatprep.subr.bf16.mxu1 %v4728_v1  ;;  %1499 = vmatprep.subr.bf16.mxu0 %v5579_v55 }
  0xeb   : > { %1551 = vmatpush1.bf16.msra.mxu1 %v5585_v0  ;;  %1500 = vmatpush1.bf16.msra.mxu0 %v5592_v57 }
  0xec   : > { %1552 = vmatprep.subr.bf16.mxu1 %v4728_v1  ;;  %1501 = vmatprep.subr.bf16.mxu0 %v5598_v2 }
  0xef   : > { %1553 = vmatpush1.bf16.msra.mxu1 %v5604_v4  ;;  %1502 = vmatpush1.bf16.msra.mxu0 %v5611_v5 }
  0xf0   : > { %1554 = vmatprep.subr.bf16.mxu1 %v4728_v1  ;;  %1503 = vmatprep.subr.bf16.mxu0 %v5617_v6 }
  0xf3   : > { %1555 = vmatpush1.bf16.msra.mxu1 %v5623_v7  ;;  %1504 = vmatpush1.bf16.msra.mxu0 %v5630_v8 }
  0xf4   : > { %1556 = vmatprep.subr.bf16.mxu1 %v4728_v1  ;;  %1505 = vmatprep.subr.bf16.mxu0 %v5636_v9 }
  0xf7   : > { %1557 = vmatpush1.bf16.msra.mxu1 %v5642_v10  ;;  %1506 = vmatpush1.bf16.msra.mxu0 %v5649_v13 }
  0xf8   : > { %1558 = vmatprep.subr.bf16.mxu1 %v4728_v1  ;;  %1507 = vmatprep.subr.bf16.mxu0 %v5655_v15 }
  0xfb   : > { %1559 = vmatpush1.bf16.msra.mxu1 %v5661_v16  ;;  %1508 = vmatpush1.bf16.msra.mxu0 %v5669_v18 }
  0xfc   : > { %1686 = vmatprep.subr.bf16.mxu1 %v4728_v1  ;;  %1635 = vmatprep.subr.bf16.mxu0 %v5434_v38  ;;  %v5774_v38 = vld [vmem:[%s6704_s2 + $0x37c] ss:$12 sps:$4 sm:$0xff]  }
  0xfe   : > { %1569 = vmatmul.mubr.bf16.vlgmr.msra.gmra.mrb[0].mxu1 %v5365_v11  ;;  %1518 = vmatmul.mubr.bf16.vlgmr.msra.gmra.mrb[0].mxu0 %v5365_v11  ;;  %v5700_v11 = vsel %vm1007_vm1, %v1615_v28, %v5691_v24 }
  0xff   : > { %1687 = vmatpush1.bf16.msra.mxu1 %v5440_v39  ;;  %1636 = vmatpush1.bf16.msra.mxu0 %v5447_v42  ;;  %v5777_v39 = vor.u32 %v1624_v34, %v5691_v24  ;;  %v5786_v42 = vld [vmem:[%s6704_s2 + $0x380] ss:$12 sps:$4 sm:$0xff]   ;;  %v6155_v34 = vld [vmem:[%s6704_s2 + $0x4c8] ss:$12 sps:$4 sm:$0xff]  }
 0x100   : > { %1688 = vmatprep.subr.bf16.mxu1 %v4728_v1  ;;  %1637 = vmatprep.subr.bf16.mxu0 %v5453_v41  ;;  %v5793_v41 = vld [vmem:[%s6704_s2 + $0x378] ss:$12 sps:$4 sm:$0xff]   ;;  %v6090_v24 = vld [vmem:[%s6704_s2 + $0x480] ss:$12 sps:$4 sm:$0xff]  }
 0x101   : > { %3865 = vmatprep.mubr.msk.bf16.mxu1 %vm584_vm0, %v5370_v12  ;;  %3863 = vmatprep.mubr.msk.bf16.mxu0 %vm584_vm0, %v5370_v12  ;;  %v5732_v12 = vcombine.low %v1292_v17, %v1292_v17 }
 0x103   : > { %1689 = vmatpush1.bf16.msra.mxu1 %v5461_v44  ;;  %1638 = vmatpush1.bf16.msra.mxu0 %v5468_v45  ;;  %v1606_v30 = vshll.u32 %v5732_v12, 16  ;;  %v1621_v40 = vshrl.u32 %v5732_v12, 16  ;;  %v5811_v45 = vld [vmem:[%s6704_s2 + $0x398] ss:$12 sps:$4 sm:$0xff]  }
 0x104   : > { %1690 = vmatprep.subr.bf16.mxu1 %v4728_v1  ;;  %1639 = vmatprep.subr.bf16.mxu0 %v5474_v46  ;;  %v5818_v46 = vld [vmem:[%s6704_s2 + $0x390] ss:$12 sps:$4 sm:$0xff]  }
 0x105   : > { %v1608_v32 = vrot.slane %v1606_v30, 1  ;;  %v6127_v30 = vld [vmem:[%s6704_s2 + $0x4b8] ss:$12 sps:$4 sm:$0xff]  }
 0x106   : > { %1577 = vmatmul.mubr.bf16.gmra.mrb[4].mxu1 %v5383_v14  ;;  %1528 = vmatmul.mubr.bf16.gmra.mrb[4].mxu0 %v5383_v14  ;;  %v1601_v14 = vshll.u32 %v6781_v43, 16  ;;  %v5799_v43 = vld [vmem:[%s6704_s2 + $0x394] ss:$12 sps:$4 sm:$0xff]  }
 0x107   : > { %1691 = vmatpush1.bf16.msra.mxu1 %v5484_v49  ;;  %1640 = vmatpush1.bf16.msra.mxu0 %v5491_v50  ;;  %v5805_v44 = vor.u32 %v1621_v40, %v1608_v32  ;;  %v5831_v49 = vld [vmem:[%s6704_s2 + $0x3b0] ss:$12 sps:$4 sm:$0xff]   ;;  %v5839_v50 = vld [vmem:[%s6704_s2 + $0x3a8] ss:$12 sps:$4 sm:$0xff]   ;;  %v6197_v40 = vld [vmem:[%s6704_s2 + $0x4f8] ss:$12 sps:$4 sm:$0xff]  }
 0x108   : > { %1692 = vmatprep.subr.bf16.mxu1 %v4728_v1  ;;  %1641 = vmatprep.subr.bf16.mxu0 %v5497_v51  ;;  %v1603_v29 = vrot.slane %v1601_v14, 1  ;;  %v5845_v51 = vld [vmem:[%s6704_s2 + $0x3c4] ss:$12 sps:$4 sm:$0xff]   ;;  %v6104_v14 = vld [vmem:[%s6704_s2 + $0x4a0] ss:$12 sps:$4 sm:$0xff]  }
 0x109   : > { %3870 = vmatprep.mubr.msk.bf16.mxu1 %vm584_vm0, %v5700_v11  ;;  %3868 = vmatprep.mubr.msk.bf16.mxu0 %vm584_vm0, %v5700_v11 }
 0x10a   : > { %v1604_v31 = vor.u32 %v1603_v29, %v1599_v27  ;;  %v6111_v27 = vld [vmem:[%s6704_s2 + $0x498] ss:$12 sps:$4 sm:$0xff]   ;;  %v6117_v29 = vld [vmem:[%s6704_s2 + $0x4b4] ss:$12 sps:$4 sm:$0xff]  }
 0x10b   : > { %1693 = vmatpush1.bf16.msra.mxu1 %v5504_v53  ;;  %1642 = vmatpush1.bf16.msra.mxu0 %v5512_v56  ;;  %v5862_v53 = vld [vmem:[%s6704_s2 + $0x3c0] ss:$12 sps:$4 sm:$0xff]   ;;  %v5868_v56 = vld [vmem:[%s6704_s2 + $0x3dc] ss:$12 sps:$4 sm:$0xff]  }
 0x10c   : > { %1694 = vmatprep.subr.bf16.mxu1 %v4728_v1  ;;  %1643 = vmatprep.subr.bf16.mxu0 %v5518_v58  ;;  %v5756_v35 = vsel %vm1007_vm1, %v1604_v31, %v1608_v32  ;;  %v5874_v58 = vld [vmem:[%s6704_s2 + $0x3e0] ss:$12 sps:$4 sm:$0xff]   ;;  %v6134_v31 = vld [vmem:[%s6704_s2 + $0x4b0] ss:$12 sps:$4 sm:$0xff]  }
 0x10d   : > { %v6140_v32 = vld [vmem:[%s6704_s2 + $0x4cc] ss:$12 sps:$4 sm:$0xff]  }
 0x10f   : > { %1695 = vmatpush1.bf16.msra.mxu1 %v5528_v59  ;;  %1644 = vmatpush1.bf16.msra.mxu0 %v5535_v61  ;;  %v5881_v59 = vld [vmem:[%s6704_s2 + $0x3d8] ss:$12 sps:$4 sm:$0xff]   ;;  %v5887_v61 = vld [vmem:[%s6704_s2 + $0x3f4] ss:$12 sps:$4 sm:$0xff]  }
 0x110   : > { %1696 = vmatprep.subr.bf16.mxu1 %v4728_v1  ;;  %1645 = vmatprep.subr.bf16.mxu0 %v5541_v62  ;;  %v5893_v62 = vld [vmem:[%s6704_s2 + $0x3f8] ss:$12 sps:$4 sm:$0xff]  }
 0x113   : > { %1697 = vmatpush1.bf16.msra.mxu1 %v5547_v63  ;;  %1646 = vmatpush1.bf16.msra.mxu0 %v5554_v25  ;;  %v5900_v63 = vld [vmem:[%s6704_s2 + $0x3f0] ss:$12 sps:$4 sm:$0xff]   ;;  %v5906_v25 = vld [vmem:[%s6704_s2 + $0x40c] ss:$12 sps:$4 sm:$0xff]  }
 0x114   : > { %1698 = vmatprep.subr.bf16.mxu1 %v4728_v1  ;;  %1647 = vmatprep.subr.bf16.mxu0 %v5560_v26  ;;  %v5912_v26 = vld [vmem:[%s6704_s2 + $0x410] ss:$12 sps:$4 sm:$0xff]  }
 0x117   : > { %1699 = vmatpush1.bf16.msra.mxu1 %v5566_v47  ;;  %1648 = vmatpush1.bf16.msra.mxu0 %v5573_v54  ;;  %v5919_v47 = vld [vmem:[%s6704_s2 + $0x408] ss:$12 sps:$4 sm:$0xff]   ;;  %v5925_v54 = vld [vmem:[%s6704_s2 + $0x424] ss:$12 sps:$4 sm:$0xff]  }
 0x118   : > { %1700 = vmatprep.subr.bf16.mxu1 %v4728_v1  ;;  %1649 = vmatprep.subr.bf16.mxu0 %v5579_v55  ;;  %v5931_v55 = vld [vmem:[%s6704_s2 + $0x428] ss:$12 sps:$4 sm:$0xff]  }
 0x11b   : > { %1701 = vmatpush1.bf16.msra.mxu1 %v5585_v0  ;;  %1650 = vmatpush1.bf16.msra.mxu0 %v5592_v57  ;;  %v5938_v0 = vld [vmem:[%s6704_s2 + $0x420] ss:$12 sps:$4 sm:$0xff]   ;;  %v5944_v57 = vld [vmem:[%s6704_s2 + $0x43c] ss:$12 sps:$4 sm:$0xff]  }
 0x11c   : > { %1702 = vmatprep.subr.bf16.mxu1 %v4728_v1  ;;  %1651 = vmatprep.subr.bf16.mxu0 %v5598_v2  ;;  %v5950_v2 = vld [vmem:[%s6704_s2 + $0x440] ss:$12 sps:$4 sm:$0xff]  }
 0x11f   : > { %1703 = vmatpush1.bf16.msra.mxu1 %v5604_v4  ;;  %1652 = vmatpush1.bf16.msra.mxu0 %v5611_v5  ;;  %v5957_v4 = vld [vmem:[%s6704_s2 + $0x438] ss:$12 sps:$4 sm:$0xff]   ;;  %v5963_v5 = vld [vmem:[%s6704_s2 + $0x454] ss:$12 sps:$4 sm:$0xff]  }
 0x120   : > { %1704 = vmatprep.subr.bf16.mxu1 %v4728_v1  ;;  %1653 = vmatprep.subr.bf16.mxu0 %v5617_v6  ;;  %v5969_v6 = vld [vmem:[%s6704_s2 + $0x458] ss:$12 sps:$4 sm:$0xff]  }
 0x123   : > { %1705 = vmatpush1.bf16.msra.mxu1 %v5623_v7  ;;  %1654 = vmatpush1.bf16.msra.mxu0 %v5630_v8  ;;  %v5976_v7 = vld [vmem:[%s6704_s2 + $0x450] ss:$12 sps:$4 sm:$0xff]   ;;  %v5982_v8 = vld [vmem:[%s6704_s2 + $0x46c] ss:$12 sps:$4 sm:$0xff]  }
 0x124   : > { %1706 = vmatprep.subr.bf16.mxu1 %v4728_v1  ;;  %1655 = vmatprep.subr.bf16.mxu0 %v5636_v9  ;;  %v5988_v9 = vld [vmem:[%s6704_s2 + $0x470] ss:$12 sps:$4 sm:$0xff]  }
 0x127   : > { %1707 = vmatpush1.bf16.msra.mxu1 %v5642_v10  ;;  %1656 = vmatpush1.bf16.msra.mxu0 %v5649_v13  ;;  %v5995_v10 = vld [vmem:[%s6704_s2 + $0x468] ss:$12 sps:$4 sm:$0xff]   ;;  %v1792_v13 = vld [vmem:[%s5074_s28] sm:$0xee] }
 0x128   : > { %1708 = vmatprep.subr.bf16.mxu1 %v4728_v1  ;;  %1657 = vmatprep.subr.bf16.mxu0 %v5655_v15  ;;  %v4718_v15 = vld [vmem:[%s5074_s28 + $0x8] sm:$0xff] }
 0x12b   : > { %1709 = vmatpush1.bf16.msra.mxu1 %v5661_v16  ;;  %1658 = vmatpush1.bf16.msra.mxu0 %v5669_v18  ;;  %v3961_v16 = vcombine.high %v1792_v13, %v4718_v15  ;;  %v6015_v18 = vrot.slane %v5291_v60, 1  ;;  %v3960_v60 = vcombine.low %v1792_v13, %v4718_v15  ;;  %v4583_v13 = vld [vmem:[%s6707_s5 + $0x10] ss:$8 sps:$4 sm:$0xff]   ;;  %v4588_v15 = vld [vmem:[%s6706_s4 + $0x24] ss:$8 sps:$4 sm:$0xff]  }
 0x12c   : > { %2036 = vmatprep.subr.bf16.mxu1 %v4728_v1  ;;  %1985 = vmatprep.subr.bf16.mxu0 %v5751_v33 }
 0x12d   : > { %v2102_v17 = vrot.slane %v3961_v16, 1  ;;  %v2099_v21 = vrot.slane %v3960_v60, 1  ;;  %v4591_v16 = vld [vmem:[%s6707_s5 + $0x24] ss:$8 sps:$4 sm:$0xff]   ;;  %v4597_v60 = vld [vmem:[%s6707_s5 + $0x34] ss:$8 sps:$4 sm:$0xff]  }
 0x12e   : > { %1719 = vmatmul.mubr.bf16.vlgmr.msra.gmra.mrb[8].mxu1 %v5756_v35  ;;  %1668 = vmatmul.mubr.bf16.vlgmr.msra.gmra.mrb[8].mxu0 %v5756_v35 }
 0x12f   : > { %2037 = vmatpush1.bf16.msra.mxu1 %v5761_v36  ;;  %1986 = vmatpush1.bf16.msra.mxu0 %v5768_v37  ;;  %v6024_v20 = vsel %vm2098_vm2, %v2102_v17, %v6015_v18  ;;  %v6078_v28 = vsel %vm2098_vm2, %v2099_v21, %v6065_v22  ;;  %v4586_v17 = vld [vmem:[%s6706_s4 + $0x20] ss:$8 sps:$4 sm:$0xff]   ;;  %v4592_v21 = vld [vmem:[%s6706_s4 + $0x30] ss:$8 sps:$4 sm:$0xff]  }
 0x130   : > { %2038 = vmatprep.subr.bf16.mxu1 %v4728_v1  ;;  %1987 = vmatprep.subr.bf16.mxu0 %v5774_v38 }
 0x131   : > { %3871 = vmatprep.mubr.msk.bf16.mxu1 %vm584_vm0, %v5777_v39  ;;  %3869 = vmatprep.mubr.msk.bf16.mxu0 %vm584_vm0, %v5777_v39 }
 0x133   : > { %2039 = vmatpush1.bf16.msra.mxu1 %v5786_v42  ;;  %1988 = vmatpush1.bf16.msra.mxu0 %v5793_v41 }
 0x134   : > { %2040 = vmatprep.subr.bf16.mxu1 %v4728_v1  ;;  %1989 = vmatprep.subr.bf16.mxu0 %v5799_v43 }
 0x136   : > { %1727 = vmatmul.mubr.bf16.gmra.mrb[12].mxu1 %v5805_v44  ;;  %1678 = vmatmul.mubr.bf16.gmra.mrb[12].mxu0 %v5805_v44 }
 0x137   : > { %2041 = vmatpush1.bf16.msra.mxu1 %v5811_v45  ;;  %1990 = vmatpush1.bf16.msra.mxu0 %v5818_v46 }
 0x138   : > { %2042 = vmatprep.subr.bf16.mxu1 %v4728_v1  ;;  %1991 = vmatprep.subr.bf16.mxu0 %v5824_v48 }
 0x139   : > { %3958 = vmatprep.mubr.msk.bf16.mxu1 %vm584_vm0, %v5700_v11  ;;  %3956 = vmatprep.mubr.msk.bf16.mxu0 %vm584_vm0, %v5700_v11  ;;  %v6096_v11 = vld [vmem:[%s6704_s2 + $0x49c] ss:$12 sps:$4 sm:$0xff]  }
 0x13b   : > { %2043 = vmatpush1.bf16.msra.mxu1 %v5831_v49  ;;  %1992 = vmatpush1.bf16.msra.mxu0 %v5839_v50 }
 0x13c   : > { %2044 = vmatprep.subr.bf16.mxu1 %v4728_v1  ;;  %1993 = vmatprep.subr.bf16.mxu0 %v5845_v51 }
 0x13f   : > { %2045 = vmatpush1.bf16.msra.mxu1 %v5855_v52  ;;  %1994 = vmatpush1.bf16.msra.mxu0 %v5862_v53 }
 0x140   : > { %2046 = vmatprep.subr.bf16.mxu1 %v4728_v1  ;;  %1995 = vmatprep.subr.bf16.mxu0 %v5868_v56 }
 0x143   : > { %2047 = vmatpush1.bf16.msra.mxu1 %v5874_v58  ;;  %1996 = vmatpush1.bf16.msra.mxu0 %v5881_v59 }
 0x144   : > { %2048 = vmatprep.subr.bf16.mxu1 %v4728_v1  ;;  %1997 = vmatprep.subr.bf16.mxu0 %v5887_v61 }
 0x147   : > { %2049 = vmatpush1.bf16.msra.mxu1 %v5893_v62  ;;  %1998 = vmatpush1.bf16.msra.mxu0 %v5900_v63 }
 0x148   : > { %2050 = vmatprep.subr.bf16.mxu1 %v4728_v1  ;;  %1999 = vmatprep.subr.bf16.mxu0 %v5906_v25 }
 0x14b   : > { %2051 = vmatpush1.bf16.msra.mxu1 %v5912_v26  ;;  %2000 = vmatpush1.bf16.msra.mxu0 %v5919_v47 }
 0x14c   : > { %2052 = vmatprep.subr.bf16.mxu1 %v4728_v1  ;;  %2001 = vmatprep.subr.bf16.mxu0 %v5925_v54 }
 0x14f   : > { %2053 = vmatpush1.bf16.msra.mxu1 %v5931_v55  ;;  %2002 = vmatpush1.bf16.msra.mxu0 %v5938_v0 }
 0x150   : > { %2054 = vmatprep.subr.bf16.mxu1 %v4728_v1  ;;  %2003 = vmatprep.subr.bf16.mxu0 %v5944_v57 }
 0x153   : > { %2055 = vmatpush1.bf16.msra.mxu1 %v5950_v2  ;;  %2004 = vmatpush1.bf16.msra.mxu0 %v5957_v4 }
 0x154   : > { %2056 = vmatprep.subr.bf16.mxu1 %v4728_v1  ;;  %2005 = vmatprep.subr.bf16.mxu0 %v5963_v5 }
 0x157   : > { %2057 = vmatpush1.bf16.msra.mxu1 %v5969_v6  ;;  %2006 = vmatpush1.bf16.msra.mxu0 %v5976_v7 }
 0x158   : > { %2058 = vmatprep.subr.bf16.mxu1 %v4728_v1  ;;  %2007 = vmatprep.subr.bf16.mxu0 %v5982_v8 }
 0x15b   : > { %2059 = vmatpush1.bf16.msra.mxu1 %v5988_v9  ;;  %2008 = vmatpush1.bf16.msra.mxu0 %v5995_v10 }
 0x15c   : > { %2164 = vmatprep.subr.bf16.mxu1 %v4728_v1  ;;  %2113 = vmatprep.subr.bf16.mxu0 %v5751_v33  ;;  %v6147_v33 = vld [vmem:[%s6704_s2 + $0x4d0] ss:$12 sps:$4 sm:$0xff]  }
 0x15e   : > { %2069 = vmatmul.mubr.bf16.vlgmr.msra.gmra.mrb[0].mxu1 %v5756_v35  ;;  %2018 = vmatmul.mubr.bf16.vlgmr.msra.gmra.mrb[0].mxu0 %v5756_v35  ;;  %v6161_v35 = vld [vmem:[%s6704_s2 + $0x4e4] ss:$12 sps:$4 sm:$0xff]  }
 0x15f   : > { %2165 = vmatpush1.bf16.msra.mxu1 %v5761_v36  ;;  %2114 = vmatpush1.bf16.msra.mxu0 %v5768_v37  ;;  %v6171_v36 = vld [vmem:[%s6704_s2 + $0x4e8] ss:$12 sps:$4 sm:$0xff]   ;;  %v6178_v37 = vld [vmem:[%s6704_s2 + $0x4e0] ss:$12 sps:$4 sm:$0xff]  }
 0x160   : > { %2166 = vmatprep.subr.bf16.mxu1 %v4728_v1  ;;  %2115 = vmatprep.subr.bf16.mxu0 %v5774_v38  ;;  %v6184_v38 = vld [vmem:[%s6704_s2 + $0x4fc] ss:$12 sps:$4 sm:$0xff]  }
 0x161   : > { %3959 = vmatprep.mubr.msk.bf16.mxu1 %vm584_vm0, %v5777_v39  ;;  %3957 = vmatprep.mubr.msk.bf16.mxu0 %vm584_vm0, %v5777_v39  ;;  %v6190_v39 = vld [vmem:[%s6704_s2 + $0x500] ss:$12 sps:$4 sm:$0xff]  }
 0x163   : > { %2167 = vmatpush1.bf16.msra.mxu1 %v5786_v42  ;;  %2116 = vmatpush1.bf16.msra.mxu0 %v5793_v41  ;;  %v6203_v42 = vld [vmem:[%s6704_s2 + $0x514] ss:$12 sps:$4 sm:$0xff]   ;;  %v6209_v41 = vld [vmem:[%s6704_s2 + $0x518] ss:$12 sps:$4 sm:$0xff]  }
 0x164   : > { %2168 = vmatprep.subr.bf16.mxu1 %v4728_v1  ;;  %2117 = vmatprep.subr.bf16.mxu0 %v5799_v43  ;;  %v6216_v43 = vld [vmem:[%s6704_s2 + $0x510] ss:$12 sps:$4 sm:$0xff]  }
 0x166   : > { %2077 = vmatmul.mubr.bf16.gmra.mrb[4].mxu1 %v5805_v44  ;;  %2028 = vmatmul.mubr.bf16.gmra.mrb[4].mxu0 %v5805_v44  ;;  %v6222_v44 = vld [vmem:[%s6704_s2 + $0x52c] ss:$12 sps:$4 sm:$0xff]  }
 0x167   : > { %2169 = vmatpush1.bf16.msra.mxu1 %v5811_v45  ;;  %2118 = vmatpush1.bf16.msra.mxu0 %v5818_v46  ;;  %v6228_v45 = vld [vmem:[%s6704_s2 + $0x530] ss:$12 sps:$4 sm:$0xff]   ;;  %v6235_v46 = vld [vmem:[%s6704_s2 + $0x528] ss:$12 sps:$4 sm:$0xff]  }
 0x168   : > { %2170 = vmatprep.subr.bf16.mxu1 %v4728_v1  ;;  %2119 = vmatprep.subr.bf16.mxu0 %v5824_v48  ;;  %v6241_v48 = vld [vmem:[%s6704_s2 + $0x544] ss:$12 sps:$4 sm:$0xff]  }
 0x169   : > { %3964 = vmatprep.mubr.msk.bf16.mxu1 %vm584_vm0, %v6024_v20  ;;  %3962 = vmatprep.mubr.msk.bf16.mxu0 %vm584_vm0, %v6024_v20 }
 0x16b   : > { %2171 = vmatpush1.bf16.msra.mxu1 %v5831_v49  ;;  %2120 = vmatpush1.bf16.msra.mxu0 %v5839_v50  ;;  %v6247_v49 = vld [vmem:[%s6704_s2 + $0x548] ss:$12 sps:$4 sm:$0xff]   ;;  %v6254_v50 = vld [vmem:[%s6704_s2 + $0x540] ss:$12 sps:$4 sm:$0xff]  }
 0x16c   : > { %2172 = vmatprep.subr.bf16.mxu1 %v4728_v1  ;;  %2121 = vmatprep.subr.bf16.mxu0 %v5845_v51  ;;  %v6260_v51 = vld [vmem:[%s6704_s2 + $0x55c] ss:$12 sps:$4 sm:$0xff]  }
 0x16f   : > { %2173 = vmatpush1.bf16.msra.mxu1 %v5855_v52  ;;  %2122 = vmatpush1.bf16.msra.mxu0 %v5862_v53  ;;  %v6266_v52 = vld [vmem:[%s6704_s2 + $0x560] ss:$12 sps:$4 sm:$0xff]   ;;  %v6273_v53 = vld [vmem:[%s6704_s2 + $0x558] ss:$12 sps:$4 sm:$0xff]  }
 0x170   : > { %2174 = vmatprep.subr.bf16.mxu1 %v4728_v1  ;;  %2123 = vmatprep.subr.bf16.mxu0 %v5868_v56  ;;  %v6279_v56 = vld [vmem:[%s6704_s2 + $0x574] ss:$12 sps:$4 sm:$0xff]  }
 0x173   : > { %2175 = vmatpush1.bf16.msra.mxu1 %v5874_v58  ;;  %2124 = vmatpush1.bf16.msra.mxu0 %v5881_v59  ;;  %v6285_v58 = vld [vmem:[%s6704_s2 + $0x578] ss:$12 sps:$4 sm:$0xff]   ;;  %v6292_v59 = vld [vmem:[%s6704_s2 + $0x570] ss:$12 sps:$4 sm:$0xff]  }
 0x174   : > { %2176 = vmatprep.subr.bf16.mxu1 %v4728_v1  ;;  %2125 = vmatprep.subr.bf16.mxu0 %v5887_v61  ;;  %v6298_v61 = vld [vmem:[%s6704_s2 + $0x58c] ss:$12 sps:$4 sm:$0xff]  }
 0x177   : > { %2177 = vmatpush1.bf16.msra.mxu1 %v5893_v62  ;;  %2126 = vmatpush1.bf16.msra.mxu0 %v5900_v63  ;;  %v6304_v62 = vld [vmem:[%s6704_s2 + $0x590] ss:$12 sps:$4 sm:$0xff]   ;;  %v6311_v63 = vld [vmem:[%s6704_s2 + $0x588] ss:$12 sps:$4 sm:$0xff]  }
 0x178   : > { %2178 = vmatprep.subr.bf16.mxu1 %v4728_v1  ;;  %2127 = vmatprep.subr.bf16.mxu0 %v5906_v25  ;;  %v2270_v25 = vld [vmem:[%s4918_s25] sm:$0xee] }
 0x17b   : > { %2179 = vmatpush1.bf16.msra.mxu1 %v5912_v26  ;;  %2128 = vmatpush1.bf16.msra.mxu0 %v5919_v47  ;;  %v4719_v26 = vld [vmem:[%s4918_s25 + $0x8] sm:$0xff] }
 0x17c   : > { %2180 = vmatprep.subr.bf16.mxu1 %v4728_v1  ;;  %2129 = vmatprep.subr.bf16.mxu0 %v5925_v54  ;;  %v4055_v47 = vcombine.high %v2270_v25, %v4719_v26 }
 0x17e   : > { %v2579_v54 = vrot.slane %v4055_v47, 1  ;;  %v4655_v47 = vld [vmem:[%s6707_s5 + $0xd0] ss:$8 sps:$4 sm:$0xff]  }
 0x17f   : > { %2181 = vmatpush1.bf16.msra.mxu1 %v5931_v55  ;;  %2130 = vmatpush1.bf16.msra.mxu0 %v5938_v0  ;;  %v2580_v55 = vrot.slane %v5672_v19, 1  ;;  %v4054_v19 = vcombine.low %v2270_v25, %v4719_v26  ;;  %v4657_v25 = vld [vmem:[%s6707_s5 + $0xd4] ss:$8 sps:$4 sm:$0xff]   ;;  %v4652_v26 = vld [vmem:[%s6706_s4 + $0xd0] ss:$8 sps:$4 sm:$0xff]  }
 0x180   : > { %2182 = vmatprep.subr.bf16.mxu1 %v4728_v1  ;;  %2131 = vmatprep.subr.bf16.mxu0 %v5944_v57 }
 0x181   : > { %v2581_v0 = vsel %vm2098_vm2, %v2579_v54, %v2580_v55  ;;  %v2576_v57 = vrot.slane %v4054_v19, 1  ;;  %v4660_v54 = vld [vmem:[%s6706_s4 + $0xe4] ss:$8 sps:$4 sm:$0xff]   ;;  %v4661_v19 = vld [vmem:[%s6707_s5 + $0xe0] ss:$8 sps:$4 sm:$0xff]  }
 0x183   : > { %2183 = vmatpush1.bf16.msra.mxu1 %v5950_v2  ;;  %2132 = vmatpush1.bf16.msra.mxu0 %v5957_v4  ;;  %v2577_v2 = vrot.slane %v5732_v12, 1  ;;  %v4579_v4 = vld [vmem:[%s6707_s5 + $0x4] ss:$8 sps:$4 sm:$0xff]   ;;  %v4574_v12 = vld [vmem:[%s6706_s4] ss:$8 sps:$4 sm:$0xff]  }
 0x184   : > { %2184 = vmatprep.subr.bf16.mxu1 %v4728_v1  ;;  %2133 = vmatprep.subr.bf16.mxu0 %v5963_v5  ;;  %v4576_v5 = vld [vmem:[%s6706_s4 + $0x4] ss:$8 sps:$4 sm:$0xff]  }
 0x187   : > { %2185 = vmatpush1.bf16.msra.mxu1 %v5969_v6  ;;  %2134 = vmatpush1.bf16.msra.mxu0 %v5976_v7  ;;  %v2578_v6 = vsel %vm2098_vm2, %v2576_v57, %v2577_v2  ;;  %v4577_v7 = vld [vmem:[%s6707_s5] ss:$8 sps:$4 sm:$0xff]   ;;  %v4666_v57 = vld [vmem:[%s6706_s4 + $0xf4] ss:$8 sps:$4 sm:$0xff]  }
 0x188   : > { %2186 = vmatprep.subr.bf16.mxu1 %v4728_v1  ;;  %2135 = vmatprep.subr.bf16.mxu0 %v5982_v8  ;;  %v4582_v8 = vld [vmem:[%s6706_s4 + $0x14] ss:$8 sps:$4 sm:$0xff]  }
 0x18b   : > { %2187 = vmatpush1.bf16.msra.mxu1 %v5988_v9  ;;  %2136 = vmatpush1.bf16.msra.mxu0 %v5995_v10  ;;  %v4585_v9 = vld [vmem:[%s6707_s5 + $0x14] ss:$8 sps:$4 sm:$0xff]   ;;  %v4580_v10 = vld [vmem:[%s6706_s4 + $0x10] ss:$8 sps:$4 sm:$0xff]  }
 0x18c   : > { %2514 = vmatprep.subr.bf16.mxu1 %v4728_v1  ;;  %2463 = vmatprep.subr.bf16.mxu0 %v6073_v23 }
 0x18e   : > { %2197 = vmatmul.mubr.bf16.vlgmr.msra.gmra.mrb[8].mxu1 %v6078_v28  ;;  %2146 = vmatmul.mubr.bf16.vlgmr.msra.gmra.mrb[8].mxu0 %v6078_v28 }
 0x18f   : > { %2515 = vmatpush1.bf16.msra.mxu1 %v6083_v3  ;;  %2464 = vmatpush1.bf16.msra.mxu0 %v6090_v24 }
 0x190   : > { %2516 = vmatprep.subr.bf16.mxu1 %v4728_v1  ;;  %2465 = vmatprep.subr.bf16.mxu0 %v6096_v11 }
 0x191   : > { %3965 = vmatprep.mubr.msk.bf16.mxu1 %vm584_vm0, %v6015_v18  ;;  %3963 = vmatprep.mubr.msk.bf16.mxu0 %vm584_vm0, %v6015_v18 }
 0x193   : > { %2517 = vmatpush1.bf16.msra.mxu1 %v6104_v14  ;;  %2466 = vmatpush1.bf16.msra.mxu0 %v6111_v27 }
 0x194   : > { %2518 = vmatprep.subr.bf16.mxu1 %v4728_v1  ;;  %2467 = vmatprep.subr.bf16.mxu0 %v6117_v29 }
 0x196   : > { %2205 = vmatmul.mubr.bf16.gmra.mrb[12].mxu1 %v6065_v22  ;;  %2156 = vmatmul.mubr.bf16.gmra.mrb[12].mxu0 %v6065_v22 }
 0x197   : > { %2519 = vmatpush1.bf16.msra.mxu1 %v6127_v30  ;;  %2468 = vmatpush1.bf16.msra.mxu0 %v6134_v31 }
 0x198   : > { %2520 = vmatprep.subr.bf16.mxu1 %v4728_v1  ;;  %2469 = vmatprep.subr.bf16.mxu0 %v6140_v32 }
 0x199   : > { %4052 = vmatprep.mubr.msk.bf16.mxu1 %vm584_vm0, %v6024_v20  ;;  %4050 = vmatprep.mubr.msk.bf16.mxu0 %vm584_vm0, %v6024_v20  ;;  %v4594_v20 = vld [vmem:[%s6706_s4 + $0x34] ss:$8 sps:$4 sm:$0xff]  }
 0x19b   : > { %2521 = vmatpush1.bf16.msra.mxu1 %v6147_v33  ;;  %2470 = vmatpush1.bf16.msra.mxu0 %v6155_v34 }
 0x19c   : > { %2522 = vmatprep.subr.bf16.mxu1 %v4728_v1  ;;  %2471 = vmatprep.subr.bf16.mxu0 %v6161_v35 }
 0x19f   : > { %2523 = vmatpush1.bf16.msra.mxu1 %v6171_v36  ;;  %2472 = vmatpush1.bf16.msra.mxu0 %v6178_v37 }
 0x1a0   : > { %2524 = vmatprep.subr.bf16.mxu1 %v4728_v1  ;;  %2473 = vmatprep.subr.bf16.mxu0 %v6184_v38 }
 0x1a3   : > { %2525 = vmatpush1.bf16.msra.mxu1 %v6190_v39  ;;  %2474 = vmatpush1.bf16.msra.mxu0 %v6197_v40 }
 0x1a4   : > { %2526 = vmatprep.subr.bf16.mxu1 %v4728_v1  ;;  %2475 = vmatprep.subr.bf16.mxu0 %v6203_v42 }
 0x1a7   : > { %2527 = vmatpush1.bf16.msra.mxu1 %v6209_v41  ;;  %2476 = vmatpush1.bf16.msra.mxu0 %v6216_v43 }
 0x1a8   : > { %2528 = vmatprep.subr.bf16.mxu1 %v4728_v1  ;;  %2477 = vmatprep.subr.bf16.mxu0 %v6222_v44 }
 0x1ab   : > { %2529 = vmatpush1.bf16.msra.mxu1 %v6228_v45  ;;  %2478 = vmatpush1.bf16.msra.mxu0 %v6235_v46 }
 0x1ac   : > { %2530 = vmatprep.subr.bf16.mxu1 %v4728_v1  ;;  %2479 = vmatprep.subr.bf16.mxu0 %v6241_v48 }
 0x1af   : > { %2531 = vmatpush1.bf16.msra.mxu1 %v6247_v49  ;;  %2480 = vmatpush1.bf16.msra.mxu0 %v6254_v50 }
 0x1b0   : > { %2532 = vmatprep.subr.bf16.mxu1 %v4728_v1  ;;  %2481 = vmatprep.subr.bf16.mxu0 %v6260_v51 }
 0x1b3   : > { %2533 = vmatpush1.bf16.msra.mxu1 %v6266_v52  ;;  %2482 = vmatpush1.bf16.msra.mxu0 %v6273_v53 }
 0x1b4   : > { %2534 = vmatprep.subr.bf16.mxu1 %v4728_v1  ;;  %2483 = vmatprep.subr.bf16.mxu0 %v6279_v56 }
 0x1b7   : > { %2535 = vmatpush1.bf16.msra.mxu1 %v6285_v58  ;;  %2484 = vmatpush1.bf16.msra.mxu0 %v6292_v59 }
 0x1b8   : > { %2536 = vmatprep.subr.bf16.mxu1 %v4728_v1  ;;  %2485 = vmatprep.subr.bf16.mxu0 %v6298_v61 }
 0x1bb   : > { %2537 = vmatpush1.bf16.msra.mxu1 %v6304_v62  ;;  %2486 = vmatpush1.bf16.msra.mxu0 %v6311_v63 }
 0x1bc   : > { %2641 = vmatprep.subr.bf16.mxu1 %v4728_v1  ;;  %2590 = vmatprep.subr.bf16.mxu0 %v6073_v23  ;;  %v4600_v23 = vld [vmem:[%s6706_s4 + $0x44] ss:$8 sps:$4 sm:$0xff]  }
 0x1be   : > { %2547 = vmatmul.mubr.bf16.vlgmr.msra.gmra.mrb[0].mxu1 %v6078_v28  ;;  %2496 = vmatmul.mubr.bf16.vlgmr.msra.gmra.mrb[0].mxu0 %v6078_v28  ;;  %v4603_v28 = vld [vmem:[%s6707_s5 + $0x44] ss:$8 sps:$4 sm:$0xff]  }
 0x1bf   : > { %2642 = vmatpush1.bf16.msra.mxu1 %v6083_v3  ;;  %2591 = vmatpush1.bf16.msra.mxu0 %v6090_v24  ;;  %v4598_v3 = vld [vmem:[%s6706_s4 + $0x40] ss:$8 sps:$4 sm:$0xff]  }
 0x1c0   : > { %2643 = vmatprep.subr.bf16.mxu1 %v4728_v1  ;;  %2592 = vmatprep.subr.bf16.mxu0 %v6096_v11  ;;  %v4601_v24 = vld [vmem:[%s6707_s5 + $0x40] ss:$8 sps:$4 sm:$0xff]   ;;  %v4606_v11 = vld [vmem:[%s6706_s4 + $0x54] ss:$8 sps:$4 sm:$0xff]  }
 0x1c1   : > { %4053 = vmatprep.mubr.msk.bf16.mxu1 %vm584_vm0, %v6015_v18  ;;  %4051 = vmatprep.mubr.msk.bf16.mxu0 %vm584_vm0, %v6015_v18  ;;  %v4589_v18 = vld [vmem:[%s6707_s5 + $0x20] ss:$8 sps:$4 sm:$0xff]  }
 0x1c3   : > { %2644 = vmatpush1.bf16.msra.mxu1 %v6104_v14  ;;  %2593 = vmatpush1.bf16.msra.mxu0 %v6111_v27  ;;  %v4609_v14 = vld [vmem:[%s6707_s5 + $0x54] ss:$8 sps:$4 sm:$0xff]   ;;  %v4604_v27 = vld [vmem:[%s6706_s4 + $0x50] ss:$8 sps:$4 sm:$0xff]  }
 0x1c4   : > { %2645 = vmatprep.subr.bf16.mxu1 %v4728_v1  ;;  %2594 = vmatprep.subr.bf16.mxu0 %v6117_v29  ;;  %v4607_v29 = vld [vmem:[%s6707_s5 + $0x50] ss:$8 sps:$4 sm:$0xff]  }
 0x1c6   : > { %2555 = vmatmul.mubr.bf16.gmra.mrb[4].mxu1 %v6065_v22  ;;  %2506 = vmatmul.mubr.bf16.gmra.mrb[4].mxu0 %v6065_v22  ;;  %v4595_v22 = vld [vmem:[%s6707_s5 + $0x30] ss:$8 sps:$4 sm:$0xff]  }
 0x1c7   : > { %2646 = vmatpush1.bf16.msra.mxu1 %v6127_v30  ;;  %2595 = vmatpush1.bf16.msra.mxu0 %v6134_v31  ;;  %v4612_v30 = vld [vmem:[%s6706_s4 + $0x64] ss:$8 sps:$4 sm:$0xff]  }
 0x1c8   : > { %2647 = vmatprep.subr.bf16.mxu1 %v4728_v1  ;;  %2596 = vmatprep.subr.bf16.mxu0 %v6140_v32  ;;  %v4615_v31 = vld [vmem:[%s6707_s5 + $0x64] ss:$8 sps:$4 sm:$0xff]   ;;  %v4610_v32 = vld [vmem:[%s6706_s4 + $0x60] ss:$8 sps:$4 sm:$0xff]  }
 0x1c9   : > { %4058 = vmatprep.mubr.msk.bf16.mxu1 %vm584_vm0, %v2581_v0  ;;  %4056 = vmatprep.mubr.msk.bf16.mxu0 %vm584_vm0, %v2581_v0  ;;  %v4658_v0 = vld [vmem:[%s6706_s4 + $0xe0] ss:$8 sps:$4 sm:$0xff]  }
 0x1cb   : > { %2648 = vmatpush1.bf16.msra.mxu1 %v6147_v33  ;;  %2597 = vmatpush1.bf16.msra.mxu0 %v6155_v34  ;;  %v4613_v33 = vld [vmem:[%s6707_s5 + $0x60] ss:$8 sps:$4 sm:$0xff]   ;;  %v4618_v34 = vld [vmem:[%s6706_s4 + $0x74] ss:$8 sps:$4 sm:$0xff]  }
 0x1cc   : > { %2649 = vmatprep.subr.bf16.mxu1 %v4728_v1  ;;  %2598 = vmatprep.subr.bf16.mxu0 %v6161_v35  ;;  %v4621_v35 = vld [vmem:[%s6707_s5 + $0x74] ss:$8 sps:$4 sm:$0xff]  }
 0x1cf   : > { %2650 = vmatpush1.bf16.msra.mxu1 %v6171_v36  ;;  %2599 = vmatpush1.bf16.msra.mxu0 %v6178_v37  ;;  %v4616_v36 = vld [vmem:[%s6706_s4 + $0x70] ss:$8 sps:$4 sm:$0xff]  }
 0x1d0   : > { %2651 = vmatprep.subr.bf16.mxu1 %v4728_v1  ;;  %2600 = vmatprep.subr.bf16.mxu0 %v6184_v38  ;;  %v4619_v37 = vld [vmem:[%s6707_s5 + $0x70] ss:$8 sps:$4 sm:$0xff]   ;;  %v4624_v38 = vld [vmem:[%s6706_s4 + $0x84] ss:$8 sps:$4 sm:$0xff]  }
 0x1d3   : > { %2652 = vmatpush1.bf16.msra.mxu1 %v6190_v39  ;;  %2601 = vmatpush1.bf16.msra.mxu0 %v6197_v40  ;;  %v4627_v39 = vld [vmem:[%s6707_s5 + $0x84] ss:$8 sps:$4 sm:$0xff]   ;;  %v4622_v40 = vld [vmem:[%s6706_s4 + $0x80] ss:$8 sps:$4 sm:$0xff]  }
 0x1d4   : > { %2653 = vmatprep.subr.bf16.mxu1 %v4728_v1  ;;  %2602 = vmatprep.subr.bf16.mxu0 %v6203_v42  ;;  %v4625_v42 = vld [vmem:[%s6707_s5 + $0x80] ss:$8 sps:$4 sm:$0xff]  }
 0x1d7   : > { %2654 = vmatpush1.bf16.msra.mxu1 %v6209_v41  ;;  %2603 = vmatpush1.bf16.msra.mxu0 %v6216_v43  ;;  %v4630_v41 = vld [vmem:[%s6706_s4 + $0x94] ss:$8 sps:$4 sm:$0xff]  }
 0x1d8   : > { %2655 = vmatprep.subr.bf16.mxu1 %v4728_v1  ;;  %2604 = vmatprep.subr.bf16.mxu0 %v6222_v44  ;;  %v4633_v43 = vld [vmem:[%s6707_s5 + $0x94] ss:$8 sps:$4 sm:$0xff]   ;;  %v4628_v44 = vld [vmem:[%s6706_s4 + $0x90] ss:$8 sps:$4 sm:$0xff]  }
 0x1db   : > { %2656 = vmatpush1.bf16.msra.mxu1 %v6228_v45  ;;  %2605 = vmatpush1.bf16.msra.mxu0 %v6235_v46  ;;  %v4631_v45 = vld [vmem:[%s6707_s5 + $0x90] ss:$8 sps:$4 sm:$0xff]   ;;  %v4636_v46 = vld [vmem:[%s6706_s4 + $0xa4] ss:$8 sps:$4 sm:$0xff]  }
 0x1dc   : > { %2657 = vmatprep.subr.bf16.mxu1 %v4728_v1  ;;  %2606 = vmatprep.subr.bf16.mxu0 %v6241_v48  ;;  %v4639_v48 = vld [vmem:[%s6707_s5 + $0xa4] ss:$8 sps:$4 sm:$0xff]  }
 0x1df   : > { %2658 = vmatpush1.bf16.msra.mxu1 %v6247_v49  ;;  %2607 = vmatpush1.bf16.msra.mxu0 %v6254_v50  ;;  %v4634_v49 = vld [vmem:[%s6706_s4 + $0xa0] ss:$8 sps:$4 sm:$0xff]  }
 0x1e0   : > { %2659 = vmatprep.subr.bf16.mxu1 %v4728_v1  ;;  %2608 = vmatprep.subr.bf16.mxu0 %v6260_v51  ;;  %v4637_v50 = vld [vmem:[%s6707_s5 + $0xa0] ss:$8 sps:$4 sm:$0xff]   ;;  %v4642_v51 = vld [vmem:[%s6706_s4 + $0xb4] ss:$8 sps:$4 sm:$0xff]  }
 0x1e3   : > { %2660 = vmatpush1.bf16.msra.mxu1 %v6266_v52  ;;  %2609 = vmatpush1.bf16.msra.mxu0 %v6273_v53  ;;  %v4645_v52 = vld [vmem:[%s6707_s5 + $0xb4] ss:$8 sps:$4 sm:$0xff]   ;;  %v4640_v53 = vld [vmem:[%s6706_s4 + $0xb0] ss:$8 sps:$4 sm:$0xff]  }
 0x1e4   : > { %2661 = vmatprep.subr.bf16.mxu1 %v4728_v1  ;;  %2610 = vmatprep.subr.bf16.mxu0 %v6279_v56  ;;  %v4643_v56 = vld [vmem:[%s6707_s5 + $0xb0] ss:$8 sps:$4 sm:$0xff]  }
 0x1e7   : > { %2662 = vmatpush1.bf16.msra.mxu1 %v6285_v58  ;;  %2611 = vmatpush1.bf16.msra.mxu0 %v6292_v59  ;;  %v4648_v58 = vld [vmem:[%s6706_s4 + $0xc4] ss:$8 sps:$4 sm:$0xff]  }
 0x1e8   : > { %2663 = vmatprep.subr.bf16.mxu1 %v4728_v1  ;;  %2612 = vmatprep.subr.bf16.mxu0 %v6298_v61  ;;  %v4651_v59 = vld [vmem:[%s6707_s5 + $0xc4] ss:$8 sps:$4 sm:$0xff]   ;;  %v4646_v61 = vld [vmem:[%s6706_s4 + $0xc0] ss:$8 sps:$4 sm:$0xff]  }
 0x1eb   : > { %2664 = vmatpush1.bf16.msra.mxu1 %v6304_v62  ;;  %2613 = vmatpush1.bf16.msra.mxu0 %v6311_v63  ;;  %v4649_v62 = vld [vmem:[%s6707_s5 + $0xc0] ss:$8 sps:$4 sm:$0xff]   ;;  %v4654_v63 = vld [vmem:[%s6706_s4 + $0xd4] ss:$8 sps:$4 sm:$0xff]  }
 0x1ec   : > { %3426 = vmatprep.subr.bf16.mxu1 %v4579_v4  ;;  %3036 = vmatprep.subr.bf16.mxu0 %v4576_v5  ;;  %v4664_v4 = vld [vmem:[%s6706_s4 + $0xf0] ss:$8 sps:$4 sm:$0xff]  }
 0x1ed   : > { %v4667_v5 = vld [vmem:[%s6707_s5 + $0xf0] ss:$8 sps:$4 sm:$0xff]  }
 0x1ee   : > { %2674 = vmatmul.mubr.bf16.vlgmr.msra.gmra.mrb[8].mxu1 %v2578_v6  ;;  %2623 = vmatmul.mubr.bf16.vlgmr.msra.gmra.mrb[8].mxu0 %v2578_v6  ;;  %v4672_v6 = vld [vmem:[%s6706_s4 + $0x104] ss:$8 sps:$4 sm:$0xff]  }
 0x1ef   : > { %4059 = vmatprep.mubr.msk.bf16.mxu1 %vm584_vm0, %v2580_v55  ;;  %4057 = vmatprep.mubr.msk.bf16.mxu0 %vm584_vm0, %v2580_v55  ;;  %v4663_v55 = vld [vmem:[%s6707_s5 + $0xe4] ss:$8 sps:$4 sm:$0xff]  }
 0x1f0   : > { %3037 = vmatpush1.bf16.msra.mxu0 %v4574_v12  ;;  %3427 = vmatpush1.bf16.msra.mxu1 %v4577_v7  ;;  %v4675_v12 = vld [vmem:[%s6707_s5 + $0x104] ss:$8 sps:$4 sm:$0xff]  }
 0x1f1   : > { %3038 = vmatprep.subr.bf16.mxu0 %v4582_v8  ;;  %3428 = vmatprep.subr.bf16.mxu1 %v4585_v9 }
 0x1f4   : > { %3039 = vmatpush1.bf16.msra.mxu0 %v4580_v10  ;;  %3429 = vmatpush1.bf16.msra.mxu1 %v4583_v13 }
 0x1f5   : > { %3040 = vmatprep.subr.bf16.mxu0 %v4588_v15  ;;  %3430 = vmatprep.subr.bf16.mxu1 %v4591_v16 }
 0x1f6   : > { %2682 = vmatmul.mubr.bf16.gmra.mrb[12].mxu1 %v2577_v2  ;;  %2633 = vmatmul.mubr.bf16.gmra.mrb[12].mxu0 %v2577_v2  ;;  %v4669_v2 = vld [vmem:[%s6707_s5 + $0xf4] ss:$8 sps:$4 sm:$0xff]  }
 0x1f8   : > { %3041 = vmatpush1.bf16.msra.mxu0 %v4586_v17  ;;  %3431 = vmatpush1.bf16.msra.mxu1 %v4589_v18 }
 0x1f9   : > { %3042 = vmatprep.subr.bf16.mxu0 %v4594_v20  ;;  %3432 = vmatprep.subr.bf16.mxu1 %v4597_v60 }
 0x1fc   : > { %3043 = vmatpush1.bf16.msra.mxu0 %v4592_v21  ;;  %3433 = vmatpush1.bf16.msra.mxu1 %v4595_v22 }
 0x1fd   : > { %3044 = vmatprep.subr.bf16.mxu0 %v4600_v23  ;;  %3434 = vmatprep.subr.bf16.mxu1 %v4603_v28 }
 0x200   : > { %3045 = vmatpush1.bf16.msra.mxu0 %v4598_v3  ;;  %3435 = vmatpush1.bf16.msra.mxu1 %v4601_v24  ;;  %v2709_v24 = vlaneseq }
 0x201   : > { %3046 = vmatprep.subr.bf16.mxu0 %v4606_v11  ;;  %3436 = vmatprep.subr.bf16.mxu1 %v4609_v14 }
 0x202   : > { %v2710_v11 = vshrl.u32 %v2709_v24, 7  ;;  %v4682_v24 = vld [vmem:[%s6706_s4 + $0x120] ss:$8 sps:$4 sm:$0xff]  }
 0x204   : > { %3047 = vmatpush1.bf16.msra.mxu0 %v4604_v27  ;;  %3437 = vmatpush1.bf16.msra.mxu1 %v4607_v29  ;;  %v2719_v14 = vsub.s32 2, %v2710_v11  ;;  %v2707_v27 = vld [vmem:[%s6705_s3] sm:$0x7]  ;;  %v2711_v29 = vsub.s32 0, %v2710_v11 }
 0x205   : > { %3048 = vmatprep.subr.bf16.mxu0 %v4612_v30  ;;  %3438 = vmatprep.subr.bf16.mxu1 %v4615_v31  ;;  %v2715_v30 = vsub.s32 1, %v2710_v11  ;;  %v4685_v11 = vld [vmem:[%s6707_s5 + $0x120] ss:$8 sps:$4 sm:$0xff]  }
 0x206   : > { %v6585_v31 = vrot.slane %v2707_v27, %v2719_v14 }
 0x208   : > { %3049 = vmatpush1.bf16.msra.mxu0 %v4610_v32  ;;  %3439 = vmatpush1.bf16.msra.mxu1 %v4613_v33  ;;  %v2712_v33 = vrot.slane %v2707_v27, %v2711_v29  ;;  %v4693_v29 = vld [vmem:[%s6707_s5 + $0x134] ss:$8 sps:$4 sm:$0xff]  }
 0x209   : > { %3050 = vmatprep.subr.bf16.mxu0 %v4618_v34  ;;  %3440 = vmatprep.subr.bf16.mxu1 %v4621_v35 }
 0x20c   : > { %3051 = vmatpush1.bf16.msra.mxu0 %v4616_v36  ;;  %3441 = vmatpush1.bf16.msra.mxu1 %v4619_v37  ;;  %v2716_v37 = vrot.slane %v2707_v27, %v2715_v30  ;;  %v4690_v27 = vld [vmem:[%s6706_s4 + $0x134] ss:$8 sps:$4 sm:$0xff]   ;;  %v4688_v30 = vld [vmem:[%s6706_s4 + $0x130] ss:$8 sps:$4 sm:$0xff]  }
 0x20d   : > { %3052 = vmatprep.subr.bf16.mxu0 %v4624_v38  ;;  %3442 = vmatprep.subr.bf16.mxu1 %v4627_v39 }
 0x210   : > { %3053 = vmatpush1.bf16.msra.mxu0 %v4622_v40  ;;  %3443 = vmatpush1.bf16.msra.mxu1 %v4625_v42 }
 0x211   : > { %3054 = vmatprep.subr.bf16.mxu0 %v4630_v41  ;;  %3444 = vmatprep.subr.bf16.mxu1 %v4633_v43 }
 0x214   : > { %3055 = vmatpush1.bf16.msra.mxu0 %v4628_v44  ;;  %3445 = vmatpush1.bf16.msra.mxu1 %v4631_v45 }
 0x215   : > { %3056 = vmatprep.subr.bf16.mxu0 %v4636_v46  ;;  %3446 = vmatprep.subr.bf16.mxu1 %v4639_v48 }
 0x218   : > { %3057 = vmatpush1.bf16.msra.mxu0 %v4634_v49  ;;  %3447 = vmatpush1.bf16.msra.mxu1 %v4637_v50 }
 0x219   : > { %3058 = vmatprep.subr.bf16.mxu0 %v4642_v51  ;;  %3448 = vmatprep.subr.bf16.mxu1 %v4645_v52 }
 0x21c   : > { %3059 = vmatpush1.bf16.msra.mxu0 %v4640_v53  ;;  %3449 = vmatpush1.bf16.msra.mxu1 %v4643_v56 }
 0x21d   : > { %3060 = vmatprep.subr.bf16.mxu0 %v4648_v58  ;;  %3450 = vmatprep.subr.bf16.mxu1 %v4651_v59 }
 0x220   : > { %3061 = vmatpush1.bf16.msra.mxu0 %v4646_v61  ;;  %3451 = vmatpush1.bf16.msra.mxu1 %v4649_v62 }
 0x221   : > { %3062 = vmatprep.subr.bf16.mxu0 %v4654_v63  ;;  %3452 = vmatprep.subr.bf16.mxu1 %v4657_v25 }
 0x224   : > { %3063 = vmatpush1.bf16.msra.mxu0 %v4652_v26  ;;  %3453 = vmatpush1.bf16.msra.mxu1 %v4655_v47 }
 0x225   : > { %3064 = vmatprep.subr.bf16.mxu0 %v4660_v54  ;;  %3454 = vmatprep.subr.bf16.mxu1 %v4663_v55 }
 0x228   : > { %3065 = vmatpush1.bf16.msra.mxu0 %v4658_v0  ;;  %3455 = vmatpush1.bf16.msra.mxu1 %v4661_v19 }
 0x229   : > { %3066 = vmatprep.subr.bf16.mxu0 %v4666_v57  ;;  %3456 = vmatprep.subr.bf16.mxu1 %v4669_v2 }
 0x22c   : > { %3067 = vmatpush1.bf16.msra.mxu0 %v4664_v4  ;;  %3457 = vmatpush1.bf16.msra.mxu1 %v4667_v5 }
 0x22d   : > { %3087 = vmatprep.subr.bf16.mxu0 %v4672_v6  ;;  %3477 = vmatprep.subr.bf16.mxu1 %v4675_v12 }
 0x291   : > { %v2548_v7 = vpop.f32.mrb[0].mxu1  ;;  %v2497_v8 = vpop.f32.mrb[0].mxu0 }
 0x292   : > { %v2550_v9 = vpop.f32.mrb[1].mxu1  ;;  %v2499_v10 = vpop.f32.mrb[1].mxu0 }
 0x293   : > { %v2551_v13 = vpop.f32.mrb[2].mxu1  ;;  %v2501_v15 = vpop.f32.mrb[2].mxu0  ;;  %v4673_v9 = vld [vmem:[%s6707_s5 + $0x100] ss:$8 sps:$4 sm:$0xff]  }
 0x294   : > { %v2553_v16 = vpop.f32.mrb[3].mxu1  ;;  %v2503_v17 = vpop.f32.mrb[3].mxu0 }
 0x295   : > { %v4681_v16 = vld [vmem:[%s6707_s5 + $0x114] ss:$8 sps:$4 sm:$0xff]  }
 0x299   : > { %v6580_v18 = vpop.f32.mrb[4].mxu1  ;;  %v2507_v20 = vpop.f32.mrb[4].mxu0 }
 0x29a   : > { %v2558_v60 = vpop.f32.mrb[5].mxu1  ;;  %v2509_v21 = vpop.f32.mrb[5].mxu0 }
 0x29b   : > { %v2559_v22 = vpop.f32.mrb[6].mxu1  ;;  %v2511_v23 = vpop.f32.mrb[6].mxu0  ;;  %v4676_v60 = vld [vmem:[%s6706_s4 + $0x110] ss:$8 sps:$4 sm:$0xff]  }
 0x29c   : > { %v2560_v28 = vpop.f32.mrb[7].mxu1  ;;  %v2512_v3 = vpop.f32.mrb[7].mxu0 }
 0x29d   : > { %v4684_v28 = vld [vmem:[%s6706_s4 + $0x124] ss:$8 sps:$4 sm:$0xff]  }
 0x29e   : > { %v4687_v3 = vld [vmem:[%s6707_s5 + $0x124] ss:$8 sps:$4 sm:$0xff]  }
 0x2c1   : > { %v2675_v32 = vpop.f32.mrb[8].mxu1  ;;  %v2624_v35 = vpop.f32.mrb[8].mxu0 }
 0x2c2   : > { %v2700_v34 = vmax.f32 %v2548_v7, %v2675_v32  ;;  %v2677_v36 = vpop.f32.mrb[9].mxu1  ;;  %v2698_v38 = vmax.f32 %v2497_v8, %v2624_v35  ;;  %v2626_v39 = vpop.f32.mrb[9].mxu0  ;;  %v4670_v8 = vld [vmem:[%s6706_s4 + $0x100] ss:$8 sps:$4 sm:$0xff]   ;;  %v4691_v32 = vld [vmem:[%s6707_s5 + $0x130] ss:$8 sps:$4 sm:$0xff]  }
 0x2c3   : > { %v2678_v40 = vpop.f32.mrb[10].mxu1  ;;  %v2699_v41 = vmax.f32 %v2499_v10, %v2626_v39  ;;  %v2628_v44 = vpop.f32.mrb[10].mxu0  ;;  %v4694_v35 = vld [vmem:[%s6706_s4 + $0x140] ss:$8 sps:$4 sm:$0xff]   ;;  %v4700_v39 = vld [vmem:[%s6706_s4 + $0x150] ss:$8 sps:$4 sm:$0xff]  }
 0x2c4   : > { %v2726_v42 = vadd.f32 %v6585_v31, %v2700_v34  ;;  %v2703_v43 = vmax.f32 %v2551_v13, %v2678_v40  ;;  %v2680_v45 = vpop.f32.mrb[11].mxu1  ;;  %v2724_v46 = vadd.f32 %v2712_v33, %v2698_v38  ;;  %v2701_v48 = vmax.f32 %v2501_v15, %v2628_v44  ;;  %v2630_v49 = vpop.f32.mrb[11].mxu0  ;;  %v4678_v15 = vld [vmem:[%s6706_s4 + $0x114] ss:$8 sps:$4 sm:$0xff]   ;;  %v4699_v34 = vld [vmem:[%s6707_s5 + $0x144] ss:$8 sps:$4 sm:$0xff]  }
 0x2c5   : > { %v2725_v50 = vadd.f32 %v2716_v37, %v2699_v41  ;;  %v2702_v52 = vmax.f32 %v2503_v17, %v2630_v49  ;;  %v4697_v36 = vld [vmem:[%s6707_s5 + $0x140] ss:$8 sps:$4 sm:$0xff]   ;;  %v4705_v38 = vld [vmem:[%s6707_s5 + $0x154] ss:$8 sps:$4 sm:$0xff]   ;;  %v4703_v40 = vld [vmem:[%s6707_s5 + $0x150] ss:$8 sps:$4 sm:$0xff]  }
 0x2c6   : > { %v2729_v51 = vadd.f32 %v6585_v31, %v2703_v43  ;;  %v2727_v53 = vadd.f32 %v2712_v33, %v2701_v48  ;;  %v2735_v56 = vmax.f32 %v2726_v42, 0.0  ;;  %v2733_v61 = vmax.f32 %v2724_v46, 0.0  ;;  %v4708_v42 = vld [vmem:[%s6706_s4 + $0x164] ss:$8 sps:$4 sm:$0xff]   ;;  %v4706_v43 = vld [vmem:[%s6706_s4 + $0x160] ss:$8 sps:$4 sm:$0xff]  }
 0x2c7   : > { %v2728_v59 = vadd.f32 %v2716_v37, %v2702_v52  ;;  %v2734_v25 = vmax.f32 %v2725_v50, 0.0  ;;  %v4711_v41 = vld [vmem:[%s6707_s5 + $0x164] ss:$8 sps:$4 sm:$0xff]   ;;  %v4709_v44 = vld [vmem:[%s6707_s5 + $0x160] ss:$8 sps:$4 sm:$0xff]  }
 0x2c8   : > { %v2738_v58 = vmax.f32 %v2729_v51, 0.0  ;;  %v2736_v62 = vmax.f32 %v2727_v53, 0.0  ;;  %v4714_v45 = vld [vmem:[%s6706_s4 + $0x174] ss:$8 sps:$4 sm:$0xff]   ;;  %v4712_v48 = vld [vmem:[%s6706_s4 + $0x170] ss:$8 sps:$4 sm:$0xff]  }
 0x2c9   : > { %v6589_v63 = vpop.f32.mrb[12].mxu1  ;;  %v2737_v47 = vmax.f32 %v2728_v59, 0.0  ;;  %v2634_v55 = vpop.f32.mrb[12].mxu0  ;;  %v4717_v46 = vld [vmem:[%s6707_s5 + $0x174] ss:$8 sps:$4 sm:$0xff]  }
 0x2ca   : > { %v6591_v26 = vpack.c.bf16 %v2738_v58, %v2735_v56  ;;  %v2706_v54 = vmax.f32 %v6580_v18, %v6589_v63  ;;  %v2685_v0 = vpop.f32.mrb[13].mxu1  ;;  %v2742_v19 = vpack.c.bf16 %v2736_v62, %v2733_v61  ;;  %v2704_v57 = vmax.f32 %v2507_v20, %v2634_v55  ;;  %v2636_v2 = vpop.f32.mrb[13].mxu0  ;;  %v4715_v49 = vld [vmem:[%s6707_s5 + $0x170] ss:$8 sps:$4 sm:$0xff]  }
 0x2cb   : > { %v2686_v4 = vpop.f32.mrb[14].mxu1  ;;  %v2705_v5 = vmax.f32 %v2509_v21, %v2636_v2  ;;  %v2638_v6 = vpop.f32.mrb[14].mxu0  ;;  %v2743_v7 = vpack.c.bf16 %v2737_v47, %v2734_v25  ;;  %v4679_v21 = vld [vmem:[%s6707_s5 + $0x110] ss:$8 sps:$4 sm:$0xff]  }
 0x2cc   : > { %v2687_v12 = vpop.f32.mrb[15].mxu1  ;;  %v2730_v10 = vadd.f32 %v2712_v33, %v2704_v57  ;;  %v2639_v13 = vpop.f32.mrb[15].mxu0  ;;  %v4696_v33 = vld [vmem:[%s6706_s4 + $0x144] ss:$8 sps:$4 sm:$0xff]   ;;  %v2732_v50 = vadd.f32 %v6585_v31, %v2706_v54 }
 0x2cd   : > { %v2731_v17 = vadd.f32 %v2716_v37, %v2705_v5  ;;  %3068 = vmatprep.mubr.bf16.mxu0 %v2743_v7  ;;  %3458 = vmatprep.mubr.bf16.mxu1 %v2743_v7  ;;  %v4702_v37 = vld [vmem:[%s6706_s4 + $0x154] ss:$8 sps:$4 sm:$0xff]  }
 0x2ce   : > { %3069 = vmatmul.mubr.bf16.vlgmr.msra.gmra.mrb[16].mxu0 %v2742_v19  ;;  %3459 = vmatmul.mubr.bf16.vlgmr.msra.gmra.mrb[16].mxu1 %v2742_v19  ;;  %v2739_v22 = vmax.f32 %v2730_v10, 0.0  ;;  %v2741_v51 = vmax.f32 %v2732_v50, 0.0 }
 0x2cf   : > { %v2740_v20 = vmax.f32 %v2731_v17, 0.0  ;;  %3088 = vmatpush1.bf16.msra.mxu0 %v4670_v8  ;;  %3478 = vmatpush1.bf16.msra.mxu1 %v4673_v9 }
 0x2d0   : > { %3089 = vmatprep.subr.bf16.mxu0 %v4678_v15  ;;  %3479 = vmatprep.subr.bf16.mxu1 %v4681_v16  ;;  %v2745_v14 = vpack.c.bf16 %v2739_v22, %v2739_v22  ;;  %v2747_v52 = vpack.c.bf16 %v2741_v51, %v2741_v51 }
 0x2d1   : > { %v2746_v23 = vpack.c.bf16 %v2740_v20, %v2740_v20 }
 0x2d3   : > { %3090 = vmatpush1.bf16.msra.mxu0 %v4676_v60  ;;  %3480 = vmatpush1.bf16.msra.mxu1 %v4679_v21 }
 0x2d4   : > { %3078 = vmatprep.mubr.bf16.mxu0 %v2746_v23  ;;  %3468 = vmatprep.mubr.bf16.mxu1 %v2746_v23 }
 0x2d5   : > { %3091 = vmatprep.subr.bf16.mxu0 %v4684_v28  ;;  %3481 = vmatprep.subr.bf16.mxu1 %v4687_v3 }
 0x2d6   : > { %3079 = vmatmul.mubr.bf16.gmra.mrb[20].mxu0 %v2745_v14  ;;  %3469 = vmatmul.mubr.bf16.gmra.mrb[20].mxu1 %v2745_v14 }
 0x2d7   : > { %3092 = vmatpush1.bf16.msra.mxu0 %v4682_v24  ;;  %3482 = vmatpush1.bf16.msra.mxu1 %v4685_v11 }
 0x2d8   : > { %3093 = vmatprep.subr.bf16.mxu0 %v4690_v27  ;;  %3483 = vmatprep.subr.bf16.mxu1 %v4693_v29 }
 0x2d9   : > { %3119 = vmatprep.mubr.bf16.mxu0 %v4728_v1  ;;  %3509 = vmatprep.mubr.bf16.mxu1 %v4728_v1 }
 0x2db   : > { %3094 = vmatpush1.bf16.msra.mxu0 %v4688_v30  ;;  %3484 = vmatpush1.bf16.msra.mxu1 %v4691_v32 }
 0x2dc   : > { %3095 = vmatprep.subr.bf16.mxu0 %v4696_v33  ;;  %3485 = vmatprep.subr.bf16.mxu1 %v4699_v34 }
 0x2df   : > { %3096 = vmatpush1.bf16.msra.mxu0 %v4694_v35  ;;  %3486 = vmatpush1.bf16.msra.mxu1 %v4697_v36 }
 0x2e0   : > { %3097 = vmatprep.subr.bf16.mxu0 %v4702_v37  ;;  %3487 = vmatprep.subr.bf16.mxu1 %v4705_v38 }
 0x2e3   : > { %3098 = vmatpush1.bf16.msra.mxu0 %v4700_v39  ;;  %3488 = vmatpush1.bf16.msra.mxu1 %v4703_v40 }
 0x2e4   : > { %3099 = vmatprep.subr.bf16.mxu0 %v4708_v42  ;;  %3489 = vmatprep.subr.bf16.mxu1 %v4711_v41 }
 0x2e7   : > { %3100 = vmatpush1.bf16.msra.mxu0 %v4706_v43  ;;  %3490 = vmatpush1.bf16.msra.mxu1 %v4709_v44 }
 0x2e8   : > { %3101 = vmatprep.subr.bf16.mxu0 %v4714_v45  ;;  %3491 = vmatprep.subr.bf16.mxu1 %v4717_v46 }
 0x2eb   : > { %3102 = vmatpush1.bf16.msra.mxu0 %v4712_v48  ;;  %3492 = vmatpush1.bf16.msra.mxu1 %v4715_v49 }
 0x2ee   : > { %3120 = vmatmul.mubr.bf16.vlgmr.msra.gmra.mrb[16].mxu0 %v6591_v26  ;;  %3510 = vmatmul.mubr.bf16.vlgmr.msra.gmra.mrb[16].mxu1 %v6591_v26 }
 0x2ef   : > { %3129 = vmatprep.mubr.bf16.mxu0 %v4728_v1  ;;  %3519 = vmatprep.mubr.bf16.mxu1 %v4728_v1 }
 0x2f6   : > { %3130 = vmatmul.mubr.bf16.gmra.mrb[20].mxu0 %v2747_v52  ;;  %3520 = vmatmul.mubr.bf16.gmra.mrb[20].mxu1 %v2747_v52 }
 0x3c1   : > { %v3121_v53 = vpop.f32.mrb[16].mxu0  ;;  %v3511_v56 = vpop.f32.mrb[16].mxu1 }
 0x3c2   : > { %v3528_v58 = vmax.f32 %v3121_v53, %v3511_v56  ;;  %v3123_v59 = vpop.f32.mrb[17].mxu0  ;;  %v3513_v18 = vpop.f32.mrb[17].mxu1 }
 0x3c3   : > { %v3529_v61 = vmax.f32 %v3123_v59, %v3513_v18  ;;  %v3125_v31 = vpop.f32.mrb[18].mxu0  ;;  %v3515_v62 = vpop.f32.mrb[18].mxu1 }
 0x3c4   : > { %v3530_v63 = vmax.f32 %v3125_v31, %v3515_v62  ;;  %v3127_v25 = vpop.f32.mrb[19].mxu0  ;;  %v3517_v26 = vpop.f32.mrb[19].mxu1 }
 0x3c5   : > { %v4161_v1 = vpack.c.bf16 %v3529_v61, %v3528_v58  ;;  %v3531_v47 = vmax.f32 %v3127_v25, %v3517_v26 }
 0x3c7   : > { %3554 = vst [vmem:[%s271_s13] sm:$0xff] %v4161_v1  ;;  %v4162_v54 = vpack.c.bf16 %v3531_v47, %v3530_v63 }
 0x3c9   : > { %3555 = vst [vmem:[%s271_s13 + $0x8] sm:$0xff] %v4162_v54  ;;  %v3131_v55 = vpop.f32.mrb[20].mxu0  ;;  %v3521_v0 = vpop.f32.mrb[20].mxu1 }
 0x3ca   : > { %v3532_v19 = vmax.f32 %v3131_v55, %v3521_v0  ;;  %v3133_v57 = vpop.f32.mrb[21].mxu0  ;;  %v3523_v2 = vpop.f32.mrb[21].mxu1 }
 0x3cb   : > { %v3533_v4 = vmax.f32 %v3133_v57, %v3523_v2  ;;  %v3135_v5 = vpop.f32.mrb[22].mxu0  ;;  %v3525_v6 = vpop.f32.mrb[22].mxu1 }
 0x3cc   : > { %v3136_v12 = vpop.f32.mrb[23].mxu0  ;;  %v3526_v7 = vpop.f32.mrb[23].mxu1 }
 0x3cd   : > { %v4163_v8 = vpack.c.bf16 %v3533_v4, %v3532_v19 }
 0x3cf   : > { %3556 = vst [vmem:[%s271_s13 + $0x10] sm:$0x77] %v4163_v8 }
 0x3d0 PF: > { %s16_s21 = sadd.s32 1, %s4726_s21  }
 0x3d1   : > { %p13_p4 = scmp.ge.s32.totalorder %s16_s21, 4  }
 0x3d3   :  { %15 = sbr.rel (!%p13_p4) target bundleno = 1 (0x1), region = 81 }

// kernel: lenet5_forward.4
= control target key start
LH: loop header
LB: loop body
LE: loop exit
PB: predicated region body
PF: predicated region fallthrough
CT: control target
= control target key end

     0   :  { %s5131_s21 = smov 0   ;;  %s7052_s0 = inlined_call_operand.vmem [shape: bf16[2,11,256], index: 0, kind: input, shape index: {}]   ;;  %s7053_s1 = inlined_call_operand.vmem [shape: bf16[2,11,256], index: 1, kind: input, shape index: {}]   ;;  %s7054_s2 = inlined_call_operand.vmem [shape: bf16[5,256,384], index: 2, kind: input, shape index: {}]   ;;  %s7055_s3 = inlined_call_operand.vmem [shape: f32[1,384], index: 3, kind: input, shape index: {}]   ;;  %s7056_s4 = inlined_call_operand.vmem [shape: bf16[384,144], index: 4, kind: input, shape index: {}]   ;;  %s7057_s5 = inlined_call_operand.vmem [shape: bf16[384,144], index: 5, kind: input, shape index: {}]   ;;  %s7058_s6 = inlined_call_operand.vmem [shape: bf16[2,9,144], index: 6, kind: output, shape index: {}]  }
   0x1 LB: > { %s3720_s22 = sadd.s32 4294967295, %s5093_s21   ;;  %p3724_p0 = scmp.ge.s32.totalorder %s5093_s21, 1  ;;  %s5093_s21 = sphi %s5131_s21, %s16_s21  }
   0x2   : > { %p222_p1 = scmp.lt.s32.totalorder %s5093_s21, 3 }
   0x4   : > { %p223_p2 = pnand %p3724_p0, %p222_p1 }
   0x6   : > { %226 = sbr.rel (%p223_p2) target bundleno = 972 (0x3cc), region = 44 }
   0xd   : > { %v5142_v0 = vld [vmem:[%s7054_s2 + $0x184] ss:$12 sps:$4 sm:$0xff]   ;;  %v5147_v1 = vld [vmem:[%s7054_s2 + $0x248] ss:$12 sps:$4 sm:$0xff]   ;;  %v5153_v2 = vld [vmem:[%s7054_s2 + $0x180] ss:$12 sps:$4 sm:$0xff]  }
   0xe   : > { %672 = vmatprep.subr.bf16.mxu0 %v5142_v0  ;;  %4340 = vmatprep.subr.bf16.mxu1 %v5147_v1  ;;  %v5159_v3 = vld [vmem:[%s7054_s2 + $0x188] ss:$12 sps:$4 sm:$0xff]   ;;  %v5171_v5 = vld [vmem:[%s7054_s2 + $0x260] ss:$12 sps:$4 sm:$0xff]   ;;  %v5176_v6 = vld [vmem:[%s7054_s2 + $0x198] ss:$12 sps:$4 sm:$0xff]  }
   0xf   : > { %673 = vmatpush1.bf16.msra.mxu0 %v5153_v2  ;;  %v5165_v4 = vld [vmem:[%s7054_s2 + $0x19c] ss:$12 sps:$4 sm:$0xff]   ;;  %4341 = vmatpush3.bf16.msra.mxu1 %v5159_v3  ;;  %v5182_v7 = vld [vmem:[%s7054_s2 + $0x1a0] ss:$12 sps:$4 sm:$0xff]   ;;  %v5194_v9 = vld [vmem:[%s7054_s2 + $0x278] ss:$12 sps:$4 sm:$0xff]  }
  0x10   : > { %674 = vmatprep.subr.bf16.mxu0 %v5165_v4  ;;  %4342 = vmatprep.subr.bf16.mxu1 %v5171_v5  ;;  %v5188_v8 = vld [vmem:[%s7054_s2 + $0x1b4] ss:$12 sps:$4 sm:$0xff]   ;;  %v5199_v10 = vld [vmem:[%s7054_s2 + $0x1b0] ss:$12 sps:$4 sm:$0xff]   ;;  %v5206_v11 = vld [vmem:[%s7054_s2 + $0x1b8] ss:$12 sps:$4 sm:$0xff]  }
  0x11   : > { %v5212_v12 = vld [vmem:[%s7054_s2 + $0x1cc] ss:$12 sps:$4 sm:$0xff]   ;;  %p257_p3 = scmp.lt.s32.totalorder %s3720_s22, 1  ;;  %v5219_v13 = vld [vmem:[%s7054_s2 + $0x290] ss:$12 sps:$4 sm:$0xff]   ;;  %vm3643_vm0 = vcmask 1040384  }
  0x12   : > { %v5225_v14 = vld [vmem:[%s7054_s2 + $0x1c8] ss:$12 sps:$4 sm:$0xff]   ;;  %v5232_v15 = vld [vmem:[%s7054_s2 + $0x1d0] ss:$12 sps:$4 sm:$0xff]   ;;  %v5248_v18 = vld [vmem:[%s7054_s2 + $0x1e0] ss:$12 sps:$4 sm:$0xff]  }
  0x13   : > { %675 = vmatpush1.bf16.msra.mxu0 %v5176_v6  ;;  %4343 = vmatpush3.bf16.msra.mxu1 %v5182_v7  ;;  %v5238_v16 = vld [vmem:[%s7054_s2 + $0x1e4] ss:$12 sps:$4 sm:$0xff]   ;;  %v5243_v17 = vld [vmem:[%s7054_s2 + $0x2a8] ss:$12 sps:$4 sm:$0xff]   ;;  %s7095_s22 = smov (!%p257_p3, %s3720_s22), 1  ;;  %vm3646_vm2 = vcmask 126980  }
  0x14   : > { %676 = vmatprep.subr.bf16.mxu0 %v5188_v8  ;;  %4344 = vmatprep.subr.bf16.mxu1 %v5194_v9  ;;  %v5254_v19 = vld [vmem:[%s7054_s2 + $0x1e8] ss:$12 sps:$4 sm:$0xff]   ;;  %v5269_v21 = vld [vmem:[%s7054_s2 + $0x2c0] ss:$12 sps:$4 sm:$0xff]   ;;  %v5274_v22 = vld [vmem:[%s7054_s2 + $0x1f8] ss:$12 sps:$4 sm:$0xff]  }
  0x15   : > { %v5263_v20 = vld [vmem:[%s7054_s2 + $0x1fc] ss:$12 sps:$4 sm:$0xff]   ;;  %v5280_v23 = vld [vmem:[%s7054_s2 + $0x200] ss:$12 sps:$4 sm:$0xff]   ;;  %s5282_s27 = sshll.u32 %s7095_s22, 4  ;;  %vm3639_vm4 = vcmask 1043456  }
  0x16   : > { %v5289_v24 = vld [vmem:[%s7054_s2 + $0x214] ss:$12 sps:$4 sm:$0xff]   ;;  %v5295_v25 = vld [vmem:[%s7054_s2 + $0x2d8] ss:$12 sps:$4 sm:$0xff]   ;;  %v5301_v26 = vld [vmem:[%s7054_s2 + $0x210] ss:$12 sps:$4 sm:$0xff]   ;;  %s5307_s11 = scalar_lea.vmem %s7053_s1, %s5282_s27  ;;  %s5490_s7 = scalar_lea.vmem %s7052_s0, %s5282_s27 }
  0x17   : > { %677 = vmatpush1.bf16.msra.mxu0 %v5199_v10  ;;  %4345 = vmatpush3.bf16.msra.mxu1 %v5206_v11  ;;  %v5314_v27 = vld [vmem:[%s7054_s2 + $0x218] ss:$12 sps:$4 sm:$0xff]   ;;  %v5325_v29 = vld [vmem:[%s7054_s2 + $0x2f0] ss:$12 sps:$4 sm:$0xff]   ;;  %v5334_v31 = vld [vmem:[%s7054_s2 + $0x228] ss:$12 sps:$4 sm:$0xff]   ;;  %s271_s10 = scalar_lea.vmem %s7058_s6, %s5282_s27 }
  0x18   : > { %678 = vmatprep.subr.bf16.mxu0 %v5212_v12  ;;  %4346 = vmatprep.subr.bf16.mxu1 %v5219_v13  ;;  %v5319_v28 = vld [vmem:[%s7054_s2 + $0x22c] ss:$12 sps:$4 sm:$0xff]   ;;  %v5339_v32 = vld [vmem:[%s7054_s2 + $0x230] ss:$12 sps:$4 sm:$0xff]   ;;  %v5353_v34 = vld [vmem:[%s7054_s2 + $0xc8] ss:$12 sps:$4 sm:$0xff]  }
  0x19   : > { %v5328_v30 = vld [vmem:[%s5307_s11 + $0x4] ss:$8 sps:$4 sm:$0x1f]   ;;  %v5356_v35 = vld [vmem:[%s5307_s11] ss:$8 sps:$4 sm:$0x1f]  }
  0x1a   : > { %v5346_v33 = vld [vmem:[%s7054_s2 + $0x244] ss:$12 sps:$4 sm:$0xff]   ;;  %747 = vmatprep.mubr.bf16.mxu1 %v5328_v30  ;;  %704 = vmatprep.mubr.bf16.mxu0 %v5328_v30  ;;  %v5363_v36 = vld [vmem:[%s7054_s2 + $0x240] ss:$12 sps:$4 sm:$0xff]   ;;  %v5370_v37 = vld [vmem:[%s7054_s2 + $0x8] ss:$12 sps:$4 sm:$0xff]  }
  0x1b   : > { %679 = vmatpush1.bf16.msra.mxu0 %v5225_v14  ;;  %4347 = vmatpush3.bf16.msra.mxu1 %v5232_v15  ;;  %v5375_v38 = vld [vmem:[%s7054_s2 + $0x25c] ss:$12 sps:$4 sm:$0xff]   ;;  %v5381_v39 = vld [vmem:[%s7054_s2 + $0xe0] ss:$12 sps:$4 sm:$0xff]   ;;  %v5388_v40 = vld [vmem:[%s7054_s2 + $0x258] ss:$12 sps:$4 sm:$0xff]  }
  0x1c   : > { %680 = vmatprep.subr.bf16.mxu0 %v5238_v16  ;;  %4348 = vmatprep.subr.bf16.mxu1 %v5243_v17  ;;  %v5393_v41 = vld [vmem:[%s7054_s2 + $0x20] ss:$12 sps:$4 sm:$0xff]   ;;  %v5406_v43 = vld [vmem:[%s7054_s2 + $0xf8] ss:$12 sps:$4 sm:$0xff]   ;;  %v5411_v44 = vld [vmem:[%s7054_s2 + $0x270] ss:$12 sps:$4 sm:$0xff]  }
  0x1d   : > { %v5400_v42 = vld [vmem:[%s7054_s2 + $0x274] ss:$12 sps:$4 sm:$0xff]   ;;  %7070 = vst [vmem:[#allocation2_spill] sm:$0xff] %v5406_v43  ;;  %v5417_v45 = vld [vmem:[%s7054_s2 + $0x38] ss:$12 sps:$4 sm:$0xff]   ;;  %vm3640_vm5 = vcmask 130052  }
  0x1e   : > { %7071 = vst [vmem:[#allocation3_spill] sm:$0xff] %v5417_v45  ;;  %v5424_v46 = vld [vmem:[%s7054_s2 + $0x28c] ss:$12 sps:$4 sm:$0xff]   ;;  %v5430_v47 = vld [vmem:[%s7054_s2 + $0x110] ss:$12 sps:$4 sm:$0xff]   ;;  %vm3641_vm8 = vmor %vm3640_vm5, %vm3639_vm4 }
  0x1f   : > { %681 = vmatpush1.bf16.msra.mxu0 %v5248_v18  ;;  %4349 = vmatpush3.bf16.msra.mxu1 %v5254_v19  ;;  %7072 = vst [vmem:[#allocation4_spill] sm:$0xff] %v5430_v47  ;;  %v5435_v48 = vld [vmem:[%s7054_s2 + $0x288] ss:$12 sps:$4 sm:$0xff]   ;;  %v5441_v49 = vld [vmem:[%s7054_s2 + $0x50] ss:$12 sps:$4 sm:$0xff]  }
  0x20   : > { %682 = vmatprep.subr.bf16.mxu0 %v5263_v20  ;;  %4350 = vmatprep.subr.bf16.mxu1 %v5269_v21  ;;  %7073 = vst [vmem:[#allocation5_spill] sm:$0xff] %v5441_v49  ;;  %v5448_v50 = vld [vmem:[%s7054_s2 + $0x2a4] ss:$12 sps:$4 sm:$0xff]   ;;  %v5454_v51 = vld [vmem:[%s7054_s2 + $0x128] ss:$12 sps:$4 sm:$0xff]  }
  0x21   : > { %7074 = vst [vmem:[#allocation6_spill] sm:$0xff] %v5454_v51  ;;  %v5459_v52 = vld [vmem:[%s7054_s2 + $0x2a0] ss:$12 sps:$4 sm:$0xff]   ;;  %v5465_v53 = vld [vmem:[%s7054_s2 + $0x68] ss:$12 sps:$4 sm:$0xff]  }
  0x22   : > { %7075 = vst [vmem:[#allocation7_spill] sm:$0xff] %v5465_v53  ;;  %v5472_v54 = vld [vmem:[%s7054_s2 + $0x2bc] ss:$12 sps:$4 sm:$0xff]   ;;  %v5478_v55 = vld [vmem:[%s7054_s2 + $0x140] ss:$12 sps:$4 sm:$0xff]  }
  0x23   : > { %683 = vmatpush1.bf16.msra.mxu0 %v5274_v22  ;;  %4351 = vmatpush3.bf16.msra.mxu1 %v5280_v23  ;;  %7076 = vst [vmem:[#allocation8_spill] sm:$0xff] %v5478_v55  ;;  %v5484_v56 = vld [vmem:[%s7054_s2 + $0x2b8] ss:$12 sps:$4 sm:$0xff]   ;;  %v5497_v57 = vld [vmem:[%s7054_s2 + $0x80] ss:$12 sps:$4 sm:$0xff]  }
  0x24   : > { %684 = vmatprep.subr.bf16.mxu0 %v5289_v24  ;;  %4352 = vmatprep.subr.bf16.mxu1 %v5295_v25  ;;  %7077 = vst [vmem:[#allocation9_spill] sm:$0xff] %v5497_v57  ;;  %v5502_v58 = vld [vmem:[%s7054_s2 + $0x2d4] ss:$12 sps:$4 sm:$0xff]   ;;  %v5508_v59 = vld [vmem:[%s7054_s2 + $0x158] ss:$12 sps:$4 sm:$0xff]  }
  0x25   : > { %7078 = vst [vmem:[#allocation10_spill] sm:$0xff] %v5508_v59  ;;  %v4692_v60 = vld [vmem:[%s5490_s7 + $0x4] ss:$8 sps:$4 sm:$0x1f]   ;;  %v5515_v61 = vld [vmem:[%s7054_s2 + $0x2d0] ss:$12 sps:$4 sm:$0xff]  }
  0x26   : > { %v5520_v62 = vld [vmem:[%s7054_s2 + $0x98] ss:$12 sps:$4 sm:$0xff]   ;;  %vm3644_vm1 = vsmask.f32 256  ;;  %vm3647_vm3 = vsmask.f32 4352 }
  0x27   : > { %685 = vmatpush1.bf16.msra.mxu0 %v5301_v26  ;;  %4353 = vmatpush3.bf16.msra.mxu1 %v5314_v27  ;;  %7079 = vst [vmem:[#allocation11_spill] sm:$0xff] %v5520_v62  ;;  %v5527_v63 = vld [vmem:[%s7054_s2 + $0x2ec] ss:$12 sps:$4 sm:$0xff]   ;;  %vm7039_vm6 = vmand %vm3643_vm0, %vm3644_vm1 }
  0x28   : > { %686 = vmatprep.subr.bf16.mxu0 %v5319_v28  ;;  %4354 = vmatprep.subr.bf16.mxu1 %v5325_v29  ;;  %vm3648_vm7 = vmand %vm3646_vm2, %vm3647_vm3 }
  0x29   : > { %vm3649_vm9 = vmor %vm3648_vm7, %vm7039_vm6 }
  0x2b   : > { %687 = vmatpush1.bf16.msra.mxu0 %v5334_v31  ;;  %4355 = vmatpush3.bf16.msra.mxu1 %v5339_v32 }
  0x2c   : > { %688 = vmatprep.subr.bf16.mxu0 %v5346_v33  ;;  %4362 = vmatprep.subr.bf16.mxu1 %v5353_v34 }
  0x2e   : > { %748 = vmatmul.mubr.bf16.vlgmr.msra.gmra.mrb[0].mxu1 %v5356_v35 }
  0x2f   : > { %689 = vmatpush1.bf16.msra.mxu0 %v5363_v36  ;;  %4363 = vmatpush3.bf16.msra.mxu1 %v5370_v37 }
  0x30   : > { %690 = vmatprep.subr.bf16.mxu0 %v5375_v38  ;;  %4364 = vmatprep.subr.bf16.mxu1 %v5381_v39 }
  0x31   : > { %1097 = vmatprep.mubr.bf16.mxu1 %v4692_v60 }
  0x33   : > { %691 = vmatpush1.bf16.msra.mxu0 %v5388_v40  ;;  %4365 = vmatpush3.bf16.msra.mxu1 %v5393_v41 }
  0x34   : > { %692 = vmatprep.subr.bf16.mxu0 %v5400_v42  ;;  %4366 = vmatprep.subr.bf16.mxu1 %v5406_v43  ;;  %v5561_v43 = vld [vmem:[%s5490_s7] ss:$8 sps:$4 sm:$0x1f]  }
  0x37   : > { %693 = vmatpush1.bf16.msra.mxu0 %v5411_v44  ;;  %4367 = vmatpush3.bf16.msra.mxu1 %v5417_v45 }
  0x38   : > { %694 = vmatprep.subr.bf16.mxu0 %v5424_v46  ;;  %4368 = vmatprep.subr.bf16.mxu1 %v5430_v47  ;;  %v1114_v47 = vshrl.u32 %v4692_v60, 16 }
  0x3b   : > { %695 = vmatpush1.bf16.msra.mxu0 %v5435_v48  ;;  %4369 = vmatpush3.bf16.msra.mxu1 %v5441_v49  ;;  %v5557_v49 = vld [vmem:[%s7054_s2] ss:$12 sps:$4 sm:$0xff]  }
  0x3c   : > { %696 = vmatprep.subr.bf16.mxu0 %v5448_v50  ;;  %4370 = vmatprep.subr.bf16.mxu1 %v5454_v51  ;;  %v5544_v51 = vld [vmem:[%s7054_s2 + $0xb0] ss:$12 sps:$4 sm:$0xff]  }
  0x3f   : > { %697 = vmatpush1.bf16.msra.mxu0 %v5459_v52  ;;  %4371 = vmatpush3.bf16.msra.mxu1 %v5465_v53  ;;  %v1116_v53 = vshll.u32 %v4692_v60, 16 }
  0x40   : > { %698 = vmatprep.subr.bf16.mxu0 %v5472_v54  ;;  %4372 = vmatprep.subr.bf16.mxu1 %v5478_v55  ;;  %v5533_v55 = vld [vmem:[%s7054_s2 + $0x170] ss:$12 sps:$4 sm:$0xff]  }
  0x41   : > { %7080 = vst [vmem:[#allocation12_spill] sm:$0xff] %v5533_v55  ;;  %v1118_v45 = vrot.slane %v1116_v53, 1  ;;  %v5579_v53 = vld [vmem:[%s7054_s2 + $0x18] ss:$12 sps:$4 sm:$0xff]  }
  0x43   : > { %699 = vmatpush1.bf16.msra.mxu0 %v5484_v56  ;;  %4373 = vmatpush3.bf16.msra.mxu1 %v5497_v57  ;;  %v5538_v57 = vld [vmem:[%s7054_s2 + $0x2e8] ss:$12 sps:$4 sm:$0xff]  }
  0x44   : > { %700 = vmatprep.subr.bf16.mxu0 %v5502_v58  ;;  %4374 = vmatprep.subr.bf16.mxu1 %v5508_v59  ;;  %v5551_v59 = vld [vmem:[%s7054_s2 + $0x4] ss:$12 sps:$4 sm:$0xff]  }
  0x47   : > { %701 = vmatpush1.bf16.msra.mxu0 %v5515_v61  ;;  %4375 = vmatpush3.bf16.msra.mxu1 %v5520_v62  ;;  %v5568_v62 = vld [vmem:[%s7054_s2 + $0x1c] ss:$12 sps:$4 sm:$0xff]  }
  0x48   : > { %702 = vmatprep.subr.bf16.mxu0 %v5527_v63  ;;  %4376 = vmatprep.subr.bf16.mxu1 %v5533_v55  ;;  %v5572_v55 = vor.u32 %v1118_v45, %v1114_v47  ;;  %v5747_v45 = vld [vmem:[%s7054_s2 + $0x138] ss:$12 sps:$4 sm:$0xff]   ;;  %v5761_v47 = vld [vmem:[%s7054_s2 + $0x150] ss:$12 sps:$4 sm:$0xff]  }
  0x4b   : > { %703 = vmatpush1.bf16.msra.mxu0 %v5538_v57  ;;  %4377 = vmatpush3.bf16.msra.mxu1 %v5544_v51 }
  0x4c   : > { %1022 = vmatprep.subr.bf16.mxu0 %v5551_v59  ;;  %1122 = vmatprep.subr.bf16.mxu1 %v5142_v0  ;;  %v5586_v0 = vld [vmem:[%s7054_s2 + $0x34] ss:$12 sps:$4 sm:$0xff]  }
  0x4e   : > { %705 = vmatmul.mubr.bf16.vlgmr.msra.gmra.mrb[0].mxu0 %v5356_v35  ;;  %1098 = vmatmul.mubr.bf16.vlgmr.msra.gmra.mrb[4].mxu1 %v5561_v43  ;;  %v5594_v35 = vld [vmem:[%s7054_s2 + $0x30] ss:$12 sps:$4 sm:$0xff]  }
  0x4f   : > { %1023 = vmatpush1.bf16.msra.mxu0 %v5557_v49  ;;  %1123 = vmatpush1.bf16.msra.mxu1 %v5153_v2  ;;  %v5601_v2 = vld [vmem:[%s7054_s2 + $0x4c] ss:$12 sps:$4 sm:$0xff]  }
  0x50   : > { %1024 = vmatprep.subr.bf16.mxu0 %v5568_v62  ;;  %1124 = vmatprep.subr.bf16.mxu1 %v5165_v4  ;;  %v5608_v4 = vld [vmem:[%s7054_s2 + $0x48] ss:$12 sps:$4 sm:$0xff]  }
  0x51   : > { %1054 = vmatprep.mubr.bf16.mxu0 %v4692_v60  ;;  %1154 = vmatprep.mubr.bf16.mxu1 %v5572_v55 }
  0x53   : > { %1025 = vmatpush1.bf16.msra.mxu0 %v5579_v53  ;;  %1125 = vmatpush1.bf16.msra.mxu1 %v5176_v6  ;;  %v5615_v6 = vld [vmem:[%s7054_s2 + $0x64] ss:$12 sps:$4 sm:$0xff]  }
  0x54   : > { %1026 = vmatprep.subr.bf16.mxu0 %v5586_v0  ;;  %1126 = vmatprep.subr.bf16.mxu1 %v5188_v8  ;;  %v5622_v8 = vld [vmem:[%s7054_s2 + $0x60] ss:$12 sps:$4 sm:$0xff]  }
  0x57   : > { %1027 = vmatpush1.bf16.msra.mxu0 %v5594_v35  ;;  %1127 = vmatpush1.bf16.msra.mxu1 %v5199_v10  ;;  %v5629_v10 = vld [vmem:[%s7054_s2 + $0x7c] ss:$12 sps:$4 sm:$0xff]  }
  0x58   : > { %1028 = vmatprep.subr.bf16.mxu0 %v5601_v2  ;;  %1128 = vmatprep.subr.bf16.mxu1 %v5212_v12  ;;  %v5636_v12 = vld [vmem:[%s7054_s2 + $0x78] ss:$12 sps:$4 sm:$0xff]  }
  0x5b   : > { %1029 = vmatpush1.bf16.msra.mxu0 %v5608_v4  ;;  %1129 = vmatpush1.bf16.msra.mxu1 %v5225_v14  ;;  %v5643_v14 = vld [vmem:[%s7054_s2 + $0x94] ss:$12 sps:$4 sm:$0xff]  }
  0x5c   : > { %1030 = vmatprep.subr.bf16.mxu0 %v5615_v6  ;;  %1130 = vmatprep.subr.bf16.mxu1 %v5238_v16  ;;  %v5650_v16 = vld [vmem:[%s7054_s2 + $0x90] ss:$12 sps:$4 sm:$0xff]  }
  0x5f   : > { %1031 = vmatpush1.bf16.msra.mxu0 %v5622_v8  ;;  %1131 = vmatpush1.bf16.msra.mxu1 %v5248_v18  ;;  %v5657_v18 = vld [vmem:[%s7054_s2 + $0xac] ss:$12 sps:$4 sm:$0xff]  }
  0x60   : > { %1032 = vmatprep.subr.bf16.mxu0 %v5629_v10  ;;  %1132 = vmatprep.subr.bf16.mxu1 %v5263_v20  ;;  %v5664_v20 = vld [vmem:[%s7054_s2 + $0xa8] ss:$12 sps:$4 sm:$0xff]  }
  0x63   : > { %1033 = vmatpush1.bf16.msra.mxu0 %v5636_v12  ;;  %1133 = vmatpush1.bf16.msra.mxu1 %v5274_v22  ;;  %v5671_v22 = vld [vmem:[%s7054_s2 + $0xc4] ss:$12 sps:$4 sm:$0xff]  }
  0x64   : > { %1034 = vmatprep.subr.bf16.mxu0 %v5643_v14  ;;  %1134 = vmatprep.subr.bf16.mxu1 %v5289_v24  ;;  %v5678_v24 = vld [vmem:[%s7054_s2 + $0xc0] ss:$12 sps:$4 sm:$0xff]  }
  0x67   : > { %1035 = vmatpush1.bf16.msra.mxu0 %v5650_v16  ;;  %1135 = vmatpush1.bf16.msra.mxu1 %v5301_v26  ;;  %v5685_v26 = vld [vmem:[%s7054_s2 + $0xdc] ss:$12 sps:$4 sm:$0xff]  }
  0x68   : > { %1036 = vmatprep.subr.bf16.mxu0 %v5657_v18  ;;  %1136 = vmatprep.subr.bf16.mxu1 %v5319_v28  ;;  %v5692_v28 = vld [vmem:[%s7054_s2 + $0xd8] ss:$12 sps:$4 sm:$0xff]  }
  0x6b   : > { %1037 = vmatpush1.bf16.msra.mxu0 %v5664_v20  ;;  %1137 = vmatpush1.bf16.msra.mxu1 %v5334_v31  ;;  %v5699_v31 = vld [vmem:[%s7054_s2 + $0xf4] ss:$12 sps:$4 sm:$0xff]  }
  0x6c   : > { %1038 = vmatprep.subr.bf16.mxu0 %v5671_v22  ;;  %1138 = vmatprep.subr.bf16.mxu1 %v5346_v33  ;;  %v5706_v33 = vld [vmem:[%s7054_s2 + $0xf0] ss:$12 sps:$4 sm:$0xff]  }
  0x6f   : > { %1039 = vmatpush1.bf16.msra.mxu0 %v5678_v24  ;;  %1139 = vmatpush1.bf16.msra.mxu1 %v5363_v36  ;;  %v5713_v36 = vld [vmem:[%s7054_s2 + $0x10c] ss:$12 sps:$4 sm:$0xff]  }
  0x70   : > { %1040 = vmatprep.subr.bf16.mxu0 %v5685_v26  ;;  %1140 = vmatprep.subr.bf16.mxu1 %v5375_v38  ;;  %v5719_v38 = vld [vmem:[%s7054_s2 + $0x108] ss:$12 sps:$4 sm:$0xff]  }
  0x73   : > { %1041 = vmatpush1.bf16.msra.mxu0 %v5692_v28  ;;  %1141 = vmatpush1.bf16.msra.mxu1 %v5388_v40  ;;  %v5727_v40 = vld [vmem:[%s7054_s2 + $0x124] ss:$12 sps:$4 sm:$0xff]  }
  0x74   : > { %1042 = vmatprep.subr.bf16.mxu0 %v5699_v31  ;;  %1142 = vmatprep.subr.bf16.mxu1 %v5400_v42  ;;  %v5733_v42 = vld [vmem:[%s7054_s2 + $0x120] ss:$12 sps:$4 sm:$0xff]  }
  0x77   : > { %1043 = vmatpush1.bf16.msra.mxu0 %v5706_v33  ;;  %1143 = vmatpush1.bf16.msra.mxu1 %v5411_v44  ;;  %v5741_v44 = vld [vmem:[%s7054_s2 + $0x13c] ss:$12 sps:$4 sm:$0xff]  }
  0x78   : > { %1044 = vmatprep.subr.bf16.mxu0 %v5713_v36  ;;  %1144 = vmatprep.subr.bf16.mxu1 %v5424_v46  ;;  %v5752_v46 = vld [vmem:[%s7054_s2 + $0x154] ss:$12 sps:$4 sm:$0xff]  }
  0x7b   : > { %1045 = vmatpush1.bf16.msra.mxu0 %v5719_v38  ;;  %1145 = vmatpush1.bf16.msra.mxu1 %v5435_v48  ;;  %v5766_v48 = vld [vmem:[%s7054_s2 + $0x16c] ss:$12 sps:$4 sm:$0xff]  }
  0x7c   : > { %1046 = vmatprep.subr.bf16.mxu0 %v5727_v40  ;;  %1146 = vmatprep.subr.bf16.mxu1 %v5448_v50  ;;  %v1109_v50 = vshll.u32 %v5561_v43, 16 }
  0x7e   : > { %v1111_v60 = vrot.slane %v1109_v50, 1  ;;  %v4800_v50 = vld [vmem:[%s7054_s2 + $0x43c] ss:$12 sps:$4 sm:$0xff]  }
  0x7f   : > { %1047 = vmatpush1.bf16.msra.mxu0 %v5733_v42  ;;  %1147 = vmatpush1.bf16.msra.mxu1 %v5459_v52  ;;  %v5776_v52 = vld [vmem:[%s7054_s2 + $0x168] ss:$12 sps:$4 sm:$0xff]  }
  0x80   : > { %1048 = vmatprep.subr.bf16.mxu0 %v5741_v44  ;;  %1148 = vmatprep.subr.bf16.mxu1 %v5472_v54  ;;  %v1107_v54 = vshrl.u32 %v5561_v43, 16 }
  0x83   : > { %1049 = vmatpush1.bf16.msra.mxu0 %v5747_v45  ;;  %1149 = vmatpush1.bf16.msra.mxu1 %v5484_v56  ;;  %v5784_v56 = vor.u32 %v1111_v60, %v1107_v54  ;;  %v4803_v54 = vld [vmem:[%s7054_s2 + $0x454] ss:$12 sps:$4 sm:$0xff]  }
  0x84   : > { %1050 = vmatprep.subr.bf16.mxu0 %v5752_v46  ;;  %1150 = vmatprep.subr.bf16.mxu1 %v5502_v58  ;;  %v5939_v58 = vld [vmem:[%s7054_s2 + $0x34c] ss:$12 sps:$4 sm:$0xff]  }
  0x87   : > { %1051 = vmatpush1.bf16.msra.mxu0 %v5761_v47  ;;  %1151 = vmatpush1.bf16.msra.mxu1 %v5515_v61  ;;  %v5958_v61 = vld [vmem:[%s7054_s2 + $0x350] ss:$12 sps:$4 sm:$0xff]  }
  0x88   : > { %1052 = vmatprep.subr.bf16.mxu0 %v5766_v48  ;;  %1152 = vmatprep.subr.bf16.mxu1 %v5527_v63  ;;  %v5969_v63 = vld [vmem:[%s7054_s2 + $0x428] ss:$12 sps:$4 sm:$0xff]  }
  0x8b   : > { %1053 = vmatpush1.bf16.msra.mxu0 %v5776_v52  ;;  %1153 = vmatpush1.bf16.msra.mxu1 %v5538_v57  ;;  %v5930_v57 = vld [vmem:[%s7054_s2 + $0x338] ss:$12 sps:$4 sm:$0xff]  }
  0x8c   : > { %4384 = vmatprep.subr.bf16.mxu0 %v5147_v1  ;;  %1206 = vmatprep.subr.bf16.mxu1 %v5551_v59  ;;  %v5828_v1 = vld [vmem:[%s5307_s11 + $0x4] ss:$8 sps:$4 sm:$0x1f]   ;;  %v5944_v59 = vld [vmem:[%s7054_s2 + $0x410] ss:$12 sps:$4 sm:$0xff]  }
  0x8e   : > { %1055 = vmatmul.mubr.bf16.vlgmr.msra.gmra.mrb[0].mxu0 %v5561_v43  ;;  %1155 = vmatmul.mubr.bf16.vlgmr.msra.gmra.mrb[8].mxu1 %v5784_v56  ;;  %v5913_v43 = vld [vmem:[%s7054_s2 + $0x334] ss:$12 sps:$4 sm:$0xff]  }
  0x8f   : > { %4385 = vmatpush3.bf16.msra.mxu0 %v5159_v3  ;;  %1207 = vmatpush1.bf16.msra.mxu1 %v5557_v49  ;;  %v7081_v3 = vld [vmem:[#allocation2_spill] sm:$0xff] }
  0x90   : > { %4386 = vmatprep.subr.bf16.mxu0 %v5171_v5  ;;  %1208 = vmatprep.subr.bf16.mxu1 %v5568_v62  ;;  %v7082_v5 = vld [vmem:[#allocation3_spill] sm:$0xff]  ;;  %v5918_v49 = vld [vmem:[%s7054_s2 + $0x3f8] ss:$12 sps:$4 sm:$0xff]  }
  0x91   : > { %1197 = vmatprep.mubr.bf16.mxu0 %v5572_v55  ;;  %1238 = vmatprep.mubr.bf16.mxu1 %v5328_v30  ;;  %v5876_v30 = vld [vmem:[%s7054_s2 + $0x308] ss:$12 sps:$4 sm:$0xff]   ;;  %v5963_v62 = vld [vmem:[%s7054_s2 + $0x364] ss:$12 sps:$4 sm:$0xff]  }
  0x93   : > { %4387 = vmatpush3.bf16.msra.mxu0 %v5182_v7  ;;  %1209 = vmatpush1.bf16.msra.mxu1 %v5579_v53  ;;  %v7083_v7 = vld [vmem:[#allocation4_spill] sm:$0xff]  ;;  %v5975_v53 = vld [vmem:[%s7054_s2 + $0x360] ss:$12 sps:$4 sm:$0xff]  }
  0x94   : > { %4388 = vmatprep.subr.bf16.mxu0 %v5194_v9  ;;  %1210 = vmatprep.subr.bf16.mxu1 %v5586_v0  ;;  %v7084_v9 = vld [vmem:[#allocation5_spill] sm:$0xff]  ;;  %v5982_v0 = vld [vmem:[%s7054_s2 + $0x368] ss:$12 sps:$4 sm:$0xff]  }
  0x97   : > { %4389 = vmatpush3.bf16.msra.mxu0 %v5206_v11  ;;  %1211 = vmatpush1.bf16.msra.mxu1 %v5594_v35  ;;  %v7085_v11 = vld [vmem:[#allocation6_spill] sm:$0xff]  ;;  %v5987_v35 = vld [vmem:[%s7054_s2 + $0x37c] ss:$12 sps:$4 sm:$0xff]  }
  0x98   : > { %4390 = vmatprep.subr.bf16.mxu0 %v5219_v13  ;;  %1212 = vmatprep.subr.bf16.mxu1 %v5601_v2  ;;  %v7086_v13 = vld [vmem:[#allocation7_spill] sm:$0xff] }
  0x99   : > { %v5993_v2 = vld [vmem:[%s7054_s2 + $0x440] ss:$12 sps:$4 sm:$0xff]  }
  0x9b   : > { %4391 = vmatpush3.bf16.msra.mxu0 %v5232_v15  ;;  %1213 = vmatpush1.bf16.msra.mxu1 %v5608_v4  ;;  %v7087_v15 = vld [vmem:[#allocation8_spill] sm:$0xff]  ;;  %v5999_v4 = vld [vmem:[%s7054_s2 + $0x378] ss:$12 sps:$4 sm:$0xff]  }
  0x9c   : > { %4392 = vmatprep.subr.bf16.mxu0 %v5243_v17  ;;  %1214 = vmatprep.subr.bf16.mxu1 %v5615_v6  ;;  %v7088_v17 = vld [vmem:[#allocation9_spill] sm:$0xff]  ;;  %v6006_v6 = vld [vmem:[%s7054_s2 + $0x380] ss:$12 sps:$4 sm:$0xff]  }
  0x9f   : > { %4393 = vmatpush3.bf16.msra.mxu0 %v5254_v19  ;;  %1215 = vmatpush1.bf16.msra.mxu1 %v5622_v8  ;;  %v7089_v19 = vld [vmem:[#allocation10_spill] sm:$0xff] }
  0xa0   : > { %4394 = vmatprep.subr.bf16.mxu0 %v5269_v21  ;;  %1216 = vmatprep.subr.bf16.mxu1 %v5629_v10  ;;  %v7090_v21 = vld [vmem:[#allocation11_spill] sm:$0xff]  ;;  %v6011_v8 = vld [vmem:[%s7054_s2 + $0x394] ss:$12 sps:$4 sm:$0xff]   ;;  %v6017_v10 = vld [vmem:[%s7054_s2 + $0x458] ss:$12 sps:$4 sm:$0xff]  }
  0xa3   : > { %4395 = vmatpush3.bf16.msra.mxu0 %v5280_v23  ;;  %1217 = vmatpush1.bf16.msra.mxu1 %v5636_v12  ;;  %v7091_v23 = vld [vmem:[#allocation12_spill] sm:$0xff] }
  0xa4   : > { %4396 = vmatprep.subr.bf16.mxu0 %v5295_v25  ;;  %1218 = vmatprep.subr.bf16.mxu1 %v5643_v14  ;;  %v5860_v25 = vld [vmem:[%s7054_s2 + $0x304] ss:$12 sps:$4 sm:$0xff]  }
  0xa5   : > { %v6023_v12 = vld [vmem:[%s7054_s2 + $0x390] ss:$12 sps:$4 sm:$0xff]   ;;  %v6030_v14 = vld [vmem:[%s7054_s2 + $0x398] ss:$12 sps:$4 sm:$0xff]  }
  0xa7   : > { %4397 = vmatpush3.bf16.msra.mxu0 %v5314_v27  ;;  %1219 = vmatpush1.bf16.msra.mxu1 %v5650_v16  ;;  %v5865_v27 = vld [vmem:[%s7054_s2 + $0x3c8] ss:$12 sps:$4 sm:$0xff]   ;;  %v6035_v16 = vld [vmem:[%s7054_s2 + $0x3ac] ss:$12 sps:$4 sm:$0xff]  }
  0xa8   : > { %4398 = vmatprep.subr.bf16.mxu0 %v5325_v29  ;;  %1220 = vmatprep.subr.bf16.mxu1 %v5657_v18  ;;  %v5871_v29 = vld [vmem:[%s7054_s2 + $0x300] ss:$12 sps:$4 sm:$0xff]   ;;  %v6041_v18 = vld [vmem:[%s7054_s2 + $0x470] ss:$12 sps:$4 sm:$0xff]  }
  0xab   : > { %4399 = vmatpush3.bf16.msra.mxu0 %v5339_v32  ;;  %1221 = vmatpush1.bf16.msra.mxu1 %v5664_v20  ;;  %v5884_v32 = vld [vmem:[%s7054_s2 + $0x31c] ss:$12 sps:$4 sm:$0xff]   ;;  %v1711_v20 = vshll.u32 %v5828_v1, 16 }
  0xac   : > { %4406 = vmatprep.subr.bf16.mxu0 %v5353_v34  ;;  %1222 = vmatprep.subr.bf16.mxu1 %v5671_v22  ;;  %v5889_v34 = vld [vmem:[%s7054_s2 + $0x3e0] ss:$12 sps:$4 sm:$0xff]   ;;  %v6048_v22 = vld [vmem:[%s7054_s2 + $0x3a8] ss:$12 sps:$4 sm:$0xff]  }
  0xae   : > { %1198 = vmatmul.mubr.bf16.vlgmr.msra.gmra.mrb[4].mxu0 %v5784_v56 }
  0xaf   : > { %4407 = vmatpush3.bf16.msra.mxu0 %v5370_v37  ;;  %1281 = vmatprep.mubr.bf16.mxu0 %v5828_v1  ;;  %v5895_v37 = vld [vmem:[%s7054_s2 + $0x318] ss:$12 sps:$4 sm:$0xff]  }
  0xb0   : > { %1223 = vmatpush1.bf16.msra.mxu1 %v5678_v24  ;;  %4408 = vmatprep.subr.bf16.mxu0 %v5381_v39  ;;  %v5898_v39 = vld [vmem:[%s5307_s11] ss:$8 sps:$4 sm:$0x1f]   ;;  %v6055_v24 = vld [vmem:[%s7054_s2 + $0x3b0] ss:$12 sps:$4 sm:$0xff]  }
  0xb1   : > { %1224 = vmatprep.subr.bf16.mxu1 %v5685_v26  ;;  %v4785_v26 = vld [vmem:[%s7054_s2 + $0x3c4] ss:$12 sps:$4 sm:$0xff]  }
  0xb3   : > { %4409 = vmatpush3.bf16.msra.mxu0 %v5393_v41  ;;  %v5904_v41 = vld [vmem:[%s7054_s2 + $0x320] ss:$12 sps:$4 sm:$0xff]  }
  0xb4   : > { %1225 = vmatpush1.bf16.msra.mxu1 %v5692_v28  ;;  %4410 = vmatprep.subr.bf16.mxu0 %v7081_v3  ;;  %v1709_v28 = vshrl.u32 %v5828_v1, 16  ;;  %v4801_v3 = vld [vmem:[%s7054_s2 + $0x450] ss:$12 sps:$4 sm:$0xff]  }
  0xb5   : > { %1226 = vmatprep.subr.bf16.mxu1 %v5699_v31  ;;  %v1713_v31 = vrot.slane %v1711_v20, 1  ;;  %v4839_v20 = vld [vmem:[%s7054_s2 + $0x514] ss:$12 sps:$4 sm:$0xff]  }
  0xb7   : > { %4411 = vmatpush3.bf16.msra.mxu0 %v7082_v5 }
  0xb8   : > { %1227 = vmatpush1.bf16.msra.mxu1 %v5706_v33  ;;  %4412 = vmatprep.subr.bf16.mxu0 %v7083_v7  ;;  %v4783_v33 = vld [vmem:[%s7054_s2 + $0x3c0] ss:$12 sps:$4 sm:$0xff]  }
  0xb9   : > { %1228 = vmatprep.subr.bf16.mxu1 %v5713_v36  ;;  %v4788_v36 = vld [vmem:[%s7054_s2 + $0x3dc] ss:$12 sps:$4 sm:$0xff]  }
  0xbb   : > { %4413 = vmatpush3.bf16.msra.mxu0 %v7084_v9  ;;  %v4806_v9 = vld [vmem:[%s7054_s2 + $0x46c] ss:$12 sps:$4 sm:$0xff]  }
  0xbc   : > { %1229 = vmatpush1.bf16.msra.mxu1 %v5719_v38  ;;  %4414 = vmatprep.subr.bf16.mxu0 %v7085_v11  ;;  %v6071_v38 = vor.u32 %v1713_v31, %v1709_v28  ;;  %v4844_v28 = vld [vmem:[%s7054_s2 + $0x52c] ss:$12 sps:$4 sm:$0xff]   ;;  %v6326_v31 = vld [vmem:[%s7054_s2 + $0x5f0] ss:$12 sps:$4 sm:$0xff]  }
  0xbd   : > { %1230 = vmatprep.subr.bf16.mxu1 %v5727_v40  ;;  %v4786_v40 = vld [vmem:[%s7054_s2 + $0x3d8] ss:$12 sps:$4 sm:$0xff]  }
  0xbf   : > { %4415 = vmatpush3.bf16.msra.mxu0 %v7086_v13 }
  0xc0   : > { %1231 = vmatpush1.bf16.msra.mxu1 %v5733_v42  ;;  %4416 = vmatprep.subr.bf16.mxu0 %v7087_v15  ;;  %v4791_v42 = vld [vmem:[%s7054_s2 + $0x3f4] ss:$12 sps:$4 sm:$0xff]  }
  0xc1   : > { %1232 = vmatprep.subr.bf16.mxu1 %v5741_v44  ;;  %v4789_v44 = vld [vmem:[%s7054_s2 + $0x3f0] ss:$12 sps:$4 sm:$0xff]   ;;  %v4804_v15 = vld [vmem:[%s7054_s2 + $0x468] ss:$12 sps:$4 sm:$0xff]  }
  0xc3   : > { %4417 = vmatpush3.bf16.msra.mxu0 %v7088_v17  ;;  %v1704_v17 = vshll.u32 %v5898_v39, 16 }
  0xc4   : > { %1233 = vmatpush1.bf16.msra.mxu1 %v5747_v45  ;;  %4418 = vmatprep.subr.bf16.mxu0 %v7089_v19  ;;  %v4794_v45 = vld [vmem:[%s7054_s2 + $0x40c] ss:$12 sps:$4 sm:$0xff]  }
  0xc5   : > { %1234 = vmatprep.subr.bf16.mxu1 %v5752_v46  ;;  %v4792_v46 = vld [vmem:[%s7054_s2 + $0x408] ss:$12 sps:$4 sm:$0xff]  }
  0xc7   : > { %4419 = vmatpush3.bf16.msra.mxu0 %v7090_v21 }
  0xc8   : > { %1235 = vmatpush1.bf16.msra.mxu1 %v5761_v47  ;;  %4420 = vmatprep.subr.bf16.mxu0 %v7091_v23  ;;  %v4797_v47 = vld [vmem:[%s7054_s2 + $0x424] ss:$12 sps:$4 sm:$0xff]  }
  0xc9   : > { %1236 = vmatprep.subr.bf16.mxu1 %v5766_v48  ;;  %v4795_v48 = vld [vmem:[%s7054_s2 + $0x420] ss:$12 sps:$4 sm:$0xff]  }
  0xcb   : > { %4421 = vmatpush3.bf16.msra.mxu0 %v5544_v51  ;;  %v5924_v51 = vld [vmem:[%s7054_s2 + $0x330] ss:$12 sps:$4 sm:$0xff]  }
  0xcc   : > { %1237 = vmatpush1.bf16.msra.mxu1 %v5776_v52  ;;  %1611 = vmatprep.subr.bf16.mxu0 %v5860_v25  ;;  %v4798_v52 = vld [vmem:[%s7054_s2 + $0x438] ss:$12 sps:$4 sm:$0xff]  }
  0xcd   : > { %4428 = vmatprep.subr.bf16.mxu1 %v5865_v27 }
  0xce   : > { %1282 = vmatmul.mubr.bf16.vlgmr.msra.gmra.mrb[8].mxu0 %v5898_v39 }
  0xcf   : > { %1239 = vmatmul.mubr.bf16.vlgmr.msra.gmra.mrb[8].mxu1 %v5898_v39  ;;  %1612 = vmatpush1.bf16.msra.mxu0 %v5871_v29 }
  0xd0   : > { %4429 = vmatpush3.bf16.msra.mxu1 %v5876_v30  ;;  %1613 = vmatprep.subr.bf16.mxu0 %v5884_v32 }
  0xd1   : > { %4430 = vmatprep.subr.bf16.mxu1 %v5889_v34  ;;  %1686 = vmatprep.mubr.bf16.mxu1 %v5572_v55 }
  0xd2   : > { %1643 = vmatprep.mubr.bf16.mxu0 %v5572_v55  ;;  %v5951_v55 = vld [vmem:[%s7054_s2 + $0x348] ss:$12 sps:$4 sm:$0xff]  }
  0xd3   : > { %1614 = vmatpush1.bf16.msra.mxu0 %v5895_v37 }
  0xd4   : > { %4431 = vmatpush3.bf16.msra.mxu1 %v5904_v41  ;;  %1615 = vmatprep.subr.bf16.mxu0 %v5913_v43 }
  0xd5   : > { %4432 = vmatprep.subr.bf16.mxu1 %v5918_v49 }
  0xd7   : > { %1616 = vmatpush1.bf16.msra.mxu0 %v5924_v51 }
  0xd8   : > { %4433 = vmatpush3.bf16.msra.mxu1 %v5930_v57  ;;  %1617 = vmatprep.subr.bf16.mxu0 %v5939_v58 }
  0xd9   : > { %4434 = vmatprep.subr.bf16.mxu1 %v5944_v59 }
  0xdb   : > { %1618 = vmatpush1.bf16.msra.mxu0 %v5951_v55 }
  0xdc   : > { %4435 = vmatpush3.bf16.msra.mxu1 %v5958_v61  ;;  %1619 = vmatprep.subr.bf16.mxu0 %v5963_v62 }
  0xdd   : > { %4436 = vmatprep.subr.bf16.mxu1 %v5969_v63 }
  0xdf   : > { %1620 = vmatpush1.bf16.msra.mxu0 %v5975_v53 }
  0xe0   : > { %4437 = vmatpush3.bf16.msra.mxu1 %v5982_v0  ;;  %1621 = vmatprep.subr.bf16.mxu0 %v5987_v35 }
  0xe1   : > { %4438 = vmatprep.subr.bf16.mxu1 %v5993_v2 }
  0xe3   : > { %1622 = vmatpush1.bf16.msra.mxu0 %v5999_v4 }
  0xe4   : > { %4439 = vmatpush3.bf16.msra.mxu1 %v6006_v6  ;;  %1623 = vmatprep.subr.bf16.mxu0 %v6011_v8 }
  0xe5   : > { %4440 = vmatprep.subr.bf16.mxu1 %v6017_v10 }
  0xe7   : > { %1624 = vmatpush1.bf16.msra.mxu0 %v6023_v12 }
  0xe8   : > { %4441 = vmatpush3.bf16.msra.mxu1 %v6030_v14  ;;  %1625 = vmatprep.subr.bf16.mxu0 %v6035_v16 }
  0xe9   : > { %4442 = vmatprep.subr.bf16.mxu1 %v6041_v18 }
  0xeb   : > { %1626 = vmatpush1.bf16.msra.mxu0 %v6048_v22 }
  0xec   : > { %4443 = vmatpush3.bf16.msra.mxu1 %v6055_v24  ;;  %1627 = vmatprep.subr.bf16.mxu0 %v4785_v26 }
  0xed   : > { %1717 = vmatprep.subr.bf16.mxu1 %v5860_v25 }
  0xef   : > { %1687 = vmatmul.mubr.bf16.vlgmr.msra.gmra.mrb[12].mxu1 %v5784_v56  ;;  %1628 = vmatpush1.bf16.msra.mxu0 %v4783_v33 }
  0xf0   : > { %1718 = vmatpush1.bf16.msra.mxu1 %v5871_v29  ;;  %1629 = vmatprep.subr.bf16.mxu0 %v4788_v36 }
  0xf1   : > { %1719 = vmatprep.subr.bf16.mxu1 %v5884_v32  ;;  %1749 = vmatprep.mubr.bf16.mxu1 %v6071_v38  ;;  %v1706_v32 = vrot.slane %v1704_v17, 1 }
  0xf3   : > { %1630 = vmatpush1.bf16.msra.mxu0 %v4786_v40 }
  0xf4   : > { %1720 = vmatpush1.bf16.msra.mxu1 %v5895_v37  ;;  %1631 = vmatprep.subr.bf16.mxu0 %v4791_v42  ;;  %v6155_v37 = vld [vmem:[%s7054_s2 + $0x484] ss:$12 sps:$4 sm:$0xff]  }
  0xf5   : > { %1721 = vmatprep.subr.bf16.mxu1 %v5913_v43  ;;  %v6168_v43 = vld [vmem:[%s7054_s2 + $0x480] ss:$12 sps:$4 sm:$0xff]  }
  0xf7   : > { %1632 = vmatpush1.bf16.msra.mxu0 %v4789_v44 }
  0xf8   : > { %1722 = vmatpush1.bf16.msra.mxu1 %v5924_v51  ;;  %1633 = vmatprep.subr.bf16.mxu0 %v4794_v45  ;;  %v6179_v51 = vld [vmem:[%s7054_s2 + $0x49c] ss:$12 sps:$4 sm:$0xff]  }
  0xf9   : > { %1723 = vmatprep.subr.bf16.mxu1 %v5939_v58  ;;  %v6193_v58 = vld [vmem:[%s7054_s2 + $0x498] ss:$12 sps:$4 sm:$0xff]  }
  0xfb   : > { %1634 = vmatpush1.bf16.msra.mxu0 %v4792_v46 }
  0xfc   : > { %1724 = vmatpush1.bf16.msra.mxu1 %v5951_v55  ;;  %1635 = vmatprep.subr.bf16.mxu0 %v4797_v47  ;;  %v6205_v55 = vld [vmem:[%s7054_s2 + $0x4b4] ss:$12 sps:$4 sm:$0xff]  }
  0xfd   : > { %1725 = vmatprep.subr.bf16.mxu1 %v5963_v62  ;;  %v6219_v62 = vld [vmem:[%s7054_s2 + $0x4b0] ss:$12 sps:$4 sm:$0xff]  }
  0xff   : > { %1636 = vmatpush1.bf16.msra.mxu0 %v4795_v48 }
 0x100   : > { %1726 = vmatpush1.bf16.msra.mxu1 %v5975_v53  ;;  %1637 = vmatprep.subr.bf16.mxu0 %v4800_v50  ;;  %v6231_v53 = vld [vmem:[%s7054_s2 + $0x4cc] ss:$12 sps:$4 sm:$0xff]  }
 0x101   : > { %1727 = vmatprep.subr.bf16.mxu1 %v5987_v35  ;;  %v4356_v60 = vpop.f32.mrb[0].mxu1  ;;  %v6243_v35 = vld [vmem:[%s7054_s2 + $0x4c8] ss:$12 sps:$4 sm:$0xff]  }
 0x102   : > { %v4357_v1 = vpop.f32.mrb[1].mxu1 }
 0x103   : > { %1638 = vmatpush1.bf16.msra.mxu0 %v4798_v52  ;;  %v4358_v5 = vadd.f32 %v4357_v1, %v4356_v60  ;;  %v4359_v7 = vpop.f32.mrb[2].mxu1  ;;  %v4859_v60 = vld [vmem:[%s7054_s2 + $0x5a0] ss:$12 sps:$4 sm:$0xff]   ;;  %v4864_v1 = vld [vmem:[%s7054_s2 + $0x5bc] ss:$12 sps:$4 sm:$0xff]  }
 0x104   : > { %1728 = vmatpush1.bf16.msra.mxu1 %v5999_v4  ;;  %1639 = vmatprep.subr.bf16.mxu0 %v4803_v54  ;;  %v4360_v11 = vpop.f32.mrb[3].mxu1  ;;  %v6255_v4 = vld [vmem:[%s7054_s2 + $0x4e4] ss:$12 sps:$4 sm:$0xff]  }
 0x105   : > { %1729 = vmatprep.subr.bf16.mxu1 %v6011_v8  ;;  %v4361_v13 = vadd.f32 %v4360_v11, %v4359_v7  ;;  %v6267_v8 = vld [vmem:[%s7054_s2 + $0x4e0] ss:$12 sps:$4 sm:$0xff]   ;;  %v4865_v7 = vld [vmem:[%s7054_s2 + $0x5d0] ss:$12 sps:$4 sm:$0xff]   ;;  %v4868_v11 = vld [vmem:[%s7054_s2 + $0x5e8] ss:$12 sps:$4 sm:$0xff]  }
 0x107   : > { %1640 = vmatpush1.bf16.msra.mxu0 %v4801_v3 }
 0x108   : > { %1730 = vmatpush1.bf16.msra.mxu1 %v6023_v12  ;;  %1641 = vmatprep.subr.bf16.mxu0 %v4806_v9  ;;  %v6279_v12 = vld [vmem:[%s7054_s2 + $0x4fc] ss:$12 sps:$4 sm:$0xff]  }
 0x109   : > { %1731 = vmatprep.subr.bf16.mxu1 %v6035_v16  ;;  %v6291_v16 = vld [vmem:[%s7054_s2 + $0x4f8] ss:$12 sps:$4 sm:$0xff]  }
 0x10b   : > { %1642 = vmatpush1.bf16.msra.mxu0 %v4804_v15 }
 0x10c   : > { %1732 = vmatpush1.bf16.msra.mxu1 %v6048_v22  ;;  %4450 = vmatprep.subr.bf16.mxu0 %v5865_v27  ;;  %v6307_v22 = vld [vmem:[%s7054_s2 + $0x5d8] ss:$12 sps:$4 sm:$0xff]  }
 0x10d   : > { %1733 = vmatprep.subr.bf16.mxu1 %v4785_v26  ;;  %v6317_v26 = vld [vmem:[%s7054_s2 + $0x518] ss:$12 sps:$4 sm:$0xff]  }
 0x10e   : > { %1644 = vmatmul.mubr.bf16.vlgmr.msra.gmra.mrb[0].mxu0 %v5784_v56 }
 0x10f   : > { %4451 = vmatpush3.bf16.msra.mxu0 %v5876_v30  ;;  %1792 = vmatprep.mubr.bf16.mxu0 %v6071_v38  ;;  %v1702_v30 = vshrl.u32 %v5898_v39, 16 }
 0x110   : > { %1734 = vmatpush1.bf16.msra.mxu1 %v4783_v33  ;;  %4452 = vmatprep.subr.bf16.mxu0 %v5889_v34  ;;  %v4842_v33 = vld [vmem:[%s7054_s2 + $0x528] ss:$12 sps:$4 sm:$0xff]  }
 0x111   : > { %1735 = vmatprep.subr.bf16.mxu1 %v4788_v36  ;;  %v6162_v39 = vor.u32 %v1706_v32, %v1702_v30  ;;  %v6335_v36 = vld [vmem:[%s7054_s2 + $0x530] ss:$12 sps:$4 sm:$0xff]   ;;  %v6442_v32 = vld [vmem:[%s7054_s2 + $0x600] ss:$12 sps:$4 sm:$0xff]  }
 0x113   : > { %4453 = vmatpush3.bf16.msra.mxu0 %v5904_v41  ;;  %v6160_v41 = vld [vmem:[%s7054_s2 + $0x548] ss:$12 sps:$4 sm:$0xff]  }
 0x114   : > { %1736 = vmatpush1.bf16.msra.mxu1 %v4786_v40  ;;  %4454 = vmatprep.subr.bf16.mxu0 %v5918_v49  ;;  %v6174_v49 = vld [vmem:[%s7054_s2 + $0x488] ss:$12 sps:$4 sm:$0xff]   ;;  %v4871_v40 = vld [vmem:[%s5490_s7 + $0x4] ss:$8 sps:$4 sm:$0x3e]  }
 0x115   : > { %1737 = vmatprep.subr.bf16.mxu1 %v4791_v42  ;;  %v4847_v42 = vld [vmem:[%s7054_s2 + $0x540] ss:$12 sps:$4 sm:$0xff]  }
 0x117   : > { %4455 = vmatpush3.bf16.msra.mxu0 %v5930_v57  ;;  %v6185_v57 = vld [vmem:[%s7054_s2 + $0x560] ss:$12 sps:$4 sm:$0xff]  }
 0x118   : > { %1738 = vmatpush1.bf16.msra.mxu1 %v4789_v44  ;;  %4456 = vmatprep.subr.bf16.mxu0 %v5944_v59  ;;  %v6200_v59 = vld [vmem:[%s7054_s2 + $0x4a0] ss:$12 sps:$4 sm:$0xff]   ;;  %v4852_v44 = vld [vmem:[%s7054_s2 + $0x55c] ss:$12 sps:$4 sm:$0xff]  }
 0x119   : > { %1739 = vmatprep.subr.bf16.mxu1 %v4794_v45  ;;  %v6350_v45 = vrot.slane %v4871_v40, 1 }
 0x11b   : > { %4457 = vmatpush3.bf16.msra.mxu0 %v5958_v61  ;;  %v6211_v61 = vld [vmem:[%s7054_s2 + $0x578] ss:$12 sps:$4 sm:$0xff]  }
 0x11c   : > { %1740 = vmatpush1.bf16.msra.mxu1 %v4792_v46  ;;  %4458 = vmatprep.subr.bf16.mxu0 %v5969_v63  ;;  %v6226_v63 = vld [vmem:[%s7054_s2 + $0x4b8] ss:$12 sps:$4 sm:$0xff]  }
 0x11d   : > { %1741 = vmatprep.subr.bf16.mxu1 %v4797_v47  ;;  %v4850_v46 = vld [vmem:[%s7054_s2 + $0x558] ss:$12 sps:$4 sm:$0xff]   ;;  %v4855_v47 = vld [vmem:[%s7054_s2 + $0x574] ss:$12 sps:$4 sm:$0xff]  }
 0x11f   : > { %4459 = vmatpush3.bf16.msra.mxu0 %v5982_v0  ;;  %v6237_v0 = vld [vmem:[%s7054_s2 + $0x590] ss:$12 sps:$4 sm:$0xff]  }
 0x120   : > { %1742 = vmatpush1.bf16.msra.mxu1 %v4795_v48  ;;  %4460 = vmatprep.subr.bf16.mxu0 %v5993_v2  ;;  %v6250_v2 = vld [vmem:[%s7054_s2 + $0x4d0] ss:$12 sps:$4 sm:$0xff]  }
 0x121   : > { %1743 = vmatprep.subr.bf16.mxu1 %v4800_v50  ;;  %v4378_v56 = vpop.f32.mrb[4].mxu1  ;;  %v4853_v48 = vld [vmem:[%s7054_s2 + $0x570] ss:$12 sps:$4 sm:$0xff]   ;;  %v4858_v50 = vld [vmem:[%s7054_s2 + $0x58c] ss:$12 sps:$4 sm:$0xff]  }
 0x122   : > { %v4379_v19 = vpop.f32.mrb[5].mxu1 }
 0x123   : > { %4461 = vmatpush3.bf16.msra.mxu0 %v6006_v6  ;;  %v4380_v21 = vadd.f32 %v4379_v19, %v4378_v56  ;;  %v4381_v23 = vpop.f32.mrb[6].mxu1  ;;  %v6261_v6 = vld [vmem:[%s7054_s2 + $0x5a8] ss:$12 sps:$4 sm:$0xff]  }
 0x124   : > { %1744 = vmatpush1.bf16.msra.mxu1 %v4798_v52  ;;  %4462 = vmatprep.subr.bf16.mxu0 %v6017_v10  ;;  %v4382_v25 = vpop.f32.mrb[7].mxu1  ;;  %v6274_v10 = vld [vmem:[%s7054_s2 + $0x4e8] ss:$12 sps:$4 sm:$0xff]  }
 0x125   : > { %1745 = vmatprep.subr.bf16.mxu1 %v4803_v54  ;;  %v6145_v27 = vadd.f32 %v4380_v21, %v4358_v5  ;;  %v4383_v29 = vadd.f32 %v4382_v25, %v4381_v23  ;;  %v4856_v52 = vld [vmem:[%s7054_s2 + $0x588] ss:$12 sps:$4 sm:$0xff]   ;;  %v4861_v54 = vld [vmem:[%s7054_s2 + $0x5a4] ss:$12 sps:$4 sm:$0xff]  }
 0x126   : > { %v4867_v5 = vld [vmem:[%s7054_s2 + $0x5d4] ss:$12 sps:$4 sm:$0xff]   ;;  %v6429_v25 = vld [vmem:[%s7054_s2 + $0x604] ss:$12 sps:$4 sm:$0xff]  }
 0x127   : > { %4463 = vmatpush3.bf16.msra.mxu0 %v6030_v14  ;;  %v6149_v34 = vadd.f32 %v4383_v29, %v4361_v13  ;;  %v6285_v14 = vld [vmem:[%s7054_s2 + $0x5c0] ss:$12 sps:$4 sm:$0xff]   ;;  %v6434_v29 = vld [vmem:[%s7054_s2 + $0x6c8] ss:$12 sps:$4 sm:$0xff]  }
 0x128   : > { %1746 = vmatpush1.bf16.msra.mxu1 %v4801_v3  ;;  %4464 = vmatprep.subr.bf16.mxu0 %v6041_v18  ;;  %v6298_v18 = vld [vmem:[%s7054_s2 + $0x500] ss:$12 sps:$4 sm:$0xff]   ;;  %v4862_v3 = vld [vmem:[%s7054_s2 + $0x5b8] ss:$12 sps:$4 sm:$0xff]  }
 0x129   : > { %1747 = vmatprep.subr.bf16.mxu1 %v4806_v9  ;;  %v4870_v9 = vld [vmem:[%s7054_s2 + $0x5ec] ss:$12 sps:$4 sm:$0xff]   ;;  %v4873_v23 = vld [vmem:[%s5490_s7] ss:$8 sps:$4 sm:$0x3e]  }
 0x12a   : > { %v6436_v30 = vrot.slane %v4873_v23, 1  ;;  %v4937_v23 = vld [vmem:[%s7054_s2 + $0x76c] ss:$12 sps:$4 sm:$0xff]  }
 0x12b   : > { %4465 = vmatpush3.bf16.msra.mxu0 %v6055_v24  ;;  %v4837_v24 = vld [vmem:[%s7054_s2 + $0x510] ss:$12 sps:$4 sm:$0xff]  }
 0x12c   : > { %1748 = vmatpush1.bf16.msra.mxu1 %v4804_v15  ;;  %2130 = vmatprep.subr.bf16.mxu0 %v6155_v37 }
 0x12d   : > { %4472 = vmatprep.subr.bf16.mxu1 %v6160_v41 }
 0x12e   : > { %1793 = vmatmul.mubr.bf16.vlgmr.msra.gmra.mrb[12].mxu0 %v6162_v39 }
 0x12f   : > { %1750 = vmatmul.mubr.bf16.vlgmr.msra.gmra.mrb[8].mxu1 %v6162_v39  ;;  %2131 = vmatpush1.bf16.msra.mxu0 %v6168_v43 }
 0x130   : > { %4473 = vmatpush3.bf16.msra.mxu1 %v6174_v49  ;;  %2132 = vmatprep.subr.bf16.mxu0 %v6179_v51 }
 0x131   : > { %4474 = vmatprep.subr.bf16.mxu1 %v6185_v57  ;;  %2205 = vmatprep.mubr.bf16.mxu1 %v6071_v38 }
 0x132   : > { %2162 = vmatprep.mubr.bf16.mxu0 %v6071_v38  ;;  %v4849_v38 = vld [vmem:[%s7054_s2 + $0x544] ss:$12 sps:$4 sm:$0xff]  }
 0x133   : > { %2133 = vmatpush1.bf16.msra.mxu0 %v6193_v58 }
 0x134   : > { %4475 = vmatpush3.bf16.msra.mxu1 %v6200_v59  ;;  %2134 = vmatprep.subr.bf16.mxu0 %v6205_v55 }
 0x135   : > { %4476 = vmatprep.subr.bf16.mxu1 %v6211_v61 }
 0x137   : > { %2135 = vmatpush1.bf16.msra.mxu0 %v6219_v62 }
 0x138   : > { %4477 = vmatpush3.bf16.msra.mxu1 %v6226_v63  ;;  %2136 = vmatprep.subr.bf16.mxu0 %v6231_v53 }
 0x139   : > { %4478 = vmatprep.subr.bf16.mxu1 %v6237_v0 }
 0x13b   : > { %2137 = vmatpush1.bf16.msra.mxu0 %v6243_v35 }
 0x13c   : > { %4479 = vmatpush3.bf16.msra.mxu1 %v6250_v2  ;;  %2138 = vmatprep.subr.bf16.mxu0 %v6255_v4 }
 0x13d   : > { %4480 = vmatprep.subr.bf16.mxu1 %v6261_v6 }
 0x13f   : > { %2139 = vmatpush1.bf16.msra.mxu0 %v6267_v8 }
 0x140   : > { %4481 = vmatpush3.bf16.msra.mxu1 %v6274_v10  ;;  %2140 = vmatprep.subr.bf16.mxu0 %v6279_v12 }
 0x141   : > { %4482 = vmatprep.subr.bf16.mxu1 %v6285_v14 }
 0x143   : > { %2141 = vmatpush1.bf16.msra.mxu0 %v6291_v16 }
 0x144   : > { %4483 = vmatpush3.bf16.msra.mxu1 %v6298_v18  ;;  %2142 = vmatprep.subr.bf16.mxu0 %v4839_v20 }
 0x145   : > { %4484 = vmatprep.subr.bf16.mxu1 %v6307_v22 }
 0x147   : > { %2143 = vmatpush1.bf16.msra.mxu0 %v4837_v24 }
 0x148   : > { %4485 = vmatpush3.bf16.msra.mxu1 %v6317_v26  ;;  %2144 = vmatprep.subr.bf16.mxu0 %v4844_v28 }
 0x149   : > { %4486 = vmatprep.subr.bf16.mxu1 %v6326_v31 }
 0x14b   : > { %2145 = vmatpush1.bf16.msra.mxu0 %v4842_v33 }
 0x14c   : > { %4487 = vmatpush3.bf16.msra.mxu1 %v6335_v36  ;;  %2146 = vmatprep.subr.bf16.mxu0 %v4849_v38 }
 0x14d   : > { %2232 = vmatprep.subr.bf16.mxu1 %v6155_v37  ;;  %v6448_v37 = vld [vmem:[%s7054_s2 + $0x608] ss:$12 sps:$4 sm:$0xff]  }
 0x14f   : > { %2206 = vmatmul.mubr.bf16.vlgmr.msra.gmra.mrb[16].mxu1 %v6162_v39  ;;  %2147 = vmatpush1.bf16.msra.mxu0 %v4847_v42 }
 0x150   : > { %2233 = vmatpush1.bf16.msra.mxu1 %v6168_v43  ;;  %2148 = vmatprep.subr.bf16.mxu0 %v4852_v44  ;;  %v6467_v43 = vld [vmem:[%s7054_s2 + $0x618] ss:$12 sps:$4 sm:$0xff]  }
 0x151   : > { %2234 = vmatprep.subr.bf16.mxu1 %v6179_v51  ;;  %2264 = vmatprep.mubr.bf16.mxu1 %v6350_v45  ;;  %v6479_v51 = vld [vmem:[%s7054_s2 + $0x634] ss:$12 sps:$4 sm:$0xff]  }
 0x153   : > { %2149 = vmatpush1.bf16.msra.mxu0 %v4850_v46 }
 0x154   : > { %2235 = vmatpush1.bf16.msra.mxu1 %v6193_v58  ;;  %2150 = vmatprep.subr.bf16.mxu0 %v4855_v47  ;;  %v6493_v58 = vld [vmem:[%s7054_s2 + $0x630] ss:$12 sps:$4 sm:$0xff]  }
 0x155   : > { %2236 = vmatprep.subr.bf16.mxu1 %v6205_v55  ;;  %v6505_v55 = vld [vmem:[%s7054_s2 + $0x64c] ss:$12 sps:$4 sm:$0xff]  }
 0x157   : > { %2151 = vmatpush1.bf16.msra.mxu0 %v4853_v48 }
 0x158   : > { %2237 = vmatpush1.bf16.msra.mxu1 %v6219_v62  ;;  %2152 = vmatprep.subr.bf16.mxu0 %v4858_v50  ;;  %v6517_v62 = vld [vmem:[%s7054_s2 + $0x648] ss:$12 sps:$4 sm:$0xff]  }
 0x159   : > { %2238 = vmatprep.subr.bf16.mxu1 %v6231_v53  ;;  %v6529_v53 = vld [vmem:[%s7054_s2 + $0x664] ss:$12 sps:$4 sm:$0xff]  }
 0x15b   : > { %2153 = vmatpush1.bf16.msra.mxu0 %v4856_v52 }
 0x15c   : > { %2239 = vmatpush1.bf16.msra.mxu1 %v6243_v35  ;;  %2154 = vmatprep.subr.bf16.mxu0 %v4861_v54  ;;  %v6541_v35 = vld [vmem:[%s7054_s2 + $0x660] ss:$12 sps:$4 sm:$0xff]  }
 0x15d   : > { %2240 = vmatprep.subr.bf16.mxu1 %v6255_v4  ;;  %v6553_v4 = vld [vmem:[%s7054_s2 + $0x67c] ss:$12 sps:$4 sm:$0xff]  }
 0x15f   : > { %2155 = vmatpush1.bf16.msra.mxu0 %v4859_v60 }
 0x160   : > { %2241 = vmatpush1.bf16.msra.mxu1 %v6267_v8  ;;  %2156 = vmatprep.subr.bf16.mxu0 %v4864_v1  ;;  %v6565_v8 = vld [vmem:[%s7054_s2 + $0x678] ss:$12 sps:$4 sm:$0xff]  }
 0x161   : > { %2242 = vmatprep.subr.bf16.mxu1 %v6279_v12  ;;  %v6577_v12 = vld [vmem:[%s7054_s2 + $0x694] ss:$12 sps:$4 sm:$0xff]  }
 0x163   : > { %2157 = vmatpush1.bf16.msra.mxu0 %v4862_v3 }
 0x164   : > { %2243 = vmatpush1.bf16.msra.mxu1 %v6291_v16  ;;  %2158 = vmatprep.subr.bf16.mxu0 %v4867_v5  ;;  %v6583_v16 = vld [vmem:[%s7054_s2 + $0x758] ss:$12 sps:$4 sm:$0xff]  }
 0x165   : > { %2244 = vmatprep.subr.bf16.mxu1 %v4839_v20 }
 0x167   : > { %2159 = vmatpush1.bf16.msra.mxu0 %v4865_v7 }
 0x168   : > { %2245 = vmatpush1.bf16.msra.mxu1 %v4837_v24  ;;  %2160 = vmatprep.subr.bf16.mxu0 %v4870_v9  ;;  %v6589_v24 = vld [vmem:[%s7054_s2 + $0x690] ss:$12 sps:$4 sm:$0xff]  }
 0x169   : > { %2246 = vmatprep.subr.bf16.mxu1 %v4844_v28  ;;  %v6596_v28 = vld [vmem:[%s7054_s2 + $0x698] ss:$12 sps:$4 sm:$0xff]  }
 0x16b   : > { %2161 = vmatpush1.bf16.msra.mxu0 %v4868_v11 }
 0x16c   : > { %2247 = vmatpush1.bf16.msra.mxu1 %v4842_v33  ;;  %4494 = vmatprep.subr.bf16.mxu0 %v6160_v41  ;;  %v6453_v41 = vld [vmem:[%s7054_s2 + $0x61c] ss:$12 sps:$4 sm:$0xff]  }
 0x16d   : > { %2248 = vmatprep.subr.bf16.mxu1 %v4849_v38  ;;  %v6610_v38 = vld [vmem:[%s7054_s2 + $0x770] ss:$12 sps:$4 sm:$0xff]  }
 0x16e   : > { %2163 = vmatmul.mubr.bf16.vlgmr.msra.gmra.mrb[0].mxu0 %v6162_v39  ;;  %v6459_v39 = vld [vmem:[%s7054_s2 + $0x6e0] ss:$12 sps:$4 sm:$0xff]  }
 0x16f   : > { %4495 = vmatpush3.bf16.msra.mxu0 %v6174_v49  ;;  %2307 = vmatprep.mubr.bf16.mxu0 %v6350_v45  ;;  %v6474_v49 = vld [vmem:[%s7054_s2 + $0x620] ss:$12 sps:$4 sm:$0xff]  }
 0x170   : > { %2249 = vmatpush1.bf16.msra.mxu1 %v4847_v42  ;;  %4496 = vmatprep.subr.bf16.mxu0 %v6185_v57  ;;  %v6485_v57 = vld [vmem:[%s7054_s2 + $0x6f8] ss:$12 sps:$4 sm:$0xff]   ;;  %v6619_v42 = vld [vmem:[%s7054_s2 + $0x6a8] ss:$12 sps:$4 sm:$0xff]  }
 0x171   : > { %2250 = vmatprep.subr.bf16.mxu1 %v4852_v44  ;;  %v6626_v44 = vld [vmem:[%s7054_s2 + $0x6b0] ss:$12 sps:$4 sm:$0xff]  }
 0x173   : > { %4497 = vmatpush3.bf16.msra.mxu0 %v6200_v59  ;;  %v6500_v59 = vld [vmem:[%s7054_s2 + $0x638] ss:$12 sps:$4 sm:$0xff]  }
 0x174   : > { %2251 = vmatpush1.bf16.msra.mxu1 %v4850_v46  ;;  %4498 = vmatprep.subr.bf16.mxu0 %v6211_v61  ;;  %v6511_v61 = vld [vmem:[%s7054_s2 + $0x710] ss:$12 sps:$4 sm:$0xff]   ;;  %v6635_v46 = vld [vmem:[%s5307_s11 + $0x4] ss:$8 sps:$4 sm:$0x3e]  }
 0x175   : > { %2252 = vmatprep.subr.bf16.mxu1 %v4855_v47  ;;  %v6641_v47 = vld [vmem:[%s7054_s2 + $0x6c0] ss:$12 sps:$4 sm:$0xff]  }
 0x177   : > { %4499 = vmatpush3.bf16.msra.mxu0 %v6226_v63  ;;  %v6524_v63 = vld [vmem:[%s7054_s2 + $0x650] ss:$12 sps:$4 sm:$0xff]  }
 0x178   : > { %2253 = vmatpush1.bf16.msra.mxu1 %v4853_v48  ;;  %4500 = vmatprep.subr.bf16.mxu0 %v6237_v0  ;;  %v6535_v0 = vld [vmem:[%s7054_s2 + $0x728] ss:$12 sps:$4 sm:$0xff]  }
 0x179   : > { %2254 = vmatprep.subr.bf16.mxu1 %v4858_v50  ;;  %v4919_v48 = vld [vmem:[%s7054_s2 + $0x6dc] ss:$12 sps:$4 sm:$0xff]   ;;  %v2744_v50 = vrot.slane %v6635_v46, 1  ;;  %v4979_v46 = vld [vmem:[%s7056_s4 + $0x64] ss:$8 sps:$4 sm:$0xff]  }
 0x17b   : > { %4501 = vmatpush3.bf16.msra.mxu0 %v6250_v2  ;;  %v6548_v2 = vld [vmem:[%s7054_s2 + $0x668] ss:$12 sps:$4 sm:$0xff]  }
 0x17c   : > { %2255 = vmatpush1.bf16.msra.mxu1 %v4856_v52  ;;  %4502 = vmatprep.subr.bf16.mxu0 %v6261_v6  ;;  %v6559_v6 = vld [vmem:[%s7054_s2 + $0x740] ss:$12 sps:$4 sm:$0xff]   ;;  %v4917_v52 = vld [vmem:[%s7054_s2 + $0x6d8] ss:$12 sps:$4 sm:$0xff]  }
 0x17d   : > { %2256 = vmatprep.subr.bf16.mxu1 %v4861_v54  ;;  %v4922_v54 = vld [vmem:[%s7054_s2 + $0x6f4] ss:$12 sps:$4 sm:$0xff]  }
 0x17f   : > { %4503 = vmatpush3.bf16.msra.mxu0 %v6274_v10  ;;  %v6572_v10 = vld [vmem:[%s7054_s2 + $0x680] ss:$12 sps:$4 sm:$0xff]  }
 0x180   : > { %2257 = vmatpush1.bf16.msra.mxu1 %v4859_v60  ;;  %4504 = vmatprep.subr.bf16.mxu0 %v6285_v14  ;;  %v4920_v60 = vld [vmem:[%s7054_s2 + $0x6f0] ss:$12 sps:$4 sm:$0xff]  }
 0x181   : > { %2258 = vmatprep.subr.bf16.mxu1 %v4864_v1  ;;  %v4400_v13 = vpop.f32.mrb[4].mxu0  ;;  %v4925_v1 = vld [vmem:[%s7054_s2 + $0x70c] ss:$12 sps:$4 sm:$0xff]  }
 0x182   : > { %v4401_v15 = vpop.f32.mrb[5].mxu0 }
 0x183   : > { %4505 = vmatpush3.bf16.msra.mxu0 %v6298_v18  ;;  %v6418_v56 = vadd.f32 %v4401_v15, %v4400_v13  ;;  %v4403_v17 = vpop.f32.mrb[6].mxu0  ;;  %v4934_v13 = vld [vmem:[%s7054_s2 + $0x754] ss:$12 sps:$4 sm:$0xff]  }
 0x184   : > { %2259 = vmatpush1.bf16.msra.mxu1 %v4862_v3  ;;  %4506 = vmatprep.subr.bf16.mxu0 %v6307_v22  ;;  %v4404_v19 = vpop.f32.mrb[7].mxu0  ;;  %v4923_v3 = vld [vmem:[%s7054_s2 + $0x708] ss:$12 sps:$4 sm:$0xff]  }
 0x185   : > { %2260 = vmatprep.subr.bf16.mxu1 %v4867_v5  ;;  %v6421_v21 = vadd.f32 %v4404_v19, %v4403_v17  ;;  %v4928_v5 = vld [vmem:[%s7054_s2 + $0x724] ss:$12 sps:$4 sm:$0xff]  }
 0x186   : > { %v4932_v17 = vld [vmem:[%s7054_s2 + $0x750] ss:$12 sps:$4 sm:$0xff]  }
 0x187   : > { %4507 = vmatpush3.bf16.msra.mxu0 %v6317_v26 }
 0x188   : > { %2261 = vmatpush1.bf16.msra.mxu1 %v4865_v7  ;;  %4508 = vmatprep.subr.bf16.mxu0 %v6326_v31  ;;  %v6601_v31 = vld [vmem:[%s7054_s2 + $0x6ac] ss:$12 sps:$4 sm:$0xff]  }
 0x189   : > { %2262 = vmatprep.subr.bf16.mxu1 %v4870_v9  ;;  %v4926_v7 = vld [vmem:[%s7054_s2 + $0x720] ss:$12 sps:$4 sm:$0xff]   ;;  %v4931_v9 = vld [vmem:[%s7054_s2 + $0x73c] ss:$12 sps:$4 sm:$0xff]  }
 0x18b   : > { %4509 = vmatpush3.bf16.msra.mxu0 %v6335_v36 }
 0x18c   : > { %2263 = vmatpush1.bf16.msra.mxu1 %v4868_v11  ;;  %2645 = vmatprep.subr.bf16.mxu0 %v6429_v25  ;;  %v4929_v11 = vld [vmem:[%s7054_s2 + $0x738] ss:$12 sps:$4 sm:$0xff]  }
 0x18d   : > { %4516 = vmatprep.subr.bf16.mxu1 %v6434_v29 }
 0x18e   : > { %2308 = vmatmul.mubr.bf16.vlgmr.msra.gmra.mrb[16].mxu0 %v6436_v30 }
 0x18f   : > { %2265 = vmatmul.mubr.bf16.vlgmr.msra.gmra.mrb[8].mxu1 %v6436_v30  ;;  %2646 = vmatpush1.bf16.msra.mxu0 %v6442_v32 }
 0x190   : > { %4517 = vmatpush3.bf16.msra.mxu1 %v6448_v37  ;;  %2647 = vmatprep.subr.bf16.mxu0 %v6453_v41 }
 0x191   : > { %4518 = vmatprep.subr.bf16.mxu1 %v6459_v39  ;;  %2720 = vmatprep.mubr.bf16.mxu1 %v6350_v45 }
 0x192   : > { %2677 = vmatprep.mubr.bf16.mxu0 %v6350_v45  ;;  %v6631_v45 = vld [vmem:[%s7054_s2 + $0x6c4] ss:$12 sps:$4 sm:$0xff]  }
 0x193   : > { %2648 = vmatpush1.bf16.msra.mxu0 %v6467_v43 }
 0x194   : > { %4519 = vmatpush3.bf16.msra.mxu1 %v6474_v49  ;;  %2649 = vmatprep.subr.bf16.mxu0 %v6479_v51 }
 0x195   : > { %4520 = vmatprep.subr.bf16.mxu1 %v6485_v57 }
 0x197   : > { %2650 = vmatpush1.bf16.msra.mxu0 %v6493_v58 }
 0x198   : > { %4521 = vmatpush3.bf16.msra.mxu1 %v6500_v59  ;;  %2651 = vmatprep.subr.bf16.mxu0 %v6505_v55 }
 0x199   : > { %4522 = vmatprep.subr.bf16.mxu1 %v6511_v61 }
 0x19b   : > { %2652 = vmatpush1.bf16.msra.mxu0 %v6517_v62 }
 0x19c   : > { %4523 = vmatpush3.bf16.msra.mxu1 %v6524_v63  ;;  %2653 = vmatprep.subr.bf16.mxu0 %v6529_v53 }
 0x19d   : > { %4524 = vmatprep.subr.bf16.mxu1 %v6535_v0 }
 0x19f   : > { %2654 = vmatpush1.bf16.msra.mxu0 %v6541_v35 }
 0x1a0   : > { %4525 = vmatpush3.bf16.msra.mxu1 %v6548_v2  ;;  %2655 = vmatprep.subr.bf16.mxu0 %v6553_v4 }
 0x1a1   : > { %v4422_v14 = vpop.f32.mrb[8].mxu0  ;;  %4526 = vmatprep.subr.bf16.mxu1 %v6559_v6 }
 0x1a2   : > { %v4423_v18 = vpop.f32.mrb[9].mxu0 }
 0x1a3   : > { %v4424_v20 = vadd.f32 %v4423_v18, %v4422_v14  ;;  %v4425_v22 = vpop.f32.mrb[10].mxu0  ;;  %2656 = vmatpush1.bf16.msra.mxu0 %v6565_v8  ;;  %v4964_v14 = vld [vmem:[%s7057_s5 + $0x34] ss:$8 sps:$4 sm:$0xff]   ;;  %v4962_v18 = vld [vmem:[%s7057_s5 + $0x30] ss:$8 sps:$4 sm:$0xff]  }
 0x1a4   : > { %4527 = vmatpush3.bf16.msra.mxu1 %v6572_v10  ;;  %v4426_v26 = vpop.f32.mrb[11].mxu0  ;;  %2657 = vmatprep.subr.bf16.mxu0 %v6577_v12 }
 0x1a5   : > { %v6604_v33 = vadd.f32 %v4424_v20, %v6418_v56  ;;  %v4427_v36 = vadd.f32 %v4426_v26, %v4425_v22  ;;  %4528 = vmatprep.subr.bf16.mxu1 %v6583_v16  ;;  %v4967_v20 = vld [vmem:[%s7056_s4 + $0x44] ss:$8 sps:$4 sm:$0xff]   ;;  %v4968_v26 = vld [vmem:[%s7057_s5 + $0x40] ss:$8 sps:$4 sm:$0xff]  }
 0x1a6   : > { %v4970_v22 = vld [vmem:[%s7057_s5 + $0x44] ss:$8 sps:$4 sm:$0xff]  }
 0x1a7   : > { %v6613_v40 = vadd.f32 %v4427_v36, %v6421_v21  ;;  %2658 = vmatpush1.bf16.msra.mxu0 %v6589_v24  ;;  %v4974_v36 = vld [vmem:[%s7057_s5 + $0x50] ss:$8 sps:$4 sm:$0xff]  }
 0x1a8   : > { %4529 = vmatpush3.bf16.msra.mxu1 %v6596_v28  ;;  %2659 = vmatprep.subr.bf16.mxu0 %v6601_v31 }
 0x1a9   : > { %4530 = vmatprep.subr.bf16.mxu1 %v6610_v38 }
 0x1ab   : > { %2660 = vmatpush1.bf16.msra.mxu0 %v6619_v42 }
 0x1ac   : > { %4531 = vmatpush3.bf16.msra.mxu1 %v6626_v44  ;;  %2661 = vmatprep.subr.bf16.mxu0 %v6631_v45 }
 0x1ad   : > { %2747 = vmatprep.subr.bf16.mxu1 %v6429_v25 }
 0x1af   : > { %2721 = vmatmul.mubr.bf16.vlgmr.msra.gmra.mrb[20].mxu1 %v6436_v30  ;;  %2662 = vmatpush1.bf16.msra.mxu0 %v6641_v47 }
 0x1b0   : > { %2748 = vmatpush1.bf16.msra.mxu1 %v6442_v32  ;;  %2663 = vmatprep.subr.bf16.mxu0 %v4919_v48 }
 0x1b1   : > { %2749 = vmatprep.subr.bf16.mxu1 %v6453_v41  ;;  %2779 = vmatprep.mubr.bf16.mxu1 %v2744_v50 }
 0x1b3   : > { %2664 = vmatpush1.bf16.msra.mxu0 %v4917_v52 }
 0x1b4   : > { %2750 = vmatpush1.bf16.msra.mxu1 %v6467_v43  ;;  %2665 = vmatprep.subr.bf16.mxu0 %v4922_v54  ;;  %v4935_v43 = vld [vmem:[%s7054_s2 + $0x768] ss:$12 sps:$4 sm:$0xff]  }
 0x1b5   : > { %2751 = vmatprep.subr.bf16.mxu1 %v6479_v51 }
 0x1b7   : > { %2666 = vmatpush1.bf16.msra.mxu0 %v4920_v60 }
 0x1b8   : > { %2752 = vmatpush1.bf16.msra.mxu1 %v6493_v58  ;;  %2667 = vmatprep.subr.bf16.mxu0 %v4925_v1 }
 0x1b9   : > { %2753 = vmatprep.subr.bf16.mxu1 %v6505_v55  ;;  %v4941_v55 = vld [vmem:[%s7056_s4] ss:$8 sps:$4 sm:$0xff]  }
 0x1bb   : > { %2668 = vmatpush1.bf16.msra.mxu0 %v4923_v3 }
 0x1bc   : > { %2754 = vmatpush1.bf16.msra.mxu1 %v6517_v62  ;;  %2669 = vmatprep.subr.bf16.mxu0 %v4928_v5  ;;  %v4944_v62 = vld [vmem:[%s7057_s5] ss:$8 sps:$4 sm:$0xff]  }
 0x1bd   : > { %2755 = vmatprep.subr.bf16.mxu1 %v6529_v53  ;;  %v4949_v53 = vld [vmem:[%s7056_s4 + $0x14] ss:$8 sps:$4 sm:$0xff]  }
 0x1bf   : > { %2670 = vmatpush1.bf16.msra.mxu0 %v4926_v7 }
 0x1c0   : > { %2756 = vmatpush1.bf16.msra.mxu1 %v6541_v35  ;;  %2671 = vmatprep.subr.bf16.mxu0 %v4931_v9  ;;  %v4947_v35 = vld [vmem:[%s7056_s4 + $0x10] ss:$8 sps:$4 sm:$0xff]  }
 0x1c1   : > { %2757 = vmatprep.subr.bf16.mxu1 %v6553_v4  ;;  %v4955_v4 = vld [vmem:[%s7056_s4 + $0x24] ss:$8 sps:$4 sm:$0xff]  }
 0x1c2   : > { %v4444_v15 = vpop.f32.mrb[12].mxu1 }
 0x1c3   : > { %v4445_v56 = vpop.f32.mrb[13].mxu1  ;;  %2672 = vmatpush1.bf16.msra.mxu0 %v4929_v11 }
 0x1c4   : > { %v4446_v19 = vadd.f32 %v4445_v56, %v4444_v15  ;;  %v4447_v21 = vpop.f32.mrb[14].mxu1  ;;  %2758 = vmatpush1.bf16.msra.mxu1 %v6565_v8  ;;  %2673 = vmatprep.subr.bf16.mxu0 %v4934_v13  ;;  %v4953_v8 = vld [vmem:[%s7056_s4 + $0x20] ss:$8 sps:$4 sm:$0xff]   ;;  %v4997_v56 = vld [vmem:[%s7056_s4 + $0x94] ss:$8 sps:$4 sm:$0xff]  }
 0x1c5   : > { %v4448_v25 = vpop.f32.mrb[15].mxu1  ;;  %2759 = vmatprep.subr.bf16.mxu1 %v6577_v12  ;;  %v4961_v12 = vld [vmem:[%s7056_s4 + $0x34] ss:$8 sps:$4 sm:$0xff]   ;;  %v4992_v15 = vld [vmem:[%s7057_s5 + $0x80] ss:$8 sps:$4 sm:$0xff]  }
 0x1c6   : > { %v6701_v32 = vadd.f32 %v4446_v19, %v6145_v27  ;;  %v4449_v41 = vadd.f32 %v4448_v25, %v4447_v21  ;;  %v4938_v27 = vld [vmem:[%s5307_s11] ss:$8 sps:$4 sm:$0x3e]   ;;  %v4995_v19 = vld [vmem:[%s7056_s4 + $0x90] ss:$8 sps:$4 sm:$0xff]  }
 0x1c7   : > { %2674 = vmatpush1.bf16.msra.mxu0 %v4932_v17  ;;  %v4998_v21 = vld [vmem:[%s7057_s5 + $0x90] ss:$8 sps:$4 sm:$0xff]   ;;  %v5006_v25 = vld [vmem:[%s7057_s5 + $0xa4] ss:$8 sps:$4 sm:$0xff]  }
 0x1c8   : > { %v6707_v51 = vadd.f32 %v4449_v41, %v6149_v34  ;;  %2760 = vmatpush1.bf16.msra.mxu1 %v6589_v24  ;;  %2675 = vmatprep.subr.bf16.mxu0 %v4937_v23  ;;  %v2743_v34 = vrot.slane %v4938_v27, 1  ;;  %v4965_v24 = vld [vmem:[%s7056_s4 + $0x40] ss:$8 sps:$4 sm:$0xff]   ;;  %v5007_v27 = vld [vmem:[%s7056_s4 + $0xb0] ss:$8 sps:$4 sm:$0xff]  }
 0x1c9   : > { %2761 = vmatprep.subr.bf16.mxu1 %v6601_v31  ;;  %v4976_v31 = vld [vmem:[%s7057_s5 + $0x54] ss:$8 sps:$4 sm:$0xff]   ;;  %v5004_v41 = vld [vmem:[%s7057_s5 + $0xa0] ss:$8 sps:$4 sm:$0xff]  }
 0x1cb   : > { %2676 = vmatpush1.bf16.msra.mxu0 %v4935_v43 }
 0x1cc   : > { %2762 = vmatpush1.bf16.msra.mxu1 %v6619_v42  ;;  %4538 = vmatprep.subr.bf16.mxu0 %v6434_v29 }
 0x1cd   : > { %2763 = vmatprep.subr.bf16.mxu1 %v6631_v45  ;;  %v4977_v45 = vld [vmem:[%s7056_s4 + $0x60] ss:$8 sps:$4 sm:$0xff]  }
 0x1ce   : > { %2678 = vmatmul.mubr.bf16.vlgmr.msra.gmra.mrb[0].mxu0 %v6436_v30 }
 0x1cf   : > { %4539 = vmatpush3.bf16.msra.mxu0 %v6448_v37  ;;  %2822 = vmatprep.mubr.bf16.mxu0 %v2744_v50  ;;  %v4982_v50 = vld [vmem:[%s7057_s5 + $0x64] ss:$8 sps:$4 sm:$0xff]  }
 0x1d0   : > { %2764 = vmatpush1.bf16.msra.mxu1 %v6641_v47  ;;  %4540 = vmatprep.subr.bf16.mxu0 %v6459_v39 }
 0x1d1   : > { %2765 = vmatprep.subr.bf16.mxu1 %v4919_v48  ;;  %v4980_v48 = vld [vmem:[%s7057_s5 + $0x60] ss:$8 sps:$4 sm:$0xff]  }
 0x1d3   : > { %4541 = vmatpush3.bf16.msra.mxu0 %v6474_v49 }
 0x1d4   : > { %2766 = vmatpush1.bf16.msra.mxu1 %v4917_v52  ;;  %4542 = vmatprep.subr.bf16.mxu0 %v6485_v57 }
 0x1d5   : > { %2767 = vmatprep.subr.bf16.mxu1 %v4922_v54 }
 0x1d7   : > { %4543 = vmatpush3.bf16.msra.mxu0 %v6500_v59 }
 0x1d8   : > { %2768 = vmatpush1.bf16.msra.mxu1 %v4920_v60  ;;  %4544 = vmatprep.subr.bf16.mxu0 %v6511_v61  ;;  %v4943_v61 = vld [vmem:[%s7056_s4 + $0x4] ss:$8 sps:$4 sm:$0xff]   ;;  %v4985_v60 = vld [vmem:[%s7056_s4 + $0x74] ss:$8 sps:$4 sm:$0xff]  }
 0x1d9   : > { %2769 = vmatprep.subr.bf16.mxu1 %v4925_v1  ;;  %v4983_v1 = vld [vmem:[%s7056_s4 + $0x70] ss:$8 sps:$4 sm:$0xff]  }
 0x1db   : > { %4545 = vmatpush3.bf16.msra.mxu0 %v6524_v63  ;;  %v4946_v63 = vld [vmem:[%s7057_s5 + $0x4] ss:$8 sps:$4 sm:$0xff]  }
 0x1dc   : > { %2770 = vmatpush1.bf16.msra.mxu1 %v4923_v3  ;;  %4546 = vmatprep.subr.bf16.mxu0 %v6535_v0  ;;  %v4952_v0 = vld [vmem:[%s7057_s5 + $0x14] ss:$8 sps:$4 sm:$0xff]  }
 0x1dd   : > { %2771 = vmatprep.subr.bf16.mxu1 %v4928_v5  ;;  %v4988_v3 = vld [vmem:[%s7057_s5 + $0x74] ss:$8 sps:$4 sm:$0xff]  }
 0x1df   : > { %4547 = vmatpush3.bf16.msra.mxu0 %v6548_v2  ;;  %v4950_v2 = vld [vmem:[%s7057_s5 + $0x10] ss:$8 sps:$4 sm:$0xff]  }
 0x1e0   : > { %2772 = vmatpush1.bf16.msra.mxu1 %v4926_v7  ;;  %4548 = vmatprep.subr.bf16.mxu0 %v6559_v6  ;;  %v4958_v6 = vld [vmem:[%s7057_s5 + $0x24] ss:$8 sps:$4 sm:$0xff]   ;;  %v4986_v7 = vld [vmem:[%s7057_s5 + $0x70] ss:$8 sps:$4 sm:$0xff]  }
 0x1e1   : > { %2773 = vmatprep.subr.bf16.mxu1 %v4931_v9  ;;  %v4991_v9 = vld [vmem:[%s7056_s4 + $0x84] ss:$8 sps:$4 sm:$0xff]  }
 0x1e3   : > { %4549 = vmatpush3.bf16.msra.mxu0 %v6572_v10  ;;  %v4956_v10 = vld [vmem:[%s7057_s5 + $0x20] ss:$8 sps:$4 sm:$0xff]  }
 0x1e4   : > { %2774 = vmatpush1.bf16.msra.mxu1 %v4929_v11  ;;  %4550 = vmatprep.subr.bf16.mxu0 %v6583_v16  ;;  %v4959_v16 = vld [vmem:[%s7056_s4 + $0x30] ss:$8 sps:$4 sm:$0xff]   ;;  %v4994_v11 = vld [vmem:[%s7057_s5 + $0x84] ss:$8 sps:$4 sm:$0xff]  }
 0x1e5   : > { %2775 = vmatprep.subr.bf16.mxu1 %v4934_v13  ;;  %v4989_v13 = vld [vmem:[%s7056_s4 + $0x80] ss:$8 sps:$4 sm:$0xff]  }
 0x1e7   : > { %4551 = vmatpush3.bf16.msra.mxu0 %v6596_v28  ;;  %v4973_v28 = vld [vmem:[%s7056_s4 + $0x54] ss:$8 sps:$4 sm:$0xff]  }
 0x1e8   : > { %2776 = vmatpush1.bf16.msra.mxu1 %v4932_v17  ;;  %4552 = vmatprep.subr.bf16.mxu0 %v6610_v38  ;;  %v5000_v17 = vld [vmem:[%s7057_s5 + $0x94] ss:$8 sps:$4 sm:$0xff]  }
 0x1e9   : > { %2777 = vmatprep.subr.bf16.mxu1 %v4937_v23  ;;  %v5003_v23 = vld [vmem:[%s7056_s4 + $0xa4] ss:$8 sps:$4 sm:$0xff]  }
 0x1eb   : > { %4553 = vmatpush3.bf16.msra.mxu0 %v6626_v44 }
 0x1ec   : > { %2778 = vmatpush1.bf16.msra.mxu1 %v4935_v43  ;;  %3163 = vmatprep.subr.bf16.mxu0 %v4943_v61  ;;  %v5009_v43 = vld [vmem:[%s7056_s4 + $0xb4] ss:$8 sps:$4 sm:$0xff]   ;;  %v5022_v61 = vld [vmem:[%s7057_s5 + $0xd0] ss:$8 sps:$4 sm:$0xff]  }
 0x1ed   : > { %3537 = vmatprep.subr.bf16.mxu1 %v4946_v63  ;;  %v5030_v63 = vld [vmem:[%s7057_s5 + $0xe4] ss:$8 sps:$4 sm:$0xff]  }
 0x1ee   : > { %2823 = vmatmul.mubr.bf16.vlgmr.msra.gmra.mrb[20].mxu0 %v2743_v34 }
 0x1ef   : > { %2780 = vmatmul.mubr.bf16.vlgmr.msra.gmra.mrb[8].mxu1 %v2743_v34  ;;  %3164 = vmatpush1.bf16.msra.mxu0 %v4941_v55  ;;  %v5010_v34 = vld [vmem:[%s7057_s5 + $0xb0] ss:$8 sps:$4 sm:$0xff]  }
 0x1f0   : > { %3538 = vmatpush1.bf16.msra.mxu1 %v4944_v62  ;;  %3165 = vmatprep.subr.bf16.mxu0 %v4949_v53  ;;  %v5019_v55 = vld [vmem:[%s7056_s4 + $0xd0] ss:$8 sps:$4 sm:$0xff]   ;;  %v5027_v62 = vld [vmem:[%s7056_s4 + $0xe4] ss:$8 sps:$4 sm:$0xff]   ;;  %v5025_v53 = vld [vmem:[%s7056_s4 + $0xe0] ss:$8 sps:$4 sm:$0xff]  }
 0x1f1   : > { %3539 = vmatprep.subr.bf16.mxu1 %v4952_v0  ;;  %v5028_v0 = vld [vmem:[%s7057_s5 + $0xe0] ss:$8 sps:$4 sm:$0xff]  }
 0x1f3   : > { %3166 = vmatpush1.bf16.msra.mxu0 %v4947_v35  ;;  %v5033_v35 = vld [vmem:[%s7056_s4 + $0xf4] ss:$8 sps:$4 sm:$0xff]  }
 0x1f4   : > { %3540 = vmatpush1.bf16.msra.mxu1 %v4950_v2  ;;  %3167 = vmatprep.subr.bf16.mxu0 %v4955_v4  ;;  %v5036_v2 = vld [vmem:[%s7057_s5 + $0xf4] ss:$8 sps:$4 sm:$0xff]   ;;  %v5031_v4 = vld [vmem:[%s7056_s4 + $0xf0] ss:$8 sps:$4 sm:$0xff]  }
 0x1f5   : > { %3541 = vmatprep.subr.bf16.mxu1 %v4958_v6  ;;  %v5034_v6 = vld [vmem:[%s7057_s5 + $0xf0] ss:$8 sps:$4 sm:$0xff]  }
 0x1f7   : > { %3168 = vmatpush1.bf16.msra.mxu0 %v4953_v8  ;;  %v5039_v8 = vld [vmem:[%s7056_s4 + $0x104] ss:$8 sps:$4 sm:$0xff]  }
 0x1f8   : > { %3542 = vmatpush1.bf16.msra.mxu1 %v4956_v10  ;;  %3169 = vmatprep.subr.bf16.mxu0 %v4961_v12  ;;  %v5042_v10 = vld [vmem:[%s7057_s5 + $0x104] ss:$8 sps:$4 sm:$0xff]  }
 0x1f9   : > { %3543 = vmatprep.subr.bf16.mxu1 %v4964_v14 }
 0x1fb   : > { %3170 = vmatpush1.bf16.msra.mxu0 %v4959_v16 }
 0x1fc   : > { %3544 = vmatpush1.bf16.msra.mxu1 %v4962_v18  ;;  %3171 = vmatprep.subr.bf16.mxu0 %v4967_v20 }
 0x1fd   : > { %3545 = vmatprep.subr.bf16.mxu1 %v4970_v22 }
 0x1ff   : > { %3172 = vmatpush1.bf16.msra.mxu0 %v4965_v24 }
 0x200   : > { %3546 = vmatpush1.bf16.msra.mxu1 %v4968_v26  ;;  %3173 = vmatprep.subr.bf16.mxu0 %v4973_v28 }
 0x201   : > { %v4466_v29 = vpop.f32.mrb[12].mxu0  ;;  %3547 = vmatprep.subr.bf16.mxu1 %v4976_v31 }
 0x202   : > { %v4467_v30 = vpop.f32.mrb[13].mxu0 }
 0x203   : > { %v4468_v37 = vadd.f32 %v4467_v30, %v4466_v29  ;;  %v4469_v39 = vpop.f32.mrb[14].mxu0  ;;  %v5015_v29 = vld [vmem:[%s7056_s4 + $0xc4] ss:$8 sps:$4 sm:$0xff]  }
 0x204   : > { %v4470_v49 = vpop.f32.mrb[15].mxu0  ;;  %3548 = vmatpush1.bf16.msra.mxu1 %v4974_v36  ;;  %v5018_v30 = vld [vmem:[%s7057_s5 + $0xc4] ss:$8 sps:$4 sm:$0xff]  }
 0x205   : > { %v6733_v57 = vadd.f32 %v4468_v37, %v6604_v33  ;;  %v4471_v58 = vadd.f32 %v4470_v49, %v4469_v39  ;;  %v4971_v33 = vld [vmem:[%s7056_s4 + $0x50] ss:$8 sps:$4 sm:$0xff]   ;;  %3549 = vmatprep.subr.bf16.mxu1 %v4982_v50  ;;  %v5013_v37 = vld [vmem:[%s7056_s4 + $0xc0] ss:$8 sps:$4 sm:$0xff]   ;;  %v5021_v49 = vld [vmem:[%s7056_s4 + $0xd4] ss:$8 sps:$4 sm:$0xff]   ;;  %v2845_v50 = vlaneseq }
 0x206   : > { %3174 = vmatpush1.bf16.msra.mxu0 %v4971_v33  ;;  %v5016_v39 = vld [vmem:[%s7057_s5 + $0xc0] ss:$8 sps:$4 sm:$0xff]  }
 0x207   : > { %v6736_v59 = vadd.f32 %v4471_v58, %v6613_v40  ;;  %3175 = vmatprep.subr.bf16.mxu0 %v4979_v46  ;;  %v5024_v58 = vld [vmem:[%s7057_s5 + $0xd4] ss:$8 sps:$4 sm:$0xff]  }
 0x208   : > { %3550 = vmatpush1.bf16.msra.mxu1 %v4980_v48 }
 0x209   : > { %3551 = vmatprep.subr.bf16.mxu1 %v4988_v3 }
 0x20a   : > { %3176 = vmatpush1.bf16.msra.mxu0 %v4977_v45 }
 0x20b   : > { %3177 = vmatprep.subr.bf16.mxu0 %v4985_v60 }
 0x20c   : > { %3552 = vmatpush1.bf16.msra.mxu1 %v4986_v7 }
 0x20d   : > { %3553 = vmatprep.subr.bf16.mxu1 %v4994_v11 }
 0x20e   : > { %3178 = vmatpush1.bf16.msra.mxu0 %v4983_v1 }
 0x20f   : > { %3179 = vmatprep.subr.bf16.mxu0 %v4991_v9 }
 0x210   : > { %3554 = vmatpush1.bf16.msra.mxu1 %v4992_v15 }
 0x211   : > { %3555 = vmatprep.subr.bf16.mxu1 %v5000_v17 }
 0x212   : > { %3180 = vmatpush1.bf16.msra.mxu0 %v4989_v13 }
 0x213   : > { %3181 = vmatprep.subr.bf16.mxu0 %v4997_v56 }
 0x214   : > { %3556 = vmatpush1.bf16.msra.mxu1 %v4998_v21 }
 0x215   : > { %3557 = vmatprep.subr.bf16.mxu1 %v5006_v25 }
 0x216   : > { %3182 = vmatpush1.bf16.msra.mxu0 %v4995_v19 }
 0x217   : > { %3183 = vmatprep.subr.bf16.mxu0 %v5003_v23 }
 0x218   : > { %3558 = vmatpush1.bf16.msra.mxu1 %v5004_v41 }
 0x222   : > { %v4488_v38 = vpop.f32.mrb[16].mxu1 }
 0x223   : > { %v4489_v40 = vpop.f32.mrb[17].mxu1 }
 0x224   : > { %v4490_v42 = vadd.f32 %v4489_v40, %v4488_v38  ;;  %v4491_v44 = vpop.f32.mrb[18].mxu1 }
 0x225   : > { %v4492_v47 = vpop.f32.mrb[19].mxu1 }
 0x226   : > { %v6823_v52 = vadd.f32 %v4490_v42, %v6701_v32  ;;  %v4493_v54 = vadd.f32 %v4492_v47, %v4491_v44  ;;  %v5001_v32 = vld [vmem:[%s7056_s4 + $0xa0] ss:$8 sps:$4 sm:$0xff]  }
 0x227   : > { %3184 = vmatpush1.bf16.msra.mxu0 %v5001_v32 }
 0x228   : > { %v6835_v5 = vadd.f32 %v4493_v54, %v6707_v51  ;;  %v5012_v51 = vld [vmem:[%s7057_s5 + $0xb4] ss:$8 sps:$4 sm:$0xff]   ;;  %3185 = vmatprep.subr.bf16.mxu0 %v5009_v43  ;;  %v2846_v54 = vshrl.u32 %v2845_v50, 7  ;;  %v5070_v50 = vld [vmem:[%s7057_s5 + $0x150] ss:$8 sps:$4 sm:$0xff]  }
 0x229   : > { %3559 = vmatprep.subr.bf16.mxu1 %v5012_v51 }
 0x22a   : > { %3560 = vmatpush1.bf16.msra.mxu1 %v5010_v34  ;;  %v2851_v60 = vsub.s32 1, %v2846_v54  ;;  %v2855_v1 = vsub.s32 2, %v2846_v54 }
 0x22b   : > { %3186 = vmatpush1.bf16.msra.mxu0 %v5007_v27  ;;  %3561 = vmatprep.subr.bf16.mxu1 %v5018_v30 }
 0x22c   : > { %3187 = vmatprep.subr.bf16.mxu0 %v5015_v29 }
 0x22e   : > { %3562 = vmatpush1.bf16.msra.mxu1 %v5016_v39 }
 0x22f   : > { %3188 = vmatpush1.bf16.msra.mxu0 %v5013_v37  ;;  %3563 = vmatprep.subr.bf16.mxu1 %v5024_v58 }
 0x230   : > { %3189 = vmatprep.subr.bf16.mxu0 %v5021_v49 }
 0x232   : > { %3564 = vmatpush1.bf16.msra.mxu1 %v5022_v61 }
 0x233   : > { %3190 = vmatpush1.bf16.msra.mxu0 %v5019_v55  ;;  %3565 = vmatprep.subr.bf16.mxu1 %v5030_v63 }
 0x234   : > { %3191 = vmatprep.subr.bf16.mxu0 %v5027_v62 }
 0x236   : > { %3566 = vmatpush1.bf16.msra.mxu1 %v5028_v0 }
 0x237   : > { %3192 = vmatpush1.bf16.msra.mxu0 %v5025_v53  ;;  %3567 = vmatprep.subr.bf16.mxu1 %v5036_v2  ;;  %v5037_v2 = vld [vmem:[%s7056_s4 + $0x100] ss:$8 sps:$4 sm:$0xff]  }
 0x238   : > { %3193 = vmatprep.subr.bf16.mxu0 %v5033_v35 }
 0x23a   : > { %3568 = vmatpush1.bf16.msra.mxu1 %v5034_v6 }
 0x23b   : > { %3194 = vmatpush1.bf16.msra.mxu0 %v5031_v4  ;;  %3580 = vmatprep.subr.bf16.mxu1 %v5042_v10  ;;  %v5040_v4 = vld [vmem:[%s7057_s5 + $0x100] ss:$8 sps:$4 sm:$0xff]   ;;  %v5045_v10 = vld [vmem:[%s7056_s4 + $0x114] ss:$8 sps:$4 sm:$0xff]  }
 0x23c   : > { %3206 = vmatprep.subr.bf16.mxu0 %v5039_v8 }
 0x261   : > { %v4510_v12 = vpop.f32.mrb[16].mxu0 }
 0x262   : > { %v4511_v14 = vpop.f32.mrb[17].mxu0 }
 0x263   : > { %v4512_v16 = vadd.f32 %v4511_v14, %v4510_v12  ;;  %v4513_v18 = vpop.f32.mrb[18].mxu0  ;;  %v5048_v12 = vld [vmem:[%s7057_s5 + $0x114] ss:$8 sps:$4 sm:$0xff]  }
 0x264   : > { %v4514_v20 = vpop.f32.mrb[19].mxu0 }
 0x265   : > { %v2318_v22 = vadd.f32 %v4512_v16, %v6733_v57  ;;  %v4515_v24 = vadd.f32 %v4514_v20, %v4513_v18  ;;  %v2847_v57 = vsub.s32 0, %v2846_v54  ;;  %v5043_v16 = vld [vmem:[%s7056_s4 + $0x110] ss:$8 sps:$4 sm:$0xff]   ;;  %v5051_v20 = vld [vmem:[%s7056_s4 + $0x124] ss:$8 sps:$4 sm:$0xff]  }
 0x266   : > { %v5046_v18 = vld [vmem:[%s7057_s5 + $0x110] ss:$8 sps:$4 sm:$0xff]   ;;  %v5075_v54 = vld [vmem:[%s7056_s4 + $0x164] ss:$8 sps:$4 sm:$0xff]  }
 0x267   : > { %v2321_v26 = vadd.f32 %v4515_v24, %v6736_v59  ;;  %v2843_v59 = vld [vmem:[%s7055_s3] sm:$0x7]  ;;  %v5095_v24 = vmov 0  }
 0x268   : > { %v2848_v3 = vrot.slane %v2843_v59, %v2847_v57  ;;  %v2856_v19 = vrot.slane %v2843_v59, %v2855_v1  ;;  %v5078_v57 = vld [vmem:[%s7057_s5 + $0x164] ss:$8 sps:$4 sm:$0xff]   ;;  %v5081_v1 = vld [vmem:[%s7056_s4 + $0x174] ss:$8 sps:$4 sm:$0xff]  }
 0x282   : > { %v4532_v28 = vpop.f32.mrb[20].mxu1 }
 0x283   : > { %v4533_v31 = vpop.f32.mrb[21].mxu1 }
 0x284   : > { %v4534_v33 = vadd.f32 %v4533_v31, %v4532_v28  ;;  %v4535_v36 = vpop.f32.mrb[22].mxu1  ;;  %v5052_v28 = vld [vmem:[%s7057_s5 + $0x120] ss:$8 sps:$4 sm:$0xff]   ;;  %v5057_v31 = vld [vmem:[%s7056_s4 + $0x134] ss:$8 sps:$4 sm:$0xff]  }
 0x285   : > { %v4536_v38 = vpop.f32.mrb[23].mxu1 }
 0x286   : > { %v2731_v40 = vadd.f32 %v4534_v33, %v6823_v52  ;;  %v4537_v42 = vadd.f32 %v4536_v38, %v4535_v36  ;;  %v2852_v52 = vrot.slane %v2843_v59, %v2851_v60  ;;  %v5060_v33 = vld [vmem:[%s7057_s5 + $0x134] ss:$8 sps:$4 sm:$0xff]   ;;  %v5055_v36 = vld [vmem:[%s7056_s4 + $0x130] ss:$8 sps:$4 sm:$0xff]   ;;  %v5073_v59 = vld [vmem:[%s7056_s4 + $0x160] ss:$8 sps:$4 sm:$0xff]  }
 0x287   : > { %v5058_v38 = vld [vmem:[%s7057_s5 + $0x130] ss:$8 sps:$4 sm:$0xff]   ;;  %v5076_v60 = vld [vmem:[%s7057_s5 + $0x160] ss:$8 sps:$4 sm:$0xff]  }
 0x288   : > { %v2734_v44 = vadd.f32 %v4537_v42, %v6835_v5  ;;  %v5066_v42 = vld [vmem:[%s7057_s5 + $0x144] ss:$8 sps:$4 sm:$0xff]  }
 0x2a1   : > { %v2679_v45 = vpop.f32.mrb[0].mxu0 }
 0x2a2   : > { %v2681_v46 = vpop.f32.mrb[1].mxu0 }
 0x2a3   : > { %v2683_v47 = vpop.f32.mrb[2].mxu0 }
 0x2a4   : > { %v2685_v48 = vpop.f32.mrb[3].mxu0 }
 0x2c1   : > { %v4554_v7 = vpop.f32.mrb[20].mxu0 }
 0x2c2   : > { %v2781_v9 = vpop.f32.mrb[8].mxu1  ;;  %v4555_v11 = vpop.f32.mrb[21].mxu0 }
 0x2c3   : > { %v2837_v13 = vmax.f32 %v2679_v45, %v2781_v9  ;;  %v2783_v5 = vpop.f32.mrb[9].mxu1  ;;  %v4556_v15 = vadd.f32 %v4555_v11, %v4554_v7  ;;  %v4557_v56 = vpop.f32.mrb[22].mxu0  ;;  %v5064_v45 = vld [vmem:[%s7057_s5 + $0x140] ss:$8 sps:$4 sm:$0xff]   ;;  %v5079_v7 = vld [vmem:[%s7056_s4 + $0x170] ss:$8 sps:$4 sm:$0xff]  }
 0x2c4   : > { %v2838_v17 = vmax.f32 %v2681_v46, %v2783_v5  ;;  %v2785_v21 = vpop.f32.mrb[10].mxu1  ;;  %v4558_v23 = vpop.f32.mrb[23].mxu0  ;;  %v5069_v46 = vld [vmem:[%s7056_s4 + $0x154] ss:$8 sps:$4 sm:$0xff]   ;;  %v5082_v9 = vld [vmem:[%s7057_s5 + $0x170] ss:$8 sps:$4 sm:$0xff]  }
 0x2c5   : > { %v2860_v25 = vadd.f32 %v2848_v3, %v2837_v13  ;;  %v2833_v32 = vadd.f32 %v4556_v15, %v2318_v22  ;;  %v2840_v41 = vmax.f32 %v2683_v47, %v2785_v21  ;;  %v2787_v43 = vpop.f32.mrb[11].mxu1  ;;  %v4559_v51 = vadd.f32 %v4558_v23, %v4557_v56  ;;  %v5054_v22 = vld [vmem:[%s7057_s5 + $0x124] ss:$8 sps:$4 sm:$0xff]   ;;  %v5072_v47 = vld [vmem:[%s7057_s5 + $0x154] ss:$8 sps:$4 sm:$0xff]  }
 0x2c6   : > { %v2861_v27 = vadd.f32 %v2852_v52, %v2838_v17  ;;  %v2841_v34 = vmax.f32 %v2685_v48, %v2787_v43  ;;  %v5067_v48 = vld [vmem:[%s7056_s4 + $0x150] ss:$8 sps:$4 sm:$0xff]  }
 0x2c7   : > { %v2839_v29 = vmax.f32 %v2731_v40, %v2833_v32  ;;  %v2863_v30 = vadd.f32 %v2848_v3, %v2840_v41  ;;  %v2836_v37 = vadd.f32 %v4559_v51, %v2321_v26  ;;  %v2866_v49 = vmax.f32 %v2860_v25, 0.0  ;;  %v5049_v26 = vld [vmem:[%s7056_s4 + $0x120] ss:$8 sps:$4 sm:$0xff]   ;;  %v5063_v40 = vld [vmem:[%s7056_s4 + $0x144] ss:$8 sps:$4 sm:$0xff]  }
 0x2c8   : > { %v2864_v39 = vadd.f32 %v2852_v52, %v2841_v34  ;;  %v2867_v62 = vmax.f32 %v2861_v27, 0.0  ;;  %v5084_v3 = vld [vmem:[%s7057_s5 + $0x174] ss:$8 sps:$4 sm:$0xff]   ;;  %v3650_v51 = vld [vmem:[%s271_s10 + $0x8] sm:$0x11] }
 0x2c9   : > { %v2862_v58 = vadd.f32 %v2856_v19, %v2839_v29  ;;  %v2869_v55 = vmax.f32 %v2863_v30, 0.0  ;;  %v2842_v61 = vmax.f32 %v2734_v44, %v2836_v37  ;;  %v5061_v44 = vld [vmem:[%s7056_s4 + $0x140] ss:$8 sps:$4 sm:$0xff]  }
 0x2ca   : > { %v2870_v63 = vmax.f32 %v2864_v39, 0.0 }
 0x2cb   : > { %v2872_v53 = vpack.c.bf16 %v2869_v55, %v2866_v49  ;;  %v2865_v0 = vadd.f32 %v2856_v19, %v2842_v61  ;;  %v2868_v6 = vmax.f32 %v2862_v58, 0.0 }
 0x2cc   : > { %v2873_v35 = vpack.c.bf16 %v2870_v63, %v2867_v62 }
 0x2cd   : > { %v2871_v8 = vmax.f32 %v2865_v0, 0.0 }
 0x2ce   : > { %3195 = vmatprep.mubr.bf16.mxu0 %v2873_v35  ;;  %3569 = vmatprep.mubr.bf16.mxu1 %v2873_v35 }
 0x2cf   : > { %3196 = vmatmul.mubr.bf16.vlgmr.msra.gmra.mrb[24].mxu0 %v2872_v53  ;;  %3570 = vmatmul.mubr.bf16.vlgmr.msra.gmra.mrb[24].mxu1 %v2872_v53  ;;  %v2874_v14 = vpack.c.bf16 %v2871_v8, %v2868_v6 }
 0x2d0   : > { %3207 = vmatpush1.bf16.msra.mxu0 %v5037_v2  ;;  %3581 = vmatpush1.bf16.msra.mxu1 %v5040_v4 }
 0x2d1   : > { %3208 = vmatprep.subr.bf16.mxu0 %v5045_v10  ;;  %3582 = vmatprep.subr.bf16.mxu1 %v5048_v12 }
 0x2d2   : > { %3238 = vmatprep.mubr.bf16.mxu0 %v5095_v24  ;;  %3612 = vmatprep.mubr.bf16.mxu1 %v5095_v24 }
 0x2d4   : > { %3209 = vmatpush1.bf16.msra.mxu0 %v5043_v16  ;;  %3583 = vmatpush1.bf16.msra.mxu1 %v5046_v18 }
 0x2d5   : > { %3210 = vmatprep.subr.bf16.mxu0 %v5051_v20  ;;  %3584 = vmatprep.subr.bf16.mxu1 %v5054_v22 }
 0x2d8   : > { %3211 = vmatpush1.bf16.msra.mxu0 %v5049_v26  ;;  %3585 = vmatpush1.bf16.msra.mxu1 %v5052_v28 }
 0x2d9   : > { %3212 = vmatprep.subr.bf16.mxu0 %v5057_v31  ;;  %3586 = vmatprep.subr.bf16.mxu1 %v5060_v33 }
 0x2dc   : > { %3213 = vmatpush1.bf16.msra.mxu0 %v5055_v36  ;;  %3587 = vmatpush1.bf16.msra.mxu1 %v5058_v38 }
 0x2dd   : > { %3214 = vmatprep.subr.bf16.mxu0 %v5063_v40  ;;  %3588 = vmatprep.subr.bf16.mxu1 %v5066_v42 }
 0x2e0   : > { %3215 = vmatpush1.bf16.msra.mxu0 %v5061_v44  ;;  %3589 = vmatpush1.bf16.msra.mxu1 %v5064_v45 }
 0x2e1   : > { %3216 = vmatprep.subr.bf16.mxu0 %v5069_v46  ;;  %3590 = vmatprep.subr.bf16.mxu1 %v5072_v47 }
 0x2e4   : > { %3217 = vmatpush1.bf16.msra.mxu0 %v5067_v48  ;;  %3591 = vmatpush1.bf16.msra.mxu1 %v5070_v50 }
 0x2e5   : > { %3218 = vmatprep.subr.bf16.mxu0 %v5075_v54  ;;  %3592 = vmatprep.subr.bf16.mxu1 %v5078_v57 }
 0x2e8   : > { %3219 = vmatpush1.bf16.msra.mxu0 %v5073_v59  ;;  %3593 = vmatpush1.bf16.msra.mxu1 %v5076_v60 }
 0x2e9   : > { %3220 = vmatprep.subr.bf16.mxu0 %v5081_v1  ;;  %3594 = vmatprep.subr.bf16.mxu1 %v5084_v3 }
 0x2ec   : > { %3221 = vmatpush1.bf16.msra.mxu0 %v5079_v7  ;;  %3595 = vmatpush1.bf16.msra.mxu1 %v5082_v9 }
 0x2ef   : > { %3239 = vmatmul.mubr.bf16.vlgmr.msra.gmra.mrb[24].mxu0 %v2874_v14  ;;  %3613 = vmatmul.mubr.bf16.vlgmr.msra.gmra.mrb[24].mxu1 %v2874_v14 }
 0x3c2   : > { %v3240_v52 = vpop.f32.mrb[24].mxu0  ;;  %v3614_v11 = vpop.f32.mrb[24].mxu1 }
 0x3c3   : > { %v3623_v13 = vmax.f32 %v3240_v52, %v3614_v11  ;;  %v3242_v5 = vpop.f32.mrb[25].mxu0  ;;  %v3616_v15 = vpop.f32.mrb[25].mxu1 }
 0x3c4   : > { %v3624_v17 = vmax.f32 %v3242_v5, %v3616_v15  ;;  %v3244_v19 = vpop.f32.mrb[26].mxu0  ;;  %v3618_v21 = vpop.f32.mrb[26].mxu1 }
 0x3c5   : > { %v3625_v23 = vmax.f32 %v3244_v19, %v3618_v21  ;;  %v3246_v25 = vpop.f32.mrb[27].mxu0  ;;  %v3620_v32 = vpop.f32.mrb[27].mxu1 }
 0x3c6   : > { %v4338_v41 = vpack.c.bf16 %v3624_v17, %v3623_v13  ;;  %v3626_v43 = vmax.f32 %v3246_v25, %v3620_v32 }
 0x3c8   : > { %3642 = vst.msk [vmem:[%s271_s10] sm:$0xff] %vm3641_vm8, %v4338_v41  ;;  %v4339_v27 = vpack.c.bf16 %v3626_v43, %v3625_v23 }
 0x3ca   : > { %v3651_v34 = vsel %vm3649_vm9, %v4339_v27, %v3650_v51 }
 0x3cb   : > { %3652 = vst [vmem:[%s271_s10 + $0x8] sm:$0x11] %v3651_v34 }
 0x3cc PF: > { %s16_s21 = sadd.s32 1, %s5093_s21  }
 0x3cd   : > { %p13_p4 = scmp.ge.s32.totalorder %s16_s21, 4  }
 0x3cf   :  { %15 = sbr.rel (!%p13_p4) target bundleno = 1 (0x1), region = 81 }

// kernel: lenet5_forward.5
= control target key start
LH: loop header
LB: loop body
LE: loop exit
PB: predicated region body
PF: predicated region fallthrough
CT: control target
= control target key end

     0   :  { %v205_v27 = vlaneseq  ;;  %v1658_v35 = vmov 1966171168   ;;  %vm1660_vm0 = vmmov 0   ;;  %vm769_vm1 = vcmask 130048   ;;  %s2059_s0 = inlined_call_operand.vmem [shape: bf16[2,1296], index: 0, kind: input, shape index: {}]   ;;  %s2060_s1 = inlined_call_operand.vmem [shape: bf16[1296,128], index: 1, kind: input, shape index: {}]   ;;  %s2061_s2 = inlined_call_operand.vmem [shape: f32[1,128], index: 2, kind: input, shape index: {}]   ;;  %s2062_s3 = inlined_call_operand.vmem [shape: bf16[128,128], index: 3, kind: input, shape index: {}]   ;;  %s2063_s4 = inlined_call_operand.vmem [shape: f32[1,128], index: 4, kind: input, shape index: {}]   ;;  %s2064_s5 = inlined_call_operand.vmem [shape: bf16[128,128], index: 5, kind: input, shape index: {}]   ;;  %s2065_s6 = inlined_call_operand.vmem [shape: f32[1,128], index: 6, kind: input, shape index: {}]   ;;  %s2066_s7 = inlined_call_operand.hbm [shape: f32[2,128], index: 7, kind: output, shape index: {}]  }
   0x1   :  { %v1536_v0 = vld [vmem:[%s2060_s1 + $0x40] sm:$0xff]   ;;  %v1540_v4 = vld [vmem:[%s2060_s1 + $0x48] sm:$0xff]   ;;  %v1544_v8 = vld [vmem:[%s2060_s1 + $0x50] sm:$0xff]   ;;  %v203_v36 = vunpack.c.l.s4 %v1658_v35 }
   0x2   :  { %v1537_v1 = vld [vmem:[%s2060_s1] sm:$0xff]   ;;  %1356 = vmatprep.subr.bf16.mxu0 %v1536_v0  ;;  %v1541_v5 = vld [vmem:[%s2060_s1 + $0x8] sm:$0xff]   ;;  %v1545_v9 = vld [vmem:[%s2060_s1 + $0x10] sm:$0xff]   ;;  %v206_v32 = vshrl.u32 %v205_v27, 7 }
   0x3   :  { %v1538_v2 = vld [vmem:[%s2060_s1 + $0xc0] sm:$0xff]   ;;  %1357 = vmatpush3.bf16.msra.mxu0 %v1537_v1  ;;  %v1542_v6 = vld [vmem:[%s2060_s1 + $0xc8] sm:$0xff]   ;;  %v1546_v10 = vld [vmem:[%s2060_s1 + $0xd0] sm:$0xff]   ;;  %v204_v39 = vunpack.c.0.s8 %v203_v36 }
   0x4   :  { %v1539_v3 = vld [vmem:[%s2060_s1 + $0x80] sm:$0xff]   ;;  %1378 = vmatprep.subr.bf16.mxu1 %v1538_v2  ;;  %1358 = vmatprep.subr.bf16.mxu0 %v1540_v4  ;;  %v1543_v7 = vld [vmem:[%s2060_s1 + $0x88] sm:$0xff]   ;;  %v1547_v11 = vld [vmem:[%s2060_s1 + $0x90] sm:$0xff]  }
   0x5   :  { %1379 = vmatpush3.bf16.msra.mxu1 %v1539_v3  ;;  %v1548_v12 = vld [vmem:[%s2060_s1 + $0x58] sm:$0xff]   ;;  %v1552_v16 = vld [vmem:[%s2060_s1 + $0x60] sm:$0xff]   ;;  %v1556_v20 = vld [vmem:[%s2060_s1 + $0x68] sm:$0xff]   ;;  %v1807_v41 = vsub.s32 %v204_v39, %v206_v32 }
   0x6   :  { %1380 = vmatprep.subr.bf16.mxu1 %v1542_v6  ;;  %v1549_v13 = vld [vmem:[%s2060_s1 + $0x18] sm:$0xff]   ;;  %v1553_v17 = vld [vmem:[%s2060_s1 + $0x20] sm:$0xff]   ;;  %v1557_v21 = vld [vmem:[%s2060_s1 + $0x28] sm:$0xff]  }
   0x7   :  { %1359 = vmatpush3.bf16.msra.mxu0 %v1541_v5  ;;  %v1550_v14 = vld [vmem:[%s2060_s1 + $0xd8] sm:$0xff]   ;;  %v1554_v18 = vld [vmem:[%s2060_s1 + $0xe0] sm:$0xff]   ;;  %v1558_v22 = vld [vmem:[%s2060_s1 + $0xe8] sm:$0xff]  }
   0x8   :  { %1360 = vmatprep.subr.bf16.mxu0 %v1544_v8  ;;  %v1551_v15 = vld [vmem:[%s2060_s1 + $0x98] sm:$0xff]   ;;  %v1555_v19 = vld [vmem:[%s2060_s1 + $0xa0] sm:$0xff]   ;;  %v1559_v23 = vld [vmem:[%s2060_s1 + $0xa8] sm:$0xff]  }
   0x9   :  { %1381 = vmatpush3.bf16.msra.mxu1 %v1543_v7  ;;  %v1560_v24 = vld [vmem:[%s2060_s1 + $0x70] sm:$0xff]   ;;  %v1564_v29 = vld [vmem:[%s2060_s1 + $0x78] sm:$0xff]   ;;  %v28_v33 = vld [vmem:[%s2059_s0] sm:$0xff] }
   0xa   :  { %1382 = vmatprep.subr.bf16.mxu1 %v1546_v10  ;;  %v1561_v25 = vld [vmem:[%s2060_s1 + $0x30] sm:$0xff]   ;;  %v1565_v30 = vld [vmem:[%s2060_s1 + $0x38] sm:$0xff]   ;;  %v1569_v37 = vld [vmem:[%s2060_s1 + $0x140] sm:$0xff]   ;;  %v201_v38 = vcombine.high %v28_v33, %v28_v33  ;;  %v208_v42 = vrot.slane %v28_v33, %v1807_v41 }
   0xb   :  { %1361 = vmatpush3.bf16.msra.mxu0 %v1545_v9  ;;  %v1562_v26 = vld [vmem:[%s2060_s1 + $0xf0] sm:$0xff]   ;;  %v1566_v31 = vld [vmem:[%s2060_s1 + $0xf8] sm:$0xff]   ;;  %v1571_v40 = vld [vmem:[%s2060_s1 + $0x1c0] sm:$0xff]  }
   0xc   :  { %1362 = vmatprep.subr.bf16.mxu0 %v1548_v12  ;;  %v1563_v28 = vld [vmem:[%s2060_s1 + $0xb0] sm:$0xff]   ;;  %v1568_v34 = vld [vmem:[%s2060_s1 + $0xb8] sm:$0xff]   ;;  %v1811_v43 = vrot.slane %v201_v38, %v1807_v41  ;;  %v216_v44 = vcombine.high %v208_v42, %v208_v42  ;;  %v224_v45 = vrot.slane %v208_v42, %v1807_v41  ;;  %v1570_v48 = vld [vmem:[%s2060_s1 + $0x100] sm:$0xff]  }
   0xd   :  { %1383 = vmatpush3.bf16.msra.mxu1 %v1547_v11  ;;  %v1573_v51 = vld [vmem:[%s2060_s1 + $0x148] sm:$0xff]   ;;  %v1572_v53 = vld [vmem:[%s2060_s1 + $0x180] sm:$0xff]   ;;  %v1577_v57 = vld [vmem:[%s2060_s1 + $0x150] sm:$0xff]  }
   0xe   :  { %1384 = vmatprep.subr.bf16.mxu1 %v1550_v14  ;;  %v217_v46 = vcombine.high %v1811_v43, %v1811_v43  ;;  %v238_v47 = vrot.slane %v216_v44, %v1807_v41  ;;  %v246_v50 = vcombine.high %v224_v45, %v224_v45  ;;  %v1575_v54 = vld [vmem:[%s2060_s1 + $0x1c8] sm:$0xff]   ;;  %v1579_v59 = vld [vmem:[%s2060_s1 + $0x1d0] sm:$0xff]   ;;  %v1581_v61 = vld [vmem:[%s2060_s1 + $0x158] sm:$0xff]  }
   0xf   :  { %1363 = vmatpush3.bf16.msra.mxu0 %v1549_v13  ;;  %v1574_v56 = vld [vmem:[%s2060_s1 + $0x108] sm:$0xff]   ;;  %v1578_v60 = vld [vmem:[%s2060_s1 + $0x110] sm:$0xff]   ;;  %v1583_v63 = vld [vmem:[%s2060_s1 + $0x1d8] sm:$0xff]  }
  0x10   :  { %1364 = vmatprep.subr.bf16.mxu0 %v1552_v16  ;;  %v245_v49 = vrot.slane %v217_v46, %v1807_v41  ;;  %805 = vmatprep.mubr.bf16.mxu0 %v238_v47  ;;  %v248_v52 = vcombine.high %v238_v47, %v238_v47  ;;  %v1576_v58 = vld [vmem:[%s2060_s1 + $0x188] sm:$0xff]   ;;  %v1580_v62 = vld [vmem:[%s2060_s1 + $0x190] sm:$0xff]   ;;  %v1582_v0 = vld [vmem:[%s2060_s1 + $0x118] sm:$0xff]  }
  0x11   :  { %1385 = vmatpush3.bf16.msra.mxu1 %v1551_v15  ;;  %v1585_v1 = vld [vmem:[%s2060_s1 + $0x160] sm:$0xff]   ;;  %v1584_v2 = vld [vmem:[%s2060_s1 + $0x198] sm:$0xff]   ;;  %v1589_v5 = vld [vmem:[%s2060_s1 + $0x168] sm:$0xff]  }
  0x12   :  { %1386 = vmatprep.subr.bf16.mxu1 %v1554_v18  ;;  %v249_v55 = vcombine.high %v245_v49, %v245_v49  ;;  %845 = vmatprep.mubr.bf16.mxu1 %v248_v52  ;;  %v1587_v3 = vld [vmem:[%s2060_s1 + $0x1e0] sm:$0xff]   ;;  %v1591_v7 = vld [vmem:[%s2060_s1 + $0x1e8] sm:$0xff]   ;;  %v1593_v9 = vld [vmem:[%s2060_s1 + $0x170] sm:$0xff]  }
  0x13   :  { %1365 = vmatpush3.bf16.msra.mxu0 %v1553_v17  ;;  %v1586_v4 = vld [vmem:[%s2060_s1 + $0x120] sm:$0xff]   ;;  %v1590_v8 = vld [vmem:[%s2060_s1 + $0x128] sm:$0xff]   ;;  %v1595_v11 = vld [vmem:[%s2060_s1 + $0x1f0] sm:$0xff]   ;;  %v231_v17 = vrot.slane %v1811_v43, %v1807_v41 }
  0x14   :  { %1366 = vmatprep.subr.bf16.mxu0 %v1556_v20  ;;  %v1588_v6 = vld [vmem:[%s2060_s1 + $0x1a0] sm:$0xff]   ;;  %v1592_v10 = vld [vmem:[%s2060_s1 + $0x1a8] sm:$0xff]   ;;  %v1594_v12 = vld [vmem:[%s2060_s1 + $0x130] sm:$0xff]  }
  0x15   :  { %1387 = vmatpush3.bf16.msra.mxu1 %v1555_v19  ;;  %v1597_v13 = vld [vmem:[%s2060_s1 + $0x178] sm:$0xff]   ;;  %v1596_v14 = vld [vmem:[%s2060_s1 + $0x1b0] sm:$0xff]   ;;  %v1601_v18 = vld [vmem:[%s2060_s1 + $0x240] sm:$0xff]  }
  0x16   :  { %1388 = vmatprep.subr.bf16.mxu1 %v1558_v22  ;;  %v1599_v15 = vld [vmem:[%s2060_s1 + $0x1f8] sm:$0xff]   ;;  %v1602_v20 = vld [vmem:[%s2060_s1 + $0x200] sm:$0xff]   ;;  %v1603_v22 = vld [vmem:[%s2060_s1 + $0x248] sm:$0xff]  }
  0x17   :  { %1367 = vmatpush3.bf16.msra.mxu0 %v1557_v21  ;;  %v1598_v16 = vld [vmem:[%s2060_s1 + $0x138] sm:$0xff]   ;;  %v247_v21 = vcombine.high %v231_v17, %v231_v17  ;;  %v1609_v35 = vld [vmem:[%s2060_s1 + $0x260] sm:$0xff]  }
  0x18   :  { %1368 = vmatprep.subr.bf16.mxu0 %v1560_v24  ;;  %v1600_v19 = vld [vmem:[%s2060_s1 + $0x1b8] sm:$0xff]   ;;  %v1604_v24 = vld [vmem:[%s2060_s1 + $0x208] sm:$0xff]   ;;  %v1610_v36 = vld [vmem:[%s2060_s1 + $0x220] sm:$0xff]  }
  0x19   :  { %1389 = vmatpush3.bf16.msra.mxu1 %v1559_v23  ;;  %v1659_v23 = vmov 0.0   ;;  %v1607_v27 = vld [vmem:[%s2060_s1 + $0x258] sm:$0xff]  }
  0x1a   :  { %1390 = vmatprep.subr.bf16.mxu1 %v1562_v26  ;;  %v1606_v26 = vld [vmem:[%s2060_s1 + $0x210] sm:$0xff]   ;;  %v1608_v32 = vld [vmem:[%s2060_s1 + $0x218] sm:$0xff]  }
  0x1b   :  { %1369 = vmatpush3.bf16.msra.mxu0 %v1561_v25  ;;  %v1605_v25 = vld [vmem:[%s2060_s1 + $0x250] sm:$0xff]  }
  0x1c   :  { %1370 = vmatprep.subr.bf16.mxu0 %v1564_v29  ;;  %v1255_v29 = vld.sshfl [vmem:[%s2059_s0 + $0x8] sm:$0x13 pattern:$0x75316420] }
  0x1d   :  { %1391 = vmatpush3.bf16.msra.mxu1 %v1563_v28  ;;  %v1617_v28 = vld [vmem:[%s2060_s1 + $0x280] sm:$0xff]  }
  0x1e   :  { %1392 = vmatprep.subr.bf16.mxu1 %v1566_v31  ;;  %v264_v31 = vrot.slane %v1255_v29, %v1807_v41 }
  0x1f   :  { %1371 = vmatpush3.bf16.msra.mxu0 %v1565_v30  ;;  %v257_v30 = vcombine.high %v1255_v29, %v1255_v29 }
  0x20   :  { %1400 = vmatprep.subr.bf16.mxu0 %v1569_v37  ;;  %v1611_v37 = vld [vmem:[%s2060_s1 + $0x268] sm:$0xff]  }
  0x21   :  { %1393 = vmatpush3.bf16.msra.mxu1 %v1568_v34  ;;  %v271_v33 = vrot.slane %v257_v30, %v1807_v41  ;;  %v272_v34 = vcombine.high %v264_v31, %v264_v31 }
  0x22   :  { %1422 = vmatprep.subr.bf16.mxu1 %v1571_v40  ;;  %806 = vmatmul.mubr.bf16.vlgmr.msra.gmra.mrb[0].mxu0 %v224_v45 }
  0x23   :  { %1401 = vmatpush3.bf16.msra.mxu0 %v1570_v48  ;;  %885 = vmatprep.mubr.bf16.mxu0 %v245_v49 }
  0x24   :  { %846 = vmatmul.mubr.bf16.vlgmr.msra.gmra.mrb[0].mxu1 %v246_v50  ;;  %1402 = vmatprep.subr.bf16.mxu0 %v1573_v51 }
  0x25   :  { %1423 = vmatpush3.bf16.msra.mxu1 %v1572_v53  ;;  %925 = vmatprep.mubr.bf16.mxu1 %v249_v55 }
  0x26   :  { %1424 = vmatprep.subr.bf16.mxu1 %v1575_v54 }
  0x27   :  { %1403 = vmatpush3.bf16.msra.mxu0 %v1574_v56 }
  0x28   :  { %1404 = vmatprep.subr.bf16.mxu0 %v1577_v57 }
  0x29   :  { %1425 = vmatpush3.bf16.msra.mxu1 %v1576_v58 }
  0x2a   :  { %1426 = vmatprep.subr.bf16.mxu1 %v1579_v59 }
  0x2b   :  { %1405 = vmatpush3.bf16.msra.mxu0 %v1578_v60 }
  0x2c   :  { %1406 = vmatprep.subr.bf16.mxu0 %v1581_v61 }
  0x2d   :  { %1427 = vmatpush3.bf16.msra.mxu1 %v1580_v62 }
  0x2e   :  { %1428 = vmatprep.subr.bf16.mxu1 %v1583_v63 }
  0x2f   :  { %1407 = vmatpush3.bf16.msra.mxu0 %v1582_v0 }
  0x30   :  { %1408 = vmatprep.subr.bf16.mxu0 %v1585_v1 }
  0x31   :  { %1429 = vmatpush3.bf16.msra.mxu1 %v1584_v2 }
  0x32   :  { %1430 = vmatprep.subr.bf16.mxu1 %v1587_v3 }
  0x33   :  { %1409 = vmatpush3.bf16.msra.mxu0 %v1586_v4 }
  0x34   :  { %1410 = vmatprep.subr.bf16.mxu0 %v1589_v5 }
  0x35   :  { %1431 = vmatpush3.bf16.msra.mxu1 %v1588_v6 }
  0x36   :  { %1432 = vmatprep.subr.bf16.mxu1 %v1591_v7 }
  0x37   :  { %1411 = vmatpush3.bf16.msra.mxu0 %v1590_v8 }
  0x38   :  { %1412 = vmatprep.subr.bf16.mxu0 %v1593_v9 }
  0x39   :  { %1433 = vmatpush3.bf16.msra.mxu1 %v1592_v10 }
  0x3a   :  { %1434 = vmatprep.subr.bf16.mxu1 %v1595_v11 }
  0x3b   :  { %1413 = vmatpush3.bf16.msra.mxu0 %v1594_v12 }
  0x3c   :  { %1414 = vmatprep.subr.bf16.mxu0 %v1597_v13 }
  0x3d   :  { %1435 = vmatpush3.bf16.msra.mxu1 %v1596_v14 }
  0x3e   :  { %1436 = vmatprep.subr.bf16.mxu1 %v1599_v15 }
  0x3f   :  { %1415 = vmatpush3.bf16.msra.mxu0 %v1598_v16 }
  0x40   :  { %1444 = vmatprep.subr.bf16.mxu0 %v1601_v18 }
  0x41   :  { %1437 = vmatpush3.bf16.msra.mxu1 %v1600_v19 }
  0x42   :  { %886 = vmatmul.mubr.bf16.vlgmr.msra.gmra.mrb[4].mxu0 %v231_v17  ;;  %1486 = vmatprep.subr.bf16.mxu1 %v1659_v23 }
  0x43   :  { %1445 = vmatpush3.bf16.msra.mxu0 %v1602_v20  ;;  %965 = vmatprep.mubr.bf16.mxu0 %v271_v33 }
  0x44   :  { %926 = vmatmul.mubr.bf16.vlgmr.msra.gmra.mrb[4].mxu1 %v247_v21  ;;  %1446 = vmatprep.subr.bf16.mxu0 %v1603_v22 }
  0x45   :  { %1488 = vmatprep.mubr.msk.bf16.mxu1 %vm1660_vm0, %v1659_v23  ;;  %1487 = vmatpush3.bf16.msra.mxu1 %v1617_v28 }
  0x46   :  { %1492 = vmatprep.subr.bf16.mxu1 %v1659_v23 }
  0x47   :  { %1447 = vmatpush3.bf16.msra.mxu0 %v1604_v24 }
  0x48   :  { %1448 = vmatprep.subr.bf16.mxu0 %v1605_v25 }
  0x4b   :  { %1449 = vmatpush3.bf16.msra.mxu0 %v1606_v26 }
  0x4c   :  { %1450 = vmatprep.subr.bf16.mxu0 %v1607_v27  ;;  %1489 = vmatmul.mubr.msk.bf16.vlgmr.msra.gmra.mrb[8].mxu1 %vm769_vm1, %v272_v34 }
  0x4d   :  { %1508 = vmatprep.mubr.msk.bf16.mxu1 %vm1660_vm0, %v1659_v23 }
  0x4f   :  { %1451 = vmatpush3.bf16.msra.mxu0 %v1608_v32 }
  0x50   :  { %1452 = vmatprep.subr.bf16.mxu0 %v1609_v35 }
  0x51   :  { %12 = vsyncpa [#allocation3], 0  ;;  %v1612_v38 = vld [vmem:[%s2060_s1 + $0x228] sm:$0xff]   ;;  %v1613_v39 = vld [vmem:[%s2060_s1 + $0x270] sm:$0xff]   ;;  %s1661_s0 = smov [#allocation2]  }
  0x52   :  { %v1614_v40 = vld [vmem:[%s2060_s1 + $0x230] sm:$0xff]   ;;  %v1615_v41 = vld [vmem:[%s2060_s1 + $0x278] sm:$0xff]   ;;  %v1618_v43 = vld [vmem:[%s2062_s3] sm:$0xff]   ;;  %s1246_s15 = sshll.u32 %s1661_s0, 4  ;;  %s1247_s15 = int_to_ptr.vmem [resolvable:$true] %s1246_s15 }
  0x53   :  { %1453 = vmatpush3.bf16.msra.mxu0 %v1610_v36  ;;  %v1616_v42 = vld [vmem:[%s2060_s1 + $0x238] sm:$0xff]   ;;  %1493 = vmatpush3.bf16.msra.mxu1 %v1618_v43  ;;  %v1619_v44 = vld [vmem:[%s2062_s3 + $0x8] sm:$0xff]   ;;  %v1620_v45 = vld [vmem:[%s2062_s3 + $0x10] sm:$0xff]   ;;  %p1639_p1 = scmp.lt.s32.totalorder %s1247_s15, %s1247_s15 }
  0x54   :  { %1454 = vmatprep.subr.bf16.mxu0 %v1611_v37  ;;  %1494 = vmatprep.subr.bf16.mxu1 %v1659_v23  ;;  %v1621_v46 = vld [vmem:[%s2062_s3 + $0x18] sm:$0xff]   ;;  %v1622_v47 = vld [vmem:[%s2062_s3 + $0x20] sm:$0xff]   ;;  %v1623_v48 = vld [vmem:[%s2062_s3 + $0x28] sm:$0xff]  }
  0x55   :  { %v1624_v49 = vld [vmem:[%s2062_s3 + $0x30] sm:$0xff]   ;;  %v1625_v50 = vld [vmem:[%s2062_s3 + $0x38] sm:$0xff]   ;;  %v1626_v51 = vld [vmem:[%s2064_s5] sm:$0xff]  }
  0x56   :  { %v1627_v52 = vld [vmem:[%s2064_s5 + $0x8] sm:$0xff]   ;;  %v1628_v53 = vld [vmem:[%s2064_s5 + $0x10] sm:$0xff]   ;;  %v1629_v54 = vld [vmem:[%s2064_s5 + $0x18] sm:$0xff]  }
  0x57   :  { %1455 = vmatpush3.bf16.msra.mxu0 %v1612_v38  ;;  %1495 = vmatpush3.bf16.msra.mxu1 %v1619_v44  ;;  %v1630_v55 = vld [vmem:[%s2064_s5 + $0x20] sm:$0xff]   ;;  %v1631_v56 = vld [vmem:[%s2064_s5 + $0x28] sm:$0xff]   ;;  %v1632_v32 = vld [vmem:[%s2064_s5 + $0x30] sm:$0xff]  }
  0x58   :  { %1456 = vmatprep.subr.bf16.mxu0 %v1613_v39  ;;  %1496 = vmatprep.subr.bf16.mxu1 %v1659_v23  ;;  %v1254_v58 = vld [vmem:[%s2061_s2] ss:$0 sm:$0xff]  ;;  %v1633_v33 = vld [vmem:[%s2064_s5 + $0x38] sm:$0xff]  }
  0x59   :  { %v1338_v34 = vld [vmem:[%s2063_s4] ss:$0 sm:$0xff]  ;;  %s1634_s4 = scalar_lea.vmem %s1247_s15, 32 }
  0x5a   :  { %p1635_p0 = scmp.ne.s32.totalorder %s1247_s15, %s1634_s4  ;;  %p1640_p2 = scmp.lt.s32.totalorder %s1634_s4, %s1634_s4 }
  0x5b   :  { %1457 = vmatpush3.bf16.msra.mxu0 %v1614_v40  ;;  %1497 = vmatpush3.bf16.msra.mxu1 %v1620_v45 }
  0x5c   :  { %1458 = vmatprep.subr.bf16.mxu0 %v1615_v41  ;;  %1498 = vmatprep.subr.bf16.mxu1 %v1659_v23  ;;  %p1641_p3 = por %p1640_p2, %p1639_p1 }
  0x5e   :  { %p1642_p4 = pnand %p1641_p3, %p1635_p0 }
  0x5f   :  { %1459 = vmatpush3.bf16.msra.mxu0 %v1616_v42  ;;  %1499 = vmatpush3.bf16.msra.mxu1 %v1621_v46 }
  0x60   :  { %1512 = vmatprep.subr.bf16.mxu0 %v1659_v23  ;;  %1500 = vmatprep.subr.bf16.mxu1 %v1659_v23 }
  0x62   :  { %966 = vmatmul.mubr.bf16.vlgmr.msra.gmra.mrb[8].mxu0 %v264_v31 }
  0x63   :  { %1528 = vmatprep.mubr.msk.bf16.mxu0 %vm1660_vm0, %v1659_v23  ;;  %1501 = vmatpush3.bf16.msra.mxu1 %v1622_v47 }
  0x64   :  { %1502 = vmatprep.subr.bf16.mxu1 %v1659_v23  ;;  %1513 = vmatpush3.bf16.msra.mxu0 %v1626_v51 }
  0x65   :  { %1514 = vmatprep.subr.bf16.mxu0 %v1659_v23 }
  0x67   :  { %1503 = vmatpush3.bf16.msra.mxu1 %v1623_v48 }
  0x68   :  { %1504 = vmatprep.subr.bf16.mxu1 %v1659_v23  ;;  %1515 = vmatpush3.bf16.msra.mxu0 %v1627_v52 }
  0x69   :  { %1516 = vmatprep.subr.bf16.mxu0 %v1659_v23 }
  0x6b   :  { %1505 = vmatpush3.bf16.msra.mxu1 %v1624_v49 }
  0x6c   :  { %1506 = vmatprep.subr.bf16.mxu1 %v1659_v23  ;;  %1517 = vmatpush3.bf16.msra.mxu0 %v1628_v53 }
  0x6d   :  { %1518 = vmatprep.subr.bf16.mxu0 %v1659_v23 }
  0x6f   :  { %1507 = vmatpush3.bf16.msra.mxu1 %v1625_v50 }
  0x70   :  { %1519 = vmatpush3.bf16.msra.mxu0 %v1629_v54 }
  0x71   :  { %1520 = vmatprep.subr.bf16.mxu0 %v1659_v23 }
  0x74   :  { %1521 = vmatpush3.bf16.msra.mxu0 %v1630_v55 }
  0x75   :  { %1522 = vmatprep.subr.bf16.mxu0 %v1659_v23 }
  0x78   :  { %1523 = vmatpush3.bf16.msra.mxu0 %v1631_v56 }
  0x79   :  { %1524 = vmatprep.subr.bf16.mxu0 %v1659_v23 }
  0x7c   :  { %1525 = vmatpush3.bf16.msra.mxu0 %v1632_v32 }
  0x7d   :  { %1526 = vmatprep.subr.bf16.mxu0 %v1659_v23  ;;  %v1347_v23 = vld [vmem:[%s2065_s6] ss:$0 sm:$0xff] }
  0x80   :  { %1527 = vmatpush3.bf16.msra.mxu0 %v1633_v33 }
  0xf5   :  { %v1372_v57 = vpop.f32.mrb[0].mxu0 }
  0xf6   :  { %v1373_v59 = vpop.f32.mrb[1].mxu0 }
  0xf7   :  { %v1374_v60 = vadd.f32 %v1373_v59, %v1372_v57  ;;  %v1375_v61 = vpop.f32.mrb[2].mxu0  ;;  %v1394_v62 = vpop.f32.mrb[0].mxu1 }
  0xf8   :  { %v1376_v63 = vpop.f32.mrb[3].mxu0  ;;  %v1395_v0 = vpop.f32.mrb[1].mxu1 }
  0xf9   :  { %v808_v1 = vadd.f32 %v1374_v60, %v1254_v58  ;;  %v1396_v2 = vadd.f32 %v1395_v0, %v1394_v62  ;;  %v1397_v3 = vpop.f32.mrb[2].mxu1 }
  0xfa   :  { %v1398_v4 = vpop.f32.mrb[3].mxu1 }
  0xfb   :  { %v848_v5 = vadd.f32 %v1396_v2, %v808_v1 }
 0x115   :  { %v1416_v6 = vpop.f32.mrb[4].mxu0 }
 0x116   :  { %v1417_v7 = vpop.f32.mrb[5].mxu0 }
 0x117   :  { %v1418_v8 = vadd.f32 %v1417_v7, %v1416_v6  ;;  %v1419_v9 = vpop.f32.mrb[6].mxu0  ;;  %v1438_v10 = vpop.f32.mrb[4].mxu1 }
 0x118   :  { %v1420_v11 = vpop.f32.mrb[7].mxu0  ;;  %v1439_v12 = vpop.f32.mrb[5].mxu1 }
 0x119   :  { %v888_v13 = vadd.f32 %v1418_v8, %v848_v5  ;;  %v1440_v14 = vadd.f32 %v1439_v12, %v1438_v10  ;;  %v1441_v15 = vpop.f32.mrb[6].mxu1 }
 0x11a   :  { %v1442_v16 = vpop.f32.mrb[7].mxu1 }
 0x11b   :  { %v928_v17 = vadd.f32 %v1440_v14, %v888_v13 }
 0x11f   :  { %v1007_v18 = vpop.f32.mrb[8].mxu1 }
 0x120   :  { %v1490_v19 = vpop.f32.mrb[9].mxu1 }
 0x121   :  { %v1010_v20 = vpop.f32.mrb[10].mxu1 }
 0x122   :  { %v1491_v21 = vpop.f32.mrb[11].mxu1 }
 0x135   :  { %v1460_v22 = vpop.f32.mrb[8].mxu0 }
 0x136   :  { %v1461_v24 = vpop.f32.mrb[9].mxu0 }
 0x137   :  { %v1462_v25 = vadd.f32 %v1461_v24, %v1460_v22  ;;  %v1463_v26 = vpop.f32.mrb[10].mxu0 }
 0x138   :  { %v1464_v27 = vpop.f32.mrb[11].mxu0 }
 0x139   :  { %v968_v28 = vadd.f32 %v1462_v25, %v928_v17 }
 0x13b   :  { %v1008_v29 = vadd.f32 %v1007_v18, %v968_v28 }
 0x13d   :  { %v1013_v30 = vmax.f32 %v1008_v29, 0.0 }
 0x13f   :  { %v1014_v31 = vpack.c.bf16 %v1013_v30, %v1013_v30 }
 0x141   :  { %1509 = vmatmul.mubr.bf16.vlgmr.msra.gmra.mrb[12].mxu1 %v1014_v31 }
 0x214   :  { %v1120_v35 = vpop.f32.mrb[12].mxu1 }
 0x215   :  { %v1121_v36 = vadd.f32 %v1338_v34, %v1120_v35  ;;  %v1510_v37 = vpop.f32.mrb[13].mxu1 }
 0x216   :  { %v1123_v38 = vpop.f32.mrb[14].mxu1 }
 0x217   :  { %v1126_v39 = vmax.f32 %v1121_v36, 0.0  ;;  %v1511_v40 = vpop.f32.mrb[15].mxu1 }
 0x219   :  { %v1127_v41 = vpack.c.bf16 %v1126_v39, %v1126_v39 }
 0x21b   :  { %1529 = vmatmul.mubr.bf16.vlgmr.msra.gmra.mrb[12].mxu0 %v1127_v41 }
 0x2ee   :  { %v1233_v42 = vpop.f32.mrb[12].mxu0 }
 0x2ef   :  { %v1234_v43 = vadd.f32 %v1347_v23, %v1233_v42  ;;  %v1530_v44 = vpop.f32.mrb[13].mxu0 }
 0x2f0   :  { %v1236_v45 = vpop.f32.mrb[14].mxu0 }
 0x2f1   :  { %1239 = vst [vmem:[#allocation2] sm:$0x3] %v1234_v43  ;;  %v1531_v46 = vpop.f32.mrb[15].mxu0 }
 0x2f2   :  { %1645 = shalt.err (!%p1642_p4)
}
 0x2f3   :  { %s1646_s6 = scalar_lea.hbm %s2066_s7, 32 }
 0x2f4   :  { %p1647_p5 = scmp.ne.s32.totalorder %s2066_s7, %s1646_s6  ;;  %p1650_p6 = scmp.lt.u32.totalorder %s1646_s6, %s2066_s7 }
 0x2f6   :  { %p1652_p7 = pnand %p1650_p6, %p1647_p5 }
 0x2f8   :  { %1655 = shalt.err (!%p1652_p7)
}
 0x2f9   :  { %1249 = dma.vmem_to_hbm [thread:$0]  %s1247_s15, 32, %s2066_s7, [#allocation3]  }
 0x2fa   :  { %1656 = dma.done.wait [#allocation3], 32  }
 0x2fb   :  { %1657 = vsyncadd [#allocation3], 4294967264 }
 0x2fc   :  { %1253 = vsyncpa [#allocation3], 1 }

</bundles_post_ra>
